<compile_context>
chip_gen: v7x
topology: tpu7x:2x2x1
jax: 0.10.0
libtpu: 0.0.40
codegen_flags: <defaults>
</compile_context>

<pallas_src>
import functools

import jax
import jax.numpy as jnp
from jax import lax
from jax.experimental import pallas as pl
from jax.experimental.pallas import tpu as pltpu


# ------------------------------ fused SAM kernel ------------------------------

def _sam_kernel(xw_ref, iw_ref, w01_ref, b01_ref, w2_ref, b2_ref,
                x1_ref, img_ref, *, th, h_total, w, feat, oc):
    """One (batch, row-tile) grid step of the fused SAM forward.

    xw_ref : (th+4, w+2, feat)      x window (2-row / 1-col zero halo)
    iw_ref : (th+2, w,   oc)        x_image window (1-row halo), zeros when oc != 3
    w01_ref: (9*feat, feat+oc)      Conv_0 | Conv_1 weights, tap-major / channel-minor rows
    b01_ref: (1, feat+oc)
    w2_ref : (9, oc, feat)          Conv_2 weights, tap index = dy*3 + dx
    b2_ref : (1, feat)
    x1_ref : (th, w, feat)          output features for this tile
    img_ref: (th, w, oc)            output image for this tile
    """
    i = pl.program_id(1)
    the = th + 2                                      # image rows incl. 1-row halo

    xw = xw_ref[...]                                  # (th+4, w+2, feat) f32

    # ---- Conv_0 & Conv_1 fused: channel-only im2col over the 9 taps, ONE matmul with
    # contraction depth 9*feat and concatenated output channels (feat+oc).
    cols = [xw[dy:dy + the, dx:dx + w, :].reshape(the * w, feat)
            for dy in range(3) for dx in range(3)]
    xs_cat = jnp.concatenate(cols, axis=-1)           # (the*w, 9*feat)
    acc01 = jnp.dot(xs_cat, w01_ref[...],
                    preferred_element_type=jnp.float32)
    acc01 = acc01 + b01_ref[...]

    x1_pre = acc01[:, :feat].reshape(the, w, feat)[1:th + 1]         # (th, w, feat)
    img_ext = acc01[:, feat:].reshape(the, w, oc) + iw_ref[...]      # (the, w, oc)

    # Halo rows that fall outside the real image are Conv_2's zero padding — they must
    # not carry bias / x_image values.
    row = i * th - 1 + lax.broadcasted_iota(jnp.int32, (the, 1, 1), 0)
    img_ext = jnp.where((row >= 0) & (row < h_total), img_ext, 0.0)

    img_ref[...] = img_ext[1:th + 1].astype(img_ref.dtype)

    # ---- Conv_2 -> sigmoid -> gating -> residual (image never leaves VMEM).
    zcol = jnp.zeros((the, 1, oc), jnp.float32)
    img_pad = jnp.concatenate([zcol, img_ext, zcol], axis=1)          # (the, w+2, oc)
    acc2 = jnp.zeros((th * w, feat), jnp.float32)
    for dy in range(3):
        for dx in range(3):
            ims = img_pad[dy:dy + th, dx:dx + w, :].reshape(th * w, oc)
            acc2 = acc2 + jnp.dot(ims, w2_ref[dy * 3 + dx],
                                  preferred_element_type=jnp.float32)
    x2 = jax.nn.sigmoid(acc2 + b2_ref[...]).reshape(th, w, feat)

    x_res = xw[2:th + 2, 1:w + 1, :]                                  # original x rows
    x1_ref[...] = (x1_pre * x2 + x_res).astype(x1_ref.dtype)


def _pick_row_tile(h, w, c, budget_bytes=8 << 20):
    """Largest divisor of `h` whose per-tile f32 working set (double-buffered halo'd
    x window + outputs + im2col buffer + accumulators) stays under `budget_bytes`.
    The default leaves ample headroom under v7x's 64 MiB physical / 32 MiB scoped
    VMEM (and v5e's 16 MiB scoped default)."""
    best = 1
    for th in range(1, h + 1):
        if h % th:
            continue
        the = th + 2
        words = (2 * (th + 4) * (w + 2) * c      # halo'd x window, double buffered
                 + 2 * th * w * c                # x1 output, double buffered
                 + 2 * 9 * the * w * c           # per-tap slices + im2col concat
                 + 6 * the * (w + 2) * c)        # accumulators / temporaries / image
        if 4 * words <= budget_bytes:
            best = th
    return best


# --------------------------------- wrapper ------------------------------------

def sam_forward(params, x, x_image=None, *, row_tile=None):
    """SAM.forward.  x: (B, F, H, W) NCHW, x_image: (B, 3, H, W) (used when OC == 3).
    Returns (x1, image) in NCHW, matching the PyTorch module."""
    w0, b0 = params["conv0_w"], params["conv0_b"]   # (F,  F, 3, 3), (F,)
    w1, b1 = params["conv1_w"], params["conv1_b"]   # (OC, F, 3, 3), (OC,)
    w2, b2 = params["conv2_w"], params["conv2_b"]   # (F, OC, 3, 3), (F,)
    b_, c_, h_, wd = x.shape
    feat = w0.shape[0]
    oc = w1.shape[0]
    assert c_ == feat == w0.shape[1] and w2.shape == (feat, oc, 3, 3)

    # NCHW -> NHWC so channels land on the TPU lane axis.
    xh = x.transpose(0, 2, 3, 1).astype(jnp.float32)
    if oc == 3:
        imh = x_image.transpose(0, 2, 3, 1).astype(jnp.float32)
    else:
        imh = jnp.zeros((b_, h_, wd, oc), jnp.float32)   # branch without image residual

    def taps(wt):   # torch OIHW -> (kh, kw, Cin, Cout)
        return jnp.transpose(wt, (2, 3, 1, 0))

    # Conv_0 | Conv_1 weights, flattened tap-major / channel-minor to match the
    # in-kernel im2col column order: row index = (dy*3+dx)*F + cin.
    w01 = jnp.concatenate([taps(w0), taps(w1)], axis=-1)                  # (3,3,F,F+OC)
    w01 = w01.reshape(9 * feat, feat + oc).astype(jnp.float32)
    b01 = jnp.concatenate([b0, b1]).reshape(1, feat + oc).astype(jnp.float32)
    w2t = taps(w2).reshape(9, oc, feat).astype(jnp.float32)
    b2t = b2.reshape(1, feat).astype(jnp.float32)

    th = row_tile if row_tile is not None else _pick_row_tile(h_, wd, feat)
    assert h_ % th == 0, "row_tile must divide H"
    nt = h_ // th

    # Halo'd row windows: 2 x-rows of halo for the chained 3x3 convs, 1 for x_image.
    xpad = jnp.pad(xh, ((0, 0), (2, 2), (1, 1), (0, 0)))
    ipad = jnp.pad(imh, ((0, 0), (1, 1), (0, 0), (0, 0)))
    if nt == 1:
        xw = xpad[:, None]                                         # (B, 1, H+4, W+2, F)
        iw = ipad[:, None]                                         # (B, 1, H+2, W, OC)
    else:
        base = jnp.arange(nt)[:, None] * th
        xw = xpad[:, base + jnp.arange(th + 4)[None, :]]           # (B, nt, th+4, W+2, F)
        iw = ipad[:, base + jnp.arange(th + 2)[None, :]]           # (B, nt, th+2, W, OC)

    kernel = functools.partial(_sam_kernel, th=th, h_total=h_, w=wd, feat=feat, oc=oc)
    x1, img = pl.pallas_call(
        kernel,
        grid=(b_, nt),
        in_specs=[
            pl.BlockSpec((None, None, th + 4, wd + 2, feat), lambda b, i: (b, i, 0, 0, 0)),
            pl.BlockSpec((None, None, th + 2, wd, oc), lambda b, i: (b, i, 0, 0, 0)),
            pl.BlockSpec((9 * feat, feat + oc), lambda b, i: (0, 0)),
            pl.BlockSpec((1, feat + oc), lambda b, i: (0, 0)),
            pl.BlockSpec((9, oc, feat), lambda b, i: (0, 0, 0)),
            pl.BlockSpec((1, feat), lambda b, i: (0, 0)),
        ],
        out_specs=[
            pl.BlockSpec((None, th, wd, feat), lambda b, i: (b, i, 0, 0)),
            pl.BlockSpec((None, th, wd, oc), lambda b, i: (b, i, 0, 0)),
        ],
        out_shape=[
            jax.ShapeDtypeStruct((b_, h_, wd, feat), x.dtype),
            jax.ShapeDtypeStruct((b_, h_, wd, oc), x.dtype),
        ],
        compiler_params=pltpu.CompilerParams(
            dimension_semantics=("parallel", "parallel")),
    )(xw, iw, w01, b01, w2t, b2t)

    return x1.transpose(0, 3, 1, 2), img.transpose(0, 3, 1, 2)


# ------------------------------ pure-JAX reference ------------------------------

def _sam_reference(params, x, x_image):
    def conv(v, wt, bias):
        y = lax.conv_general_dilated(
            v, wt, window_strides=(1, 1), padding=((1, 1), (1, 1)),
            dimension_numbers=("NCHW", "OIHW", "NCHW"),
            precision=lax.Precision.HIGHEST)
        return y + bias[None, :, None, None]

    x1 = conv(x, params["conv0_w"], params["conv0_b"])
    image = conv(x, params["conv1_w"], params["conv1_b"])
    if params["conv1_w"].shape[0] == 3:
        image = image + x_image
    x2 = jax.nn.sigmoid(conv(image, params["conv2_w"], params["conv2_b"]))
    return x1 * x2 + x, image


# ------------------------------------ main --------------------------------------

if __name__ == "__main__":
    B, FEAT, H, W = 2, 32, 16, 16
    OC = 3

    key = jax.random.PRNGKey(0)
    ks = jax.random.split(key, 10)
    params = {
        "conv0_w": 0.05 * jax.random.normal(ks[0], (FEAT, FEAT, 3, 3), jnp.float32),
        "conv0_b": 0.05 * jax.random.normal(ks[1], (FEAT,), jnp.float32),
        "conv1_w": 0.05 * jax.random.normal(ks[2], (OC, FEAT, 3, 3), jnp.float32),
        "conv1_b": 0.05 * jax.random.normal(ks[3], (OC,), jnp.float32),
        "conv2_w": 0.05 * jax.random.normal(ks[4], (FEAT, OC, 3, 3), jnp.float32),
        "conv2_b": 0.05 * jax.random.normal(ks[5], (FEAT,), jnp.float32),
    }
    x = jax.random.normal(ks[6], (B, FEAT, H, W), jnp.float32)
    x_image = jax.random.normal(ks[7], (B, OC, H, W), jnp.float32)

    fwd = jax.jit(functools.partial(sam_forward, row_tile=None))     # 1 row tile / image
    fwd_tiled = jax.jit(functools.partial(sam_forward, row_tile=8))  # 2 row tiles / image

    x1, img = fwd(params, x, x_image)
    x1t, imgt = fwd_tiled(params, x, x_image)
    jax.block_until_ready((x1, img, x1t, imgt))

    assert x1.shape == (B, FEAT, H, W) and img.shape == (B, OC, H, W)
    assert bool(jnp.all(jnp.isfinite(x1))) and bool(jnp.all(jnp.isfinite(img)))

    r_x1, r_img = _sam_reference(params, x, x_image)
    tol = dict(atol=1e-3, rtol=1e-3)
    ok = (jnp.allclose(x1, r_x1, **tol) and jnp.allclose(img, r_img, **tol) and
          jnp.allclose(x1t, r_x1, **tol) and jnp.allclose(imgt, r_img, **tol))

    # output_channels != 3 branch (no x_image residual).
    OC2 = 8
    params2 = {
        "conv0_w": params["conv0_w"], "conv0_b": params["conv0_b"],
        "conv1_w": 0.05 * jax.random.normal(ks[8], (OC2, FEAT, 3, 3), jnp.float32),
        "conv1_b": 0.05 * jax.random.normal(ks[9], (OC2,), jnp.float32),
        "conv2_w": 0.05 * jax.random.normal(ks[4], (FEAT, OC2, 3, 3), jnp.float32),
        "conv2_b": params["conv2_b"],
    }
    x1b, imgb = jax.jit(sam_forward)(params2, x)
    jax.block_until_ready((x1b, imgb))
    r_x1b, r_imgb = _sam_reference(params2, x, None)
    ok = ok and jnp.allclose(x1b, r_x1b, **tol) and jnp.allclose(imgb, r_imgb, **tol)

    assert bool(ok), "Pallas SAM output does not match the JAX reference"

    print("KERNEL_OK")
</pallas_src>

<mosaic_0001>
module attributes {stable_mosaic.version = 11 : i64} {
  func.func @_sam_kernel(%arg0: i32, %arg1: i32, %arg2: memref<1x1x20x18x32xf32, #tpu.memory_space<vmem>>, %arg3: memref<1x1x18x16x3xf32, #tpu.memory_space<vmem>>, %arg4: memref<288x35xf32, #tpu.memory_space<vmem>>, %arg5: memref<1x35xf32, #tpu.memory_space<vmem>>, %arg6: memref<9x3x32xf32, #tpu.memory_space<vmem>>, %arg7: memref<1x32xf32, #tpu.memory_space<vmem>>, %arg8: memref<1x16x16x32xf32, #tpu.memory_space<vmem>>, %arg9: memref<1x16x16x3xf32, #tpu.memory_space<vmem>>) attributes {dimension_semantics = [#tpu.dimension_semantics<parallel>, #tpu.dimension_semantics<parallel>], iteration_bounds = array<i64: 2, 1>, scalar_prefetch = 0 : i64, scratch_operands = 0 : i64, tpu.core_type = #tpu.core_type<tc>, window_params = [{transform_indices = @transform_0, window_bounds = array<i64: 1, 1, 20, 18, 32>}, {transform_indices = @transform_1, window_bounds = array<i64: 1, 1, 18, 16, 3>}, {pipeline_mode = #tpu.pipeline_mode<synchronous>, transform_indices = @transform_2, window_bounds = array<i64: 288, 35>}, {pipeline_mode = #tpu.pipeline_mode<synchronous>, transform_indices = @transform_3, window_bounds = array<i64: 1, 35>}, {pipeline_mode = #tpu.pipeline_mode<synchronous>, transform_indices = @transform_4, window_bounds = array<i64: 9, 3, 32>}, {pipeline_mode = #tpu.pipeline_mode<synchronous>, transform_indices = @transform_5, window_bounds = array<i64: 1, 32>}, {transform_indices = @transform_6, window_bounds = array<i64: 1, 16, 16, 32>}, {transform_indices = @transform_7, window_bounds = array<i64: 1, 16, 16, 3>}]} {
    %c0 = arith.constant 0 : index
    %c0_0 = arith.constant 0 : index
    %c0_1 = arith.constant 0 : index
    %c0_2 = arith.constant 0 : index
    %c0_3 = arith.constant 0 : index
    %0 = vector.load %arg2[%c0, %c0_0, %c0_1, %c0_2, %c0_3] : memref<1x1x20x18x32xf32, #tpu.memory_space<vmem>>, vector<1x1x20x18x32xf32>
    %1 = vector.shape_cast %0 : vector<1x1x20x18x32xf32> to vector<20x18x32xf32>
    %2 = vector.extract_strided_slice %1 {offsets = [0, 0, 0], sizes = [18, 16, 32], strides = [1, 1, 1]} : vector<20x18x32xf32> to vector<18x16x32xf32>
    %3 = vector.shape_cast %2 : vector<18x16x32xf32> to vector<288x32xf32>
    %4 = vector.extract_strided_slice %1 {offsets = [0, 1, 0], sizes = [18, 16, 32], strides = [1, 1, 1]} : vector<20x18x32xf32> to vector<18x16x32xf32>
    %5 = vector.shape_cast %4 : vector<18x16x32xf32> to vector<288x32xf32>
    %6 = vector.extract_strided_slice %1 {offsets = [0, 2, 0], sizes = [18, 16, 32], strides = [1, 1, 1]} : vector<20x18x32xf32> to vector<18x16x32xf32>
    %7 = vector.shape_cast %6 : vector<18x16x32xf32> to vector<288x32xf32>
    %8 = vector.extract_strided_slice %1 {offsets = [1, 0, 0], sizes = [18, 16, 32], strides = [1, 1, 1]} : vector<20x18x32xf32> to vector<18x16x32xf32>
    %9 = vector.shape_cast %8 : vector<18x16x32xf32> to vector<288x32xf32>
    %10 = vector.extract_strided_slice %1 {offsets = [1, 1, 0], sizes = [18, 16, 32], strides = [1, 1, 1]} : vector<20x18x32xf32> to vector<18x16x32xf32>
    %11 = vector.shape_cast %10 : vector<18x16x32xf32> to vector<288x32xf32>
    %12 = vector.extract_strided_slice %1 {offsets = [1, 2, 0], sizes = [18, 16, 32], strides = [1, 1, 1]} : vector<20x18x32xf32> to vector<18x16x32xf32>
    %13 = vector.shape_cast %12 : vector<18x16x32xf32> to vector<288x32xf32>
    %14 = vector.extract_strided_slice %1 {offsets = [2, 0, 0], sizes = [18, 16, 32], strides = [1, 1, 1]} : vector<20x18x32xf32> to vector<18x16x32xf32>
    %15 = vector.shape_cast %14 : vector<18x16x32xf32> to vector<288x32xf32>
    %16 = vector.extract_strided_slice %1 {offsets = [2, 1, 0], sizes = [18, 16, 32], strides = [1, 1, 1]} : vector<20x18x32xf32> to vector<18x16x32xf32>
    %17 = vector.shape_cast %16 : vector<18x16x32xf32> to vector<288x32xf32>
    %18 = vector.extract_strided_slice %1 {offsets = [2, 2, 0], sizes = [18, 16, 32], strides = [1, 1, 1]} : vector<20x18x32xf32> to vector<18x16x32xf32>
    %19 = vector.shape_cast %18 : vector<18x16x32xf32> to vector<288x32xf32>
    %20 = tpu.concatenate %3, %5, %7, %9, %11, %13, %15, %17, %19 in 1 : vector<288x32xf32>, vector<288x32xf32>, vector<288x32xf32>, vector<288x32xf32>, vector<288x32xf32>, vector<288x32xf32>, vector<288x32xf32>, vector<288x32xf32>, vector<288x32xf32> -> vector<288x288xf32>
    %c0_4 = arith.constant 0 : index
    %c0_5 = arith.constant 0 : index
    %21 = vector.load %arg4[%c0_4, %c0_5] : memref<288x35xf32, #tpu.memory_space<vmem>>, vector<288x35xf32>
    %cst = arith.constant dense<0.000000e+00> : vector<288x35xf32>
    %22 = tpu.matmul %20, %21, %cst {dimension_numbers = #tpu.dot_dimension_numbers<[1], [0], [0], [1], [0, 0, 1, 1], [], []>} : vector<288x288xf32>, vector<288x35xf32>, vector<288x35xf32> -> vector<288x35xf32>
    %c0_6 = arith.constant 0 : index
    %c0_7 = arith.constant 0 : index
    %23 = vector.load %arg5[%c0_6, %c0_7] : memref<1x35xf32, #tpu.memory_space<vmem>>, vector<1x35xf32>
    %24 = vector.broadcast %23 : vector<1x35xf32> to vector<288x35xf32>
    %25 = arith.addf %22, %24 : vector<288x35xf32>
    %26 = vector.extract_strided_slice %25 {offsets = [0, 0], sizes = [288, 32], strides = [1, 1]} : vector<288x35xf32> to vector<288x32xf32>
    %27 = vector.shape_cast %26 : vector<288x32xf32> to vector<18x16x32xf32>
    %28 = vector.extract_strided_slice %27 {offsets = [1, 0, 0], sizes = [16, 16, 32], strides = [1, 1, 1]} : vector<18x16x32xf32> to vector<16x16x32xf32>
    %29 = vector.extract_strided_slice %25 {offsets = [0, 32], sizes = [288, 3], strides = [1, 1]} : vector<288x35xf32> to vector<288x3xf32>
    %30 = vector.shape_cast %29 : vector<288x3xf32> to vector<18x16x3xf32>
    %c0_8 = arith.constant 0 : index
    %c0_9 = arith.constant 0 : index
    %c0_10 = arith.constant 0 : index
    %c0_11 = arith.constant 0 : index
    %c0_12 = arith.constant 0 : index
    %31 = vector.load %arg3[%c0_8, %c0_9, %c0_10, %c0_11, %c0_12] : memref<1x1x18x16x3xf32, #tpu.memory_space<vmem>>, vector<1x1x18x16x3xf32>
    %32 = vector.shape_cast %31 : vector<1x1x18x16x3xf32> to vector<18x16x3xf32>
    %33 = arith.addf %30, %32 : vector<18x16x3xf32>
    %c16_i32 = arith.constant 16 : i32
    %34 = arith.muli %arg1, %c16_i32 : i32
    %c1_i32 = arith.constant 1 : i32
    %35 = arith.subi %34, %c1_i32 : i32
    %36 = tpu.iota {dimensions = array<i32: 0>} : vector<18x1x1xi32>
    %37 = vector.broadcast %35 : i32 to vector<18x1x1xi32>
    %38 = arith.addi %37, %36 : vector<18x1x1xi32>
    %c0_i32 = arith.constant 0 : i32
    %39 = vector.broadcast %c0_i32 : i32 to vector<18x1x1xi32>
    %40 = arith.cmpi sge, %38, %39 : vector<18x1x1xi32>
    %c16_i32_13 = arith.constant 16 : i32
    %41 = vector.broadcast %c16_i32_13 : i32 to vector<18x1x1xi32>
    %42 = arith.cmpi slt, %38, %41 : vector<18x1x1xi32>
    %43 = arith.andi %40, %42 : vector<18x1x1xi1>
    %cst_14 = arith.constant 0.000000e+00 : f32
    %44 = vector.shape_cast %43 : vector<18x1x1xi1> to vector<18x1x1xi1>
    %45 = vector.broadcast %44 : vector<18x1x1xi1> to vector<18x16x3xi1>
    %46 = vector.broadcast %cst_14 : f32 to vector<18x16x3xf32>
    %47 = arith.select %45, %33, %46 : vector<18x16x3xi1>, vector<18x16x3xf32>
    %48 = vector.extract_strided_slice %47 {offsets = [1, 0, 0], sizes = [16, 16, 3], strides = [1, 1, 1]} : vector<18x16x3xf32> to vector<16x16x3xf32>
    %c0_15 = arith.constant 0 : index
    %c0_16 = arith.constant 0 : index
    %c0_17 = arith.constant 0 : index
    %c0_18 = arith.constant 0 : index
    %49 = vector.load %arg9[%c0_15, %c0_16, %c0_17, %c0_18] : memref<1x16x16x3xf32, #tpu.memory_space<vmem>>, vector<1x16x16x3xf32>
    %50 = vector.shape_cast %49 : vector<1x16x16x3xf32> to vector<16x16x3xf32>
    %51 = vector.shape_cast %48 : vector<16x16x3xf32> to vector<1x16x16x3xf32>
    tpu.vector_store %arg9[%c0_15, %c0_16, %c0_17, %c0_18], %51 {strides = array<i32>} : memref<1x16x16x3xf32, #tpu.memory_space<vmem>>, vector<1x16x16x3xf32>,
    %cst_19 = arith.constant 0.000000e+00 : f32
    %52 = vector.broadcast %cst_19 : f32 to vector<18x1x3xf32>
    %53 = tpu.concatenate %52, %47, %52 in 1 : vector<18x1x3xf32>, vector<18x16x3xf32>, vector<18x1x3xf32> -> vector<18x18x3xf32>
    %cst_20 = arith.constant 0.000000e+00 : f32
    %54 = vector.broadcast %cst_20 : f32 to vector<256x32xf32>
    %55 = vector.extract_strided_slice %53 {offsets = [0, 0, 0], sizes = [16, 16, 3], strides = [1, 1, 1]} : vector<18x18x3xf32> to vector<16x16x3xf32>
    %56 = vector.shape_cast %55 : vector<16x16x3xf32> to vector<256x3xf32>
    %c0_21 = arith.constant 0 : index
    %c0_22 = arith.constant 0 : index
    %c0_23 = arith.constant 0 : index
    %57 = vector.load %arg6[%c0_21, %c0_22, %c0_23] : memref<9x3x32xf32, #tpu.memory_space<vmem>>, vector<1x3x32xf32>
    %58 = vector.shape_cast %57 : vector<1x3x32xf32> to vector<3x32xf32>
    %cst_24 = arith.constant dense<0.000000e+00> : vector<256x32xf32>
    %59 = tpu.matmul %56, %58, %cst_24 {dimension_numbers = #tpu.dot_dimension_numbers<[1], [0], [0], [1], [0, 0, 1, 1], [], []>} : vector<256x3xf32>, vector<3x32xf32>, vector<256x32xf32> -> vector<256x32xf32>
    %60 = arith.addf %54, %59 : vector<256x32xf32>
    %61 = vector.extract_strided_slice %53 {offsets = [0, 1, 0], sizes = [16, 16, 3], strides = [1, 1, 1]} : vector<18x18x3xf32> to vector<16x16x3xf32>
    %62 = vector.shape_cast %61 : vector<16x16x3xf32> to vector<256x3xf32>
    %c1 = arith.constant 1 : index
    %c0_25 = arith.constant 0 : index
    %c0_26 = arith.constant 0 : index
    %63 = vector.load %arg6[%c1, %c0_25, %c0_26] : memref<9x3x32xf32, #tpu.memory_space<vmem>>, vector<1x3x32xf32>
    %64 = vector.shape_cast %63 : vector<1x3x32xf32> to vector<3x32xf32>
    %cst_27 = arith.constant dense<0.000000e+00> : vector<256x32xf32>
    %65 = tpu.matmul %62, %64, %cst_27 {dimension_numbers = #tpu.dot_dimension_numbers<[1], [0], [0], [1], [0, 0, 1, 1], [], []>} : vector<256x3xf32>, vector<3x32xf32>, vector<256x32xf32> -> vector<256x32xf32>
    %66 = arith.addf %60, %65 : vector<256x32xf32>
    %67 = vector.extract_strided_slice %53 {offsets = [0, 2, 0], sizes = [16, 16, 3], strides = [1, 1, 1]} : vector<18x18x3xf32> to vector<16x16x3xf32>
    %68 = vector.shape_cast %67 : vector<16x16x3xf32> to vector<256x3xf32>
    %c2 = arith.constant 2 : index
    %c0_28 = arith.constant 0 : index
    %c0_29 = arith.constant 0 : index
    %69 = vector.load %arg6[%c2, %c0_28, %c0_29] : memref<9x3x32xf32, #tpu.memory_space<vmem>>, vector<1x3x32xf32>
    %70 = vector.shape_cast %69 : vector<1x3x32xf32> to vector<3x32xf32>
    %cst_30 = arith.constant dense<0.000000e+00> : vector<256x32xf32>
    %71 = tpu.matmul %68, %70, %cst_30 {dimension_numbers = #tpu.dot_dimension_numbers<[1], [0], [0], [1], [0, 0, 1, 1], [], []>} : vector<256x3xf32>, vector<3x32xf32>, vector<256x32xf32> -> vector<256x32xf32>
    %72 = arith.addf %66, %71 : vector<256x32xf32>
    %73 = vector.extract_strided_slice %53 {offsets = [1, 0, 0], sizes = [16, 16, 3], strides = [1, 1, 1]} : vector<18x18x3xf32> to vector<16x16x3xf32>
    %74 = vector.shape_cast %73 : vector<16x16x3xf32> to vector<256x3xf32>
    %c3 = arith.constant 3 : index
    %c0_31 = arith.constant 0 : index
    %c0_32 = arith.constant 0 : index
    %75 = vector.load %arg6[%c3, %c0_31, %c0_32] : memref<9x3x32xf32, #tpu.memory_space<vmem>>, vector<1x3x32xf32>
    %76 = vector.shape_cast %75 : vector<1x3x32xf32> to vector<3x32xf32>
    %cst_33 = arith.constant dense<0.000000e+00> : vector<256x32xf32>
    %77 = tpu.matmul %74, %76, %cst_33 {dimension_numbers = #tpu.dot_dimension_numbers<[1], [0], [0], [1], [0, 0, 1, 1], [], []>} : vector<256x3xf32>, vector<3x32xf32>, vector<256x32xf32> -> vector<256x32xf32>
    %78 = arith.addf %72, %77 : vector<256x32xf32>
    %79 = vector.extract_strided_slice %53 {offsets = [1, 1, 0], sizes = [16, 16, 3], strides = [1, 1, 1]} : vector<18x18x3xf32> to vector<16x16x3xf32>
    %80 = vector.shape_cast %79 : vector<16x16x3xf32> to vector<256x3xf32>
    %c4 = arith.constant 4 : index
    %c0_34 = arith.constant 0 : index
    %c0_35 = arith.constant 0 : index
    %81 = vector.load %arg6[%c4, %c0_34, %c0_35] : memref<9x3x32xf32, #tpu.memory_space<vmem>>, vector<1x3x32xf32>
    %82 = vector.shape_cast %81 : vector<1x3x32xf32> to vector<3x32xf32>
    %cst_36 = arith.constant dense<0.000000e+00> : vector<256x32xf32>
    %83 = tpu.matmul %80, %82, %cst_36 {dimension_numbers = #tpu.dot_dimension_numbers<[1], [0], [0], [1], [0, 0, 1, 1], [], []>} : vector<256x3xf32>, vector<3x32xf32>, vector<256x32xf32> -> vector<256x32xf32>
    %84 = arith.addf %78, %83 : vector<256x32xf32>
    %85 = vector.extract_strided_slice %53 {offsets = [1, 2, 0], sizes = [16, 16, 3], strides = [1, 1, 1]} : vector<18x18x3xf32> to vector<16x16x3xf32>
    %86 = vector.shape_cast %85 : vector<16x16x3xf32> to vector<256x3xf32>
    %c5 = arith.constant 5 : index
    %c0_37 = arith.constant 0 : index
    %c0_38 = arith.constant 0 : index
    %87 = vector.load %arg6[%c5, %c0_37, %c0_38] : memref<9x3x32xf32, #tpu.memory_space<vmem>>, vector<1x3x32xf32>
    %88 = vector.shape_cast %87 : vector<1x3x32xf32> to vector<3x32xf32>
    %cst_39 = arith.constant dense<0.000000e+00> : vector<256x32xf32>
    %89 = tpu.matmul %86, %88, %cst_39 {dimension_numbers = #tpu.dot_dimension_numbers<[1], [0], [0], [1], [0, 0, 1, 1], [], []>} : vector<256x3xf32>, vector<3x32xf32>, vector<256x32xf32> -> vector<256x32xf32>
    %90 = arith.addf %84, %89 : vector<256x32xf32>
    %91 = vector.extract_strided_slice %53 {offsets = [2, 0, 0], sizes = [16, 16, 3], strides = [1, 1, 1]} : vector<18x18x3xf32> to vector<16x16x3xf32>
    %92 = vector.shape_cast %91 : vector<16x16x3xf32> to vector<256x3xf32>
    %c6 = arith.constant 6 : index
    %c0_40 = arith.constant 0 : index
    %c0_41 = arith.constant 0 : index
    %93 = vector.load %arg6[%c6, %c0_40, %c0_41] : memref<9x3x32xf32, #tpu.memory_space<vmem>>, vector<1x3x32xf32>
    %94 = vector.shape_cast %93 : vector<1x3x32xf32> to vector<3x32xf32>
    %cst_42 = arith.constant dense<0.000000e+00> : vector<256x32xf32>
    %95 = tpu.matmul %92, %94, %cst_42 {dimension_numbers = #tpu.dot_dimension_numbers<[1], [0], [0], [1], [0, 0, 1, 1], [], []>} : vector<256x3xf32>, vector<3x32xf32>, vector<256x32xf32> -> vector<256x32xf32>
    %96 = arith.addf %90, %95 : vector<256x32xf32>
    %97 = vector.extract_strided_slice %53 {offsets = [2, 1, 0], sizes = [16, 16, 3], strides = [1, 1, 1]} : vector<18x18x3xf32> to vector<16x16x3xf32>
    %98 = vector.shape_cast %97 : vector<16x16x3xf32> to vector<256x3xf32>
    %c7 = arith.constant 7 : index
    %c0_43 = arith.constant 0 : index
    %c0_44 = arith.constant 0 : index
    %99 = vector.load %arg6[%c7, %c0_43, %c0_44] : memref<9x3x32xf32, #tpu.memory_space<vmem>>, vector<1x3x32xf32>
    %100 = vector.shape_cast %99 : vector<1x3x32xf32> to vector<3x32xf32>
    %cst_45 = arith.constant dense<0.000000e+00> : vector<256x32xf32>
    %101 = tpu.matmul %98, %100, %cst_45 {dimension_numbers = #tpu.dot_dimension_numbers<[1], [0], [0], [1], [0, 0, 1, 1], [], []>} : vector<256x3xf32>, vector<3x32xf32>, vector<256x32xf32> -> vector<256x32xf32>
    %102 = arith.addf %96, %101 : vector<256x32xf32>
    %103 = vector.extract_strided_slice %53 {offsets = [2, 2, 0], sizes = [16, 16, 3], strides = [1, 1, 1]} : vector<18x18x3xf32> to vector<16x16x3xf32>
    %104 = vector.shape_cast %103 : vector<16x16x3xf32> to vector<256x3xf32>
    %c8 = arith.constant 8 : index
    %c0_46 = arith.constant 0 : index
    %c0_47 = arith.constant 0 : index
    %105 = vector.load %arg6[%c8, %c0_46, %c0_47] : memref<9x3x32xf32, #tpu.memory_space<vmem>>, vector<1x3x32xf32>
    %106 = vector.shape_cast %105 : vector<1x3x32xf32> to vector<3x32xf32>
    %cst_48 = arith.constant dense<0.000000e+00> : vector<256x32xf32>
    %107 = tpu.matmul %104, %106, %cst_48 {dimension_numbers = #tpu.dot_dimension_numbers<[1], [0], [0], [1], [0, 0, 1, 1], [], []>} : vector<256x3xf32>, vector<3x32xf32>, vector<256x32xf32> -> vector<256x32xf32>
    %108 = arith.addf %102, %107 : vector<256x32xf32>
    %c0_49 = arith.constant 0 : index
    %c0_50 = arith.constant 0 : index
    %109 = vector.load %arg7[%c0_49, %c0_50] : memref<1x32xf32, #tpu.memory_space<vmem>>, vector<1x32xf32>
    %110 = vector.broadcast %109 : vector<1x32xf32> to vector<256x32xf32>
    %111 = arith.addf %108, %110 : vector<256x32xf32>
    %112 = arith.negf %111 : vector<256x32xf32>
    %113 = math.exp %112 : vector<256x32xf32>
    %cst_51 = arith.constant 1.000000e+00 : f32
    %114 = vector.broadcast %cst_51 : f32 to vector<256x32xf32>
    %115 = arith.addf %114, %113 : vector<256x32xf32>
    %116 = arith.divf %114, %115 : vector<256x32xf32>
    %117 = vector.shape_cast %116 : vector<256x32xf32> to vector<16x16x32xf32>
    %118 = vector.extract_strided_slice %1 {offsets = [2, 1, 0], sizes = [16, 16, 32], strides = [1, 1, 1]} : vector<20x18x32xf32> to vector<16x16x32xf32>
    %119 = arith.mulf %28, %117 : vector<16x16x32xf32>
    %120 = arith.addf %119, %118 : vector<16x16x32xf32>
    %c0_52 = arith.constant 0 : index
    %c0_53 = arith.constant 0 : index
    %c0_54 = arith.constant 0 : index
    %c0_55 = arith.constant 0 : index
    %121 = vector.load %arg8[%c0_52, %c0_53, %c0_54, %c0_55] : memref<1x16x16x32xf32, #tpu.memory_space<vmem>>, vector<1x16x16x32xf32>
    %122 = vector.shape_cast %121 : vector<1x16x16x32xf32> to vector<16x16x32xf32>
    %123 = vector.shape_cast %120 : vector<16x16x32xf32> to vector<1x16x16x32xf32>
    tpu.vector_store %arg8[%c0_52, %c0_53, %c0_54, %c0_55], %123 {strides = array<i32>} : memref<1x16x16x32xf32, #tpu.memory_space<vmem>>, vector<1x16x16x32xf32>,
    return
  }
  func.func @transform_0(%arg0: i32, %arg1: i32) -> (i32, i32, i32, i32, i32) {
    %c0_i32 = arith.constant 0 : i32
    %c0_i32_0 = arith.constant 0 : i32
    %c0_i32_1 = arith.constant 0 : i32
    %c0_i32_2 = arith.constant 0 : i32
    return %arg0, %arg1, %c0_i32, %c0_i32_0, %c0_i32_1 : i32, i32, i32, i32, i32
  }
  func.func @transform_1(%arg0: i32, %arg1: i32) -> (i32, i32, i32, i32, i32) {
    %c0_i32 = arith.constant 0 : i32
    %c0_i32_0 = arith.constant 0 : i32
    %c0_i32_1 = arith.constant 0 : i32
    %c0_i32_2 = arith.constant 0 : i32
    return %arg0, %arg1, %c0_i32, %c0_i32_0, %c0_i32_1 : i32, i32, i32, i32, i32
  }
  func.func @transform_2(%arg0: i32, %arg1: i32) -> (i32, i32) {
    %c0_i32 = arith.constant 0 : i32
    %c0_i32_0 = arith.constant 0 : i32
    %c0_i32_1 = arith.constant 0 : i32
    return %c0_i32, %c0_i32_0 : i32, i32
  }
  func.func @transform_3(%arg0: i32, %arg1: i32) -> (i32, i32) {
    %c0_i32 = arith.constant 0 : i32
    %c0_i32_0 = arith.constant 0 : i32
    %c0_i32_1 = arith.constant 0 : i32
    return %c0_i32, %c0_i32_0 : i32, i32
  }
  func.func @transform_4(%arg0: i32, %arg1: i32) -> (i32, i32, i32) {
    %c0_i32 = arith.constant 0 : i32
    %c0_i32_0 = arith.constant 0 : i32
    %c0_i32_1 = arith.constant 0 : i32
    %c0_i32_2 = arith.constant 0 : i32
    return %c0_i32, %c0_i32_0, %c0_i32_1 : i32, i32, i32
  }
  func.func @transform_5(%arg0: i32, %arg1: i32) -> (i32, i32) {
    %c0_i32 = arith.constant 0 : i32
    %c0_i32_0 = arith.constant 0 : i32
    %c0_i32_1 = arith.constant 0 : i32
    return %c0_i32, %c0_i32_0 : i32, i32
  }
  func.func @transform_6(%arg0: i32, %arg1: i32) -> (i32, i32, i32, i32) {
    %c0_i32 = arith.constant 0 : i32
    %c0_i32_0 = arith.constant 0 : i32
    %c0_i32_1 = arith.constant 0 : i32
    return %arg0, %arg1, %c0_i32, %c0_i32_0 : i32, i32, i32, i32
  }
  func.func @transform_7(%arg0: i32, %arg1: i32) -> (i32, i32, i32, i32) {
    %c0_i32 = arith.constant 0 : i32
    %c0_i32_0 = arith.constant 0 : i32
    %c0_i32_1 = arith.constant 0 : i32
    return %arg0, %arg1, %c0_i32, %c0_i32_0 : i32, i32, i32, i32
  }
}

</mosaic_0001>

<bundles_post_ra>
// kernel: sam_forward.1
= control target key start
LH: loop header
LB: loop body
LE: loop exit
PB: predicated region body
PF: predicated region fallthrough
CT: control target
= control target key end

     0   :  { %13 = vsyncpa [#allocation3], 0  ;;  %s11947_s0 = inlined_call_operand.vmem [shape: f32[2,1,20,18,32], index: 0, kind: input, shape index: {}]   ;;  %s11948_s1 = inlined_call_operand.vmem [shape: f32[2,1,18,16,3], index: 1, kind: input, shape index: {}]   ;;  %s11949_s2 = inlined_call_operand.vmem [shape: f32[288,35], index: 2, kind: input, shape index: {}]   ;;  %s11950_s3 = inlined_call_operand.vmem [shape: f32[1,35], index: 3, kind: input, shape index: {}]   ;;  %s11951_s4 = inlined_call_operand.vmem [shape: f32[9,3,32], index: 4, kind: input, shape index: {}]   ;;  %s11952_s5 = inlined_call_operand.vmem [shape: f32[1,32], index: 5, kind: input, shape index: {}]   ;;  %s11953_s6 = inlined_call_operand.hbm [shape: f32[2,16,16,32], index: 6, kind: output, shape index: {0}]   ;;  %s11954_s7 = inlined_call_operand.vmem [shape: f32[2,16,16,3], index: 7, kind: output, shape index: {1}]  }
   0x1   :  { %15 = vsyncpa [#allocation3 + $0x1], 0  ;;  %s8641_s24 = smov 0   ;;  %s8643_s25 = smov 0  }
   0x2   :  { %s8645_s26 = smov 0   ;;  %s8647_s27 = smov 0  }
   0x3   :  { %s8649_s28 = smov 0   ;;  %s8651_s29 = smov 0  }
   0x4 LB: > { %s6187_s30 = sadd.s32 4294967295, %s8591_s29   ;;  %s6188_s8 = sadd.s32 4294967294, %s8591_s29   ;;  %s8591_s29 = sphi %s8651_s29, %s21_s29   ;;  %s8587_s28 = sphi %s8649_s28, %s12400_s28   ;;  %s8583_s27 = sphi %s8647_s27, %s12399_s27   ;;  %s8579_s26 = sphi %s8645_s26, %s12398_s26   ;;  %s8575_s25 = sphi %s8643_s25, %s12397_s25   ;;  %s8571_s24 = sphi %s8641_s24, %s12396_s24  }
   0x5   : > { %s33_s9 = sadd.s32 1, %s8587_s28  ;;  %s182_s10 = sadd.s32 1, %s8579_s26 }
   0x6   : > { %p35_p0 = scmp.ge.s32.totalorder %s33_s9, 2  ;;  %p192_p1 = scmp.ne.s32.totalorder %s8579_s26, %s8575_s25 }
   0x7   : > { %p193_p2 = scmp.eq.s32.totalorder %s6187_s30, 1  ;;  %p198_p3 = scmp.ne.s32.totalorder %s8575_s25, %s8571_s24 }
   0x8   : > { %s12402_s9 = smov (%p35_p0, %s33_s9), 0  ;;  %p199_p5 = scmp.eq.s32.totalorder %s6188_s8, 1 }
   0x9   : > { %p8681_p4 = por %p193_p2, %p192_p1  ;;  %s177_s12 = ssub.s32 %s8587_s28, %s12402_s9 }
   0xa   : > { %p6191_p6 = scmp.ge.s32.totalorder %s8591_s29, 1  ;;  %p180_p7 = scmp.eq.s32.totalorder %s177_s12, 0 }
   0xb   : > { %p8688_p8 = por %p199_p5, %p198_p3  ;;  %p281_p9 = scmp.lt.s32.totalorder %s8591_s29, 3 }
   0xc   : > { %s8694_s14 = scalar_select %p180_p7, %s8579_s26, %s182_s10  }
   0xd   : > { %p282_p10 = pnand %p6191_p6, %p281_p9 }
   0xf   : > { %285 = sbr.rel (%p282_p10) target bundleno = 1499 (0x5db), region = 44 }
  0x16   : > { %p336_p11 = scmp.lt.s32.totalorder %s8583_s27, 1  ;;  %v1591_v0 = vld [vmem:[%s11949_s2] sm:$0xff]  ;;  %v8593_v1 = vmov 0.0|0.0   ;;  %v1592_v2 = vld [vmem:[%s11949_s2 + $0x8] sm:$0xff]  ;;  %v1593_v3 = vld [vmem:[%s11949_s2 + $0x10] sm:$0xff]  ;;  %vm571_vm0 = vcmask 1045504  }
  0x17   : > { %7428 = vmatprep.subr.bf16.mxu0 %v8593_v1  ;;  %v1594_v4 = vld [vmem:[%s11949_s2 + $0x18] sm:$0xff]  ;;  %v7429_v5 = vpack.c.bf16 %v1592_v2, %v1591_v0  ;;  %v1595_v7 = vld [vmem:[%s11949_s2 + $0x20] sm:$0xff]  ;;  %v1596_v8 = vld [vmem:[%s11949_s2 + $0x28] sm:$0xff]  ;;  %vm480_vm1 = vcmask 1046528   ;;  %s8594_s15 = smov 32   ;;  %s8595_s16 = smov 96  }
  0x18   : > { %s8711_s23 = scalar_select %p336_p11, %s8583_s27, 1  ;;  %v7432_v6 = vpack.c.bf16 %v1594_v4, %v1593_v3  ;;  %v1597_v9 = vld [vmem:[%s11949_s2 + $0x30] sm:$0xff]  ;;  %v1598_v12 = vld [vmem:[%s11949_s2 + $0x38] sm:$0xff]  ;;  %v7435_v18 = vpack.c.bf16 %v1596_v8, %v1595_v7  ;;  %v1599_v41 = vld [vmem:[%s11949_s2 + $0x40] sm:$0xff]  ;;  %vm1372_vm2 = vcmask 261120   ;;  %vm1409_vm3 = vcmask 523264  }
  0x19   : > { %7430 = vmatpush1.bf16.msra.mxu0 %v7429_v5  ;;  %v7438_v33 = vpack.c.bf16 %v1598_v12, %v1597_v9  ;;  %v1600_v42 = vld [vmem:[%s11949_s2 + $0x48] sm:$0xff]  ;;  %v1601_v55 = vld [vmem:[%s11949_s2 + $0x50] sm:$0xff]  ;;  %v1602_v56 = vld [vmem:[%s11949_s2 + $0x58] sm:$0xff]  ;;  %s8596_s22 = smov 64   ;;  %vm1446_vm4 = vcmask 785408   ;;  %vm3137_vm5 = vcmask 1042432  }
  0x1a   : > { %s7742_s30 = smul.u32 480, %s8711_s23  ;;  %7431 = vmatprep.subr.bf16.mxu0 %v8593_v1  ;;  %v7441_v54 = vpack.c.bf16 %v1600_v42, %v1599_v41  ;;  %v7444_v2 = vpack.c.bf16 %v1602_v56, %v1601_v55  ;;  %v1603_v4 = vld [vmem:[%s11949_s2 + $0x60] sm:$0xff]  ;;  %v1604_v5 = vld [vmem:[%s11949_s2 + $0x68] sm:$0xff]  ;;  %v1610_v55 = vld [vmem:[%s11949_s2 + $0x98] sm:$0xff]  ;;  %vm2723_vm6 = vcmask 1040384   ;;  %vm2686_vm7 = vcmask 23552  }
  0x1b   : > { %s6577_s17 = sshll.u32 %s8711_s23, 8  ;;  %s8598_s12 = smov [#allocation2]  }
  0x1c   : > { %s8724_s18 = scalar_lea.vmem %s11947_s0, %s7742_s30  ;;  %s10802_s21 = scalar_lea.vmem %s11954_s7, %s6577_s17 }
  0x1d   : > { %v8730_v10 = vld [vmem:[%s8724_s18 + $0x18] sm:$0xff]  ;;  %v8733_v11 = vld [vmem:[%s8724_s18 + $0x20] sm:$0xff]  ;;  %v8744_v16 = vld [vmem:[%s8724_s18 + $0x8] sm:$0xff]  ;;  %7433 = vmatpush1.bf16.msra.mxu0 %v7432_v6  ;;  %s8517_s17 = sshll.u32 %s8598_s12, 4  ;;  %s8518_s17 = int_to_ptr.vmem [resolvable:$false] %s8517_s17 }
  0x1e   : > { %v577_v13 = vrot.slane %v8730_v10, 2  ;;  %v578_v14 = vrot.slane %v8733_v11, 2  ;;  %v8741_v15 = vld [vmem:[%s8724_s18] sm:$0xff]  ;;  %v8747_v17 = vld [vmem:[%s8724_s18 + $0x30] sm:$0xff]  ;;  %v482_v20 = vrot.slane %v8744_v16, 1  ;;  %v8752_v21 = vld [vmem:[%s8724_s18 + $0x38] sm:$0xff]  ;;  %7434 = vmatprep.subr.bf16.mxu0 %v8593_v1 }
  0x1f   : > { %v481_v19 = vrot.slane %v8741_v15, 1  ;;  %v491_v22 = vrot.slane %v8747_v17, 1  ;;  %v572_v23 = vrot.slane %v8741_v15, 2  ;;  %v492_v25 = vrot.slane %v8752_v21, 1  ;;  %v368_v27 = vld [vmem:[%s8724_s18 + $0x10] sm:$0x3] }
  0x20   : > { %v8758_v24 = vsel %vm571_vm0, %v577_v13, %v578_v14  ;;  %v573_v26 = vrot.slane %v8744_v16, 2  ;;  %v371_v28 = vld [vmem:[%s8724_s18 + $0x28] sm:$0x3]  ;;  %v484_v30 = vrot.slane %v368_v27, 1  ;;  %v374_v32 = vld [vmem:[%s8724_s18 + $0x40] sm:$0x3] }
  0x21   : > { %v483_v29 = vsel %vm480_vm1, %v481_v19, %v482_v20  ;;  %v580_v31 = vrot.slane %v371_v28, 2  ;;  %v8768_v35 = vsel %vm480_vm1, %v491_v22, %v492_v25  ;;  %v575_v37 = vrot.slane %v368_v27, 2  ;;  %7436 = vmatpush1.bf16.msra.mxu0 %v7435_v18  ;;  %v8789_v47 = vld [vmem:[%s8724_s18 + $0x48] sm:$0xff]  ;;  %v8800_v53 = vld [vmem:[%s8724_s18 + $0x50] sm:$0xff]  ;;  %v377_v3 = vld [vmem:[%s8724_s18 + $0x58] sm:$0x3] }
  0x22   : > { %v7806_v34 = vpack.i.bf16 %v483_v29, %v8758_v24  ;;  %12113 = vst [vmem:[#allocation5_spill] sm:$0xff] %v8768_v35  ;;  %v574_v36 = vsel %vm571_vm0, %v572_v23, %v573_v26  ;;  %v7816_v38 = vpack.i.bf16 %v8730_v10, %v8768_v35  ;;  %v485_v39 = vsel %vm480_vm1, %v482_v20, %v484_v30  ;;  %v1605_v18 = vld [vmem:[%s11949_s2 + $0x70] sm:$0xff]  ;;  %v1606_v19 = vld [vmem:[%s11949_s2 + $0x78] sm:$0xff]  ;;  %v8867_v27 = vld [vmem:[%s8724_s18 + $0x68] sm:$0xff]  ;;  %s8519_s19 = scalar_lea.vmem %s8518_s17, 8192 }
  0x23   : > { %v8775_v40 = vsel %vm571_vm0, %v578_v14, %v580_v31  ;;  %7437 = vmatprep.subr.bf16.mxu0 %v8593_v1  ;;  %v7811_v43 = vpack.i.bf16 %v574_v36, %v8747_v17  ;;  %v494_v45 = vrot.slane %v374_v32, 1  ;;  %v486_v46 = vrot.slane %v8730_v10, 1  ;;  %v1607_v29 = vld [vmem:[%s11949_s2 + $0x80] sm:$0xff]  ;;  %v1608_v30 = vld [vmem:[%s11949_s2 + $0x88] sm:$0xff] }
  0x24   : > { %7807 = vrot.lane.b32.xlu0 %v7806_v34, %s8594_s15  ;;  %v7821_v44 = vpack.i.bf16 %v485_v39, %v8775_v40  ;;  %7817 = vrot.lane.b32.xlu1 %v7816_v38, %s8595_s16  ;;  %v576_v48 = vsel %vm571_vm0, %v573_v26, %v575_v37  ;;  %v487_v49 = vrot.slane %v8733_v11, 1  ;;  %v582_v50 = vrot.slane %v8747_v17, 2  ;;  %v8864_v26 = vld [vmem:[%s8724_s18 + $0x60] sm:$0xff]  ;;  %v380_v39 = vld [vmem:[%s8724_s18 + $0x70] sm:$0x3] }
  0x25   : > { %v583_v51 = vrot.slane %v8752_v21, 2  ;;  %v8797_v52 = vsel %vm480_vm1, %v492_v25, %v494_v45  ;;  %7439 = vmatpush1.bf16.msra.mxu0 %v7438_v33  ;;  %v7826_v57 = vpack.i.bf16 %v576_v48, %v8752_v21  ;;  %v496_v58 = vrot.slane %v8789_v47, 1 }
  0x26   : > { %12114 = vst [vmem:[#allocation6_spill] sm:$0xff] %v8797_v52  ;;  %7440 = vmatprep.subr.bf16.mxu0 %v8593_v1  ;;  %v7831_v59 = vpack.i.bf16 %v8733_v11, %v8797_v52  ;;  %v8816_v60 = vsel %vm480_vm1, %v486_v46, %v487_v49  ;;  %v497_v62 = vrot.slane %v8800_v53, 1  ;;  %v489_v63 = vrot.slane %v371_v28, 1 }
  0x27   : > { %v8819_v61 = vsel %vm571_vm0, %v582_v50, %v583_v51  ;;  %v585_v0 = vrot.slane %v374_v32, 2  ;;  %v7841_v7 = vpack.i.bf16 %v8758_v24, %v8789_v47  ;;  %v499_v13 = vrot.slane %v377_v3, 1 }
  0x28   : > { %7812 = vrot.lane.b32.xlu0 %v7811_v43, %s8596_s22  ;;  %7822 = vrot.lane.b32.xlu1 %v7821_v44, %s8594_s15  ;;  %v7836_v6 = vpack.i.bf16 %v8816_v60, %v8819_v61  ;;  %v8837_v8 = vsel %vm480_vm1, %v496_v58, %v497_v62  ;;  %v8840_v9 = vsel %vm480_vm1, %v487_v49, %v489_v63  ;;  %v587_v23 = vrot.slane %v8789_v47, 2  ;;  %v8911_v49 = vld [vmem:[%s8724_s18 + $0x78] sm:$0xff] }
  0x29   : > { %7442 = vmatpush1.bf16.msra.mxu0 %v7441_v54  ;;  %12115 = vst [vmem:[#allocation7_spill] sm:$0xff] %v8837_v8  ;;  %v8843_v12 = vsel %vm571_vm0, %v583_v51, %v585_v0  ;;  %v7447_v14 = vpack.c.bf16 %v1604_v5, %v1603_v4  ;;  %v7846_v20 = vpack.i.bf16 %v8747_v17, %v8837_v8  ;;  %v588_v24 = vrot.slane %v8800_v53, 2  ;;  %v8917_v51 = vld [vmem:[%s8724_s18 + $0x80] sm:$0xff]  ;;  %v1609_v54 = vld [vmem:[%s11949_s2 + $0x90] sm:$0xff]  ;;  %v383_v4 = vld [vmem:[%s8724_s18 + $0x88] sm:$0x3] }
  0x2a   : > { %7443 = vmatprep.subr.bf16.mxu0 %v8593_v1  ;;  %v7851_v22 = vpack.i.bf16 %v8840_v9, %v8843_v12  ;;  %v8861_v25 = vsel %vm480_vm1, %v497_v62, %v499_v13  ;;  %v7450_v28 = vpack.c.bf16 %v1606_v19, %v1605_v18  ;;  %v7856_v31 = vpack.i.bf16 %v8775_v40, %v8800_v53  ;;  %v1611_v0 = vld [vmem:[%s11949_s2 + $0xa0] sm:$0xff] }
  0x2b   : > { %12116 = vst [vmem:[#allocation8_spill] sm:$0xff] %v8861_v25  ;;  %v7861_v32 = vpack.i.bf16 %v8752_v21, %v8861_v25  ;;  %v8883_v33 = vsel %vm571_vm0, %v587_v23, %v588_v24  ;;  %v501_v34 = vrot.slane %v8864_v26, 1  ;;  %v502_v36 = vrot.slane %v8867_v27, 1  ;;  %v1615_v23 = vld [vmem:[%s11949_s2 + $0xc0] sm:$0xff] }
  0x2c   : > { %7827 = vrot.lane.b32.xlu0 %v7826_v57, %s8596_s22  ;;  %7832 = vrot.lane.b32.xlu1 %v7831_v59, %s8595_s16  ;;  %v590_v37 = vrot.slane %v377_v3, 2  ;;  %v7453_v38 = vpack.c.bf16 %v1608_v30, %v1607_v29  ;;  %v7866_v40 = vpack.i.bf16 %v8768_v35, %v8883_v33  ;;  %v7871_v21 = vpack.i.bf16 %v8819_v61, %v8864_v26 }
  0x2d   : > { %7445 = vmatpush1.bf16.msra.mxu0 %v7444_v2  ;;  %v8896_v41 = vsel %vm480_vm1, %v501_v34, %v502_v36  ;;  %v504_v43 = vrot.slane %v380_v39, 1  ;;  %v592_v46 = vrot.slane %v8864_v26, 2  ;;  %v593_v48 = vrot.slane %v8867_v27, 2  ;;  %v1612_v2 = vld [vmem:[%s11949_s2 + $0xa8] sm:$0xff] }
  0x2e   : > { %7446 = vmatprep.subr.bf16.mxu0 %v8593_v1  ;;  %12117 = vst [vmem:[#allocation9_spill] sm:$0xff] %v8896_v41  ;;  %v8899_v42 = vsel %vm571_vm0, %v588_v24, %v590_v37  ;;  %v7876_v44 = vpack.i.bf16 %v8789_v47, %v8896_v41  ;;  %v7886_v56 = vpack.i.bf16 %v8843_v12, %v8867_v27  ;;  %v506_v57 = vrot.slane %v8911_v49, 1  ;;  %v1616_v24 = vld [vmem:[%s11949_s2 + $0xc8] sm:$0xff]  ;;  %v1617_v37 = vld [vmem:[%s11949_s2 + $0xd0] sm:$0xff] }
  0x2f   : > { %v7881_v45 = vpack.i.bf16 %v8797_v52, %v8899_v42  ;;  %v8914_v50 = vsel %vm480_vm1, %v502_v36, %v504_v43  ;;  %v8933_v59 = vsel %vm571_vm0, %v592_v46, %v593_v48  ;;  %v507_v62 = vrot.slane %v8917_v51, 1 }
  0x30   : > { %7837 = vrot.lane.b32.xlu0 %v7836_v6, %s8594_s15  ;;  %7842 = vrot.lane.b32.xlu1 %v7841_v7, %s8596_s22  ;;  %12118 = vst [vmem:[#allocation10_spill] sm:$0xff] %v8914_v50  ;;  %v7891_v58 = vpack.i.bf16 %v8800_v53, %v8914_v50  ;;  %12119 = vst [vmem:[#allocation11_spill] sm:$0xff] %v8933_v59  ;;  %v7456_v63 = vpack.c.bf16 %v1610_v55, %v1609_v54  ;;  %v595_v3 = vrot.slane %v380_v39, 2  ;;  %v1613_v6 = vld [vmem:[%s11949_s2 + $0xb0] sm:$0xff]  ;;  %v1614_v7 = vld [vmem:[%s11949_s2 + $0xb8] sm:$0xff] }
  0x31   : > { %7448 = vmatpush1.bf16.msra.mxu0 %v7447_v14  ;;  %v7896_v53 = vpack.i.bf16 %v8837_v8, %v8933_v59  ;;  %v7459_v5 = vpack.c.bf16 %v1612_v2, %v1611_v0  ;;  %v7901_v13 = vpack.i.bf16 %v8883_v33, %v8911_v49  ;;  %v8957_v14 = vsel %vm480_vm1, %v506_v57, %v507_v62  ;;  %v1620_v54 = vld [vmem:[%s11949_s2 + $0xe8] sm:$0xff]  ;;  %v1621_v0 = vld [vmem:[%s11949_s2 + $0xf0] sm:$0xff]  ;;  %v1622_v2 = vld [vmem:[%s11949_s2 + $0xf8] sm:$0xff] }
  0x32   : > { %7449 = vmatprep.subr.bf16.mxu0 %v8593_v1  ;;  %12120 = vst [vmem:[#allocation12_spill] sm:$0xff] %v8957_v14  ;;  %v8960_v18 = vsel %vm571_vm0, %v593_v48, %v595_v3  ;;  %v509_v19 = vrot.slane %v383_v4, 1  ;;  %v597_v29 = vrot.slane %v8911_v49, 2  ;;  %v598_v30 = vrot.slane %v8917_v51, 2 }
  0x33   : > { %12121 = vst [vmem:[#allocation13_spill] sm:$0xff] %v8960_v18  ;;  %v7465_v34 = vpack.c.bf16 %v1616_v24, %v1615_v23  ;;  %v7916_v36 = vpack.i.bf16 %v8899_v42, %v8917_v51 }
  0x34   : > { %7847 = vrot.lane.b32.xlu0 %v7846_v20, %s8595_s16  ;;  %7852 = vrot.lane.b32.xlu1 %v7851_v22, %s8594_s15  ;;  %v7462_v20 = vpack.c.bf16 %v1614_v7, %v1613_v6  ;;  %v7906_v22 = vpack.i.bf16 %v8864_v26, %v8957_v14  ;;  %v8978_v26 = vsel %vm480_vm1, %v507_v62, %v509_v19  ;;  %v9044_v6 = vld [vmem:[%s8724_s18 + $0xb0] sm:$0xff] }
  0x35   : > { %7451 = vmatpush1.bf16.msra.mxu0 %v7450_v28  ;;  %v7911_v28 = vpack.i.bf16 %v8861_v25, %v8960_v18  ;;  %12122 = vst [vmem:[#allocation14_spill] sm:$0xff] %v8978_v26  ;;  %v7921_v39 = vpack.i.bf16 %v8867_v27, %v8978_v26  ;;  %v1619_v27 = vld [vmem:[%s11949_s2 + $0xe0] sm:$0xff]  ;;  %v7474_v7 = vpack.c.bf16 %v1622_v2, %v1621_v0  ;;  %v517_v23 = vrot.slane %v9044_v6, 1 }
  0x36   : > { %7452 = vmatprep.subr.bf16.mxu0 %v8593_v1  ;;  %v7471_v62 = vpack.c.bf16 %v1620_v54, %v1619_v27 }
  0x38   : > { %7857 = vrot.lane.b32.xlu0 %v7856_v31, %s8596_s22  ;;  %7862 = vrot.lane.b32.xlu1 %v7861_v32, %s8595_s16  ;;  %v8981_v31 = vld [vmem:[%s8724_s18 + $0x90] sm:$0xff]  ;;  %v8984_v32 = vld [vmem:[%s8724_s18 + $0x98] sm:$0xff] }
  0x39   : > { %7454 = vmatpush1.bf16.msra.mxu0 %v7453_v38  ;;  %v1618_v38 = vld [vmem:[%s11949_s2 + $0xd8] sm:$0xff]  ;;  %v512_v43 = vrot.slane %v8984_v32, 1  ;;  %v7931_v55 = vpack.i.bf16 %v8933_v59, %v8981_v31 }
  0x3a   : > { %7455 = vmatprep.subr.bf16.mxu0 %v8593_v1  ;;  %v7468_v46 = vpack.c.bf16 %v1618_v38, %v1617_v37 }
  0x3c   : > { %7867 = vrot.lane.b32.xlu0 %v7866_v40, %s8594_s15  ;;  %7872 = vrot.lane.b32.xlu1 %v7871_v21, %s8596_s22  ;;  %v9000_v40 = vsel %vm571_vm0, %v597_v29, %v598_v30  ;;  %v511_v21 = vrot.slane %v8981_v31, 1 }
  0x3d   : > { %7457 = vmatpush1.bf16.msra.mxu0 %v7456_v63  ;;  %12123 = vst [vmem:[#allocation15_spill] sm:$0xff] %v9000_v40  ;;  %v7926_v48 = vpack.i.bf16 %v8896_v41, %v9000_v40 }
  0x3e   : > { %7458 = vmatprep.subr.bf16.mxu0 %v8593_v1 }
  0x40   : > { %7877 = vrot.lane.b32.xlu0 %v7876_v44, %s8595_s16  ;;  %7882 = vrot.lane.b32.xlu1 %v7881_v45, %s8594_s15  ;;  %v600_v44 = vrot.slane %v383_v4, 2  ;;  %v386_v45 = vld [vmem:[%s8724_s18 + $0xa0] sm:$0x3]  ;;  %v602_v4 = vrot.slane %v8981_v31, 2 }
  0x41   : > { %7460 = vmatpush1.bf16.msra.mxu0 %v7459_v5  ;;  %v387_v5 = vld [vmem:[%s8724_s18 + $0xa8] sm:$0xff]  ;;  %v605_v24 = vrot.slane %v386_v45, 2 }
  0x42   : > { %7461 = vmatprep.subr.bf16.mxu0 %v8593_v1  ;;  %v9022_v57 = vsel %vm571_vm0, %v598_v30, %v600_v44  ;;  %v607_v38 = vrot.slane %v387_v5, 2  ;;  %v9081_v44 = vld [vmem:[%s8724_s18 + $0xc8] sm:$0xff] }
  0x43   : > { %12125 = vst [vmem:[#allocation17_spill] sm:$0xff] %v9022_v57  ;;  %v7941_v3 = vpack.i.bf16 %v8914_v50, %v9022_v57 }
  0x44   : > { %7887 = vrot.lane.b32.xlu0 %v7886_v56, %s8596_s22  ;;  %7892 = vrot.lane.b32.xlu1 %v7891_v58, %s8595_s16  ;;  %v9019_v56 = vsel %vm480_vm1, %v511_v21, %v512_v43  ;;  %v514_v58 = vrot.slane %v386_v45, 1  ;;  %v1623_v45 = vld [vmem:[%s11949_s2 + $0x100] sm:$0xff] }
  0x45   : > { %7463 = vmatpush1.bf16.msra.mxu0 %v7462_v20  ;;  %12124 = vst [vmem:[#allocation16_spill] sm:$0xff] %v9019_v56  ;;  %v7936_v63 = vpack.i.bf16 %v8911_v49, %v9019_v56  ;;  %v603_v49 = vrot.slane %v8984_v32, 2 }
  0x46   : > { %7464 = vmatprep.subr.bf16.mxu0 %v8593_v1 }
  0x47   : > { %v9054_v20 = vsel %vm571_vm0, %v602_v4, %v603_v49  ;;  %v9067_v30 = vsel %vm571_vm0, %v603_v49, %v605_v24  ;;  %v394_v24 = vld [vmem:[%s8724_s18 + $0xe0] sm:$0xff] }
  0x48   : > { %7897 = vrot.lane.b32.xlu0 %v7896_v53, %s8594_s15  ;;  %7902 = vrot.lane.b32.xlu1 %v7901_v13, %s8596_s22  ;;  %v9040_v53 = vsel %vm480_vm1, %v512_v43, %v514_v58  ;;  %v7946_v13 = vpack.i.bf16 %v8960_v18, %v8984_v32  ;;  %12127 = vst [vmem:[#allocation19_spill] sm:$0xff] %v9054_v20  ;;  %12129 = vst [vmem:[#allocation21_spill] sm:$0xff] %v9067_v30  ;;  %v390_v43 = vld [vmem:[%s8724_s18 + $0xc0] sm:$0xff]  ;;  %v522_v58 = vrot.slane %v9081_v44, 1 }
  0x49   : > { %7466 = vmatpush1.bf16.msra.mxu0 %v7465_v34  ;;  %12126 = vst [vmem:[#allocation18_spill] sm:$0xff] %v9040_v53  ;;  %v7951_v19 = vpack.i.bf16 %v8917_v51, %v9040_v53  ;;  %v7961_v51 = vpack.i.bf16 %v9000_v40, %v387_v5  ;;  %v7971_v37 = vpack.i.bf16 %v8978_v26, %v9067_v30 }
  0x4a   : > { %7467 = vmatprep.subr.bf16.mxu0 %v8593_v1 }
  0x4c   : > { %7907 = vrot.lane.b32.xlu0 %v7906_v22, %s8595_s16  ;;  %7912 = vrot.lane.b32.xlu1 %v7911_v28, %s8594_s15  ;;  %v516_v22 = vrot.slane %v387_v5, 1  ;;  %v389_v28 = vld [vmem:[%s8724_s18 + $0xb8] sm:$0x3] }
  0x4d   : > { %7469 = vmatpush1.bf16.msra.mxu0 %v7468_v46  ;;  %v519_v34 = vrot.slane %v389_v28, 1  ;;  %v7976_v46 = vpack.i.bf16 %v9022_v57, %v9044_v6  ;;  %v9267_v57 = vld [vmem:[%s8724_s18 + $0x138] sm:$0xff] }
  0x4e   : > { %7470 = vmatprep.subr.bf16.mxu0 %v8593_v1  ;;  %v9064_v29 = vsel %vm480_vm1, %v516_v22, %v517_v23 }
  0x4f   : > { %12128 = vst [vmem:[#allocation20_spill] sm:$0xff] %v9064_v29  ;;  %v9077_v21 = vsel %vm480_vm1, %v517_v23, %v519_v34  ;;  %v393_v23 = vld [vmem:[%s8724_s18 + $0xd8] sm:$0xff]  ;;  %v527_v34 = vrot.slane %v394_v24, 1 }
  0x50   : > { %7917 = vrot.lane.b32.xlu0 %v7916_v36, %s8596_s22  ;;  %7922 = vrot.lane.b32.xlu1 %v7921_v39, %s8595_s16  ;;  %v7966_v36 = vpack.i.bf16 %v8981_v31, %v9064_v29  ;;  %v608_v39 = vrot.slane %v9044_v6, 2  ;;  %12130 = vst [vmem:[#allocation22_spill] sm:$0xff] %v9077_v21  ;;  %v1624_v31 = vld [vmem:[%s11949_s2 + $0x108] sm:$0xff]  ;;  %v7981_v27 = vpack.i.bf16 %v8984_v32, %v9077_v21 }
  0x51   : > { %7472 = vmatpush1.bf16.msra.mxu0 %v7471_v62  ;;  %v610_v62 = vrot.slane %v389_v28, 2  ;;  %v7991_v32 = vpack.i.bf16 %v9054_v20, %v390_v43  ;;  %v8006_v28 = vpack.i.bf16 %v9067_v30, %v9081_v44 }
  0x52   : > { %7473 = vmatprep.subr.bf16.mxu0 %v8593_v1  ;;  %v7956_v1 = vpack.i.bf16 %v8957_v14, %v9054_v20  ;;  %v9098_v54 = vsel %vm571_vm0, %v607_v38, %v608_v39 }
  0x53   : > { %12131 = vst [vmem:[#allocation23_spill] sm:$0xff] %v9098_v54  ;;  %v7986_v0 = vpack.i.bf16 %v9019_v56, %v9098_v54 }
  0x54   : > { %7927 = vrot.lane.b32.xlu0 %v7926_v48, %s8594_s15  ;;  %7932 = vrot.lane.b32.xlu1 %v7931_v55, %s8596_s22  ;;  %v9092_v48 = vpack.c.bf16 %v1624_v31, %v1623_v45  ;;  %v521_v55 = vrot.slane %v390_v43, 1 }
  0x55   : > { %7475 = vmatpush1.bf16.msra.mxu0 %v7474_v7 }
  0x56   : > { %7477 = vmatprep.subr.bf16.mxu0 %v9092_v48  ;;  %v9109_v2 = vsel %vm480_vm1, %v521_v55, %v522_v58  ;;  %v617_v55 = vrot.slane %v393_v23, 2 }
  0x57   : > { %12132 = vst [vmem:[#allocation24_spill] sm:$0xff] %v9109_v2  ;;  %v7996_v49 = vpack.i.bf16 %v387_v5, %v9109_v2 }
  0x58   : > { %7937 = vrot.lane.b32.xlu0 %v7936_v63, %s8595_s16  ;;  %7942 = vrot.lane.b32.xlu1 %v7941_v3, %s8594_s15  ;;  %v392_v63 = vld [vmem:[%s8724_s18 + $0xd0] sm:$0x3]  ;;  %v9112_v3 = vsel %vm571_vm0, %v608_v39, %v610_v62  ;;  %v8021_v39 = vpack.i.bf16 %v9098_v54, %v393_v23 }
  0x59   : > { %12133 = vst [vmem:[#allocation25_spill] sm:$0xff] %v9112_v3  ;;  %v524_v4 = vrot.slane %v392_v63, 1  ;;  %v8001_v7 = vpack.i.bf16 %v9040_v53, %v9112_v3 }
  0x5b   : > { %v9121_v22 = vsel %vm480_vm1, %v522_v58, %v524_v4  ;;  %v618_v58 = vrot.slane %v394_v24, 2 }
  0x5c   : > { %7947 = vrot.lane.b32.xlu0 %v7946_v13, %s8596_s22  ;;  %7952 = vrot.lane.b32.xlu1 %v7951_v19, %s8595_s16  ;;  %v612_v13 = vrot.slane %v390_v43, 2  ;;  %v613_v19 = vrot.slane %v9081_v44, 2  ;;  %12134 = vst [vmem:[#allocation26_spill] sm:$0xff] %v9121_v22  ;;  %v8011_v5 = vpack.i.bf16 %v9044_v6, %v9121_v22 }
  0x5d   : > { %v9164_v4 = vsel %vm571_vm0, %v617_v55, %v618_v58 }
  0x5e   : > { %12139 = vst [vmem:[#allocation31_spill] sm:$0xff] %v9164_v4 }
  0x60   : > { %7957 = vrot.lane.b32.xlu0 %v7956_v1, %s8594_s15  ;;  %7962 = vrot.lane.b32.xlu1 %v7961_v51, %s8596_s22  ;;  %v9132_v1 = vsel %vm571_vm0, %v612_v13, %v613_v19  ;;  %v526_v51 = vrot.slane %v393_v23, 1 }
  0x61   : > { %12135 = vst [vmem:[#allocation27_spill] sm:$0xff] %v9132_v1  ;;  %v8016_v38 = vpack.i.bf16 %v9064_v29, %v9132_v1 }
  0x62   : > { %v9141_v6 = vsel %vm480_vm1, %v526_v51, %v527_v34 }
  0x63   : > { %12136 = vst [vmem:[#allocation28_spill] sm:$0xff] %v9141_v6 }
  0x64   : > { %7967 = vrot.lane.b32.xlu0 %v7966_v36, %s8595_s16  ;;  %7972 = vrot.lane.b32.xlu1 %v7971_v37, %s8594_s15  ;;  %v615_v36 = vrot.slane %v392_v63, 2  ;;  %v395_v37 = vld [vmem:[%s8724_s18 + $0xe8] sm:$0x3]  ;;  %v396_v63 = vld [vmem:[%s8724_s18 + $0xf0] sm:$0xff] }
  0x65   : > { %v529_v31 = vrot.slane %v395_v37, 1  ;;  %v620_v13 = vrot.slane %v395_v37, 2 }
  0x66   : > { %v9144_v45 = vsel %vm571_vm0, %v613_v19, %v615_v36  ;;  %v398_v19 = vld [vmem:[%s8724_s18 + $0x100] sm:$0x3] }
  0x67   : > { %12137 = vst [vmem:[#allocation29_spill] sm:$0xff] %v9144_v45  ;;  %v9152_v62 = vsel %vm480_vm1, %v527_v34, %v529_v31  ;;  %v9177_v51 = vsel %vm571_vm0, %v618_v58, %v620_v13  ;;  %v534_v34 = vrot.slane %v398_v19, 1 }
  0x68   : > { %7977 = vrot.lane.b32.xlu0 %v7976_v46, %s8596_s22  ;;  %7982 = vrot.lane.b32.xlu1 %v7981_v27, %s8595_s16  ;;  %v8026_v46 = vpack.i.bf16 %v390_v43, %v9141_v6  ;;  %v8031_v27 = vpack.i.bf16 %v9077_v21, %v9144_v45  ;;  %12138 = vst [vmem:[#allocation30_spill] sm:$0xff] %v9152_v62  ;;  %12141 = vst [vmem:[#allocation33_spill] sm:$0xff] %v9177_v51 }
  0x69   : > { %v8041_v43 = vpack.i.bf16 %v9081_v44, %v9152_v62  ;;  %v8061_v37 = vpack.i.bf16 %v9121_v22, %v9177_v51 }
  0x6c   : > { %7987 = vrot.lane.b32.xlu0 %v7986_v0, %s8594_s15  ;;  %7992 = vrot.lane.b32.xlu1 %v7991_v32, %s8596_s22  ;;  %v9156_v0 = vld [vmem:[%s8724_s18 + $0xf8] sm:$0xff]  ;;  %v8036_v32 = vpack.i.bf16 %v9112_v3, %v394_v24 }
  0x70   : > { %7997 = vrot.lane.b32.xlu0 %v7996_v49, %s8595_s16  ;;  %8002 = vrot.lane.b32.xlu1 %v8001_v7, %s8594_s15  ;;  %v531_v49 = vrot.slane %v396_v63, 1  ;;  %v532_v7 = vrot.slane %v9156_v0, 1 }
  0x72   : > { %v9174_v44 = vsel %vm480_vm1, %v531_v49, %v532_v7  ;;  %v9186_v31 = vsel %vm480_vm1, %v532_v7, %v534_v34  ;;  %v625_v49 = vrot.slane %v398_v19, 2  ;;  %v401_v7 = vld [vmem:[%s8724_s18 + $0x118] sm:$0x3] }
  0x73   : > { %12140 = vst [vmem:[#allocation32_spill] sm:$0xff] %v9174_v44  ;;  %v8056_v36 = vpack.i.bf16 %v393_v23, %v9174_v44  ;;  %12142 = vst [vmem:[#allocation34_spill] sm:$0xff] %v9186_v31  ;;  %v8066_v23 = vpack.i.bf16 %v9144_v45, %v9156_v0  ;;  %v8071_v55 = vpack.i.bf16 %v394_v24, %v9186_v31  ;;  %v539_v34 = vrot.slane %v401_v7, 1 }
  0x74   : > { %8007 = vrot.lane.b32.xlu0 %v8006_v28, %s8596_s22  ;;  %8012 = vrot.lane.b32.xlu1 %v8011_v5, %s8595_s16  ;;  %v8046_v28 = vpack.i.bf16 %v9109_v2, %v9164_v4  ;;  %v8051_v5 = vpack.i.bf16 %v9132_v1, %v396_v63 }
  0x78   : > { %8017 = vrot.lane.b32.xlu0 %v8016_v38, %s8594_s15  ;;  %8022 = vrot.lane.b32.xlu1 %v8021_v39, %s8596_s22  ;;  %v622_v38 = vrot.slane %v396_v63, 2  ;;  %v623_v39 = vrot.slane %v9156_v0, 2 }
  0x7a   : > { %v9200_v58 = vsel %vm571_vm0, %v622_v38, %v623_v39 }
  0x7b   : > { %12143 = vst [vmem:[#allocation35_spill] sm:$0xff] %v9200_v58  ;;  %v8076_v13 = vpack.i.bf16 %v9141_v6, %v9200_v58 }
  0x7c   : > { %8027 = vrot.lane.b32.xlu0 %v8026_v46, %s8595_s16  ;;  %8032 = vrot.lane.b32.xlu1 %v8031_v27, %s8594_s15  ;;  %v9189_v46 = vld [vmem:[%s8724_s18 + $0x108] sm:$0xff]  ;;  %v9192_v27 = vld [vmem:[%s8724_s18 + $0x110] sm:$0xff] }
  0x7d   : > { %v8081_v24 = vpack.i.bf16 %v9164_v4, %v9189_v46 }
  0x80   : > { %8037 = vrot.lane.b32.xlu0 %v8036_v32, %s8596_s22  ;;  %8042 = vrot.lane.b32.xlu1 %v8041_v43, %s8595_s16  ;;  %v536_v32 = vrot.slane %v9189_v46, 1  ;;  %v537_v43 = vrot.slane %v9192_v27, 1 }
  0x84   : > { %8047 = vrot.lane.b32.xlu0 %v8046_v28, %s8594_s15  ;;  %8052 = vrot.lane.b32.xlu1 %v8051_v5, %s8596_s22  ;;  %v9212_v28 = vsel %vm480_vm1, %v536_v32, %v537_v43  ;;  %v9215_v5 = vsel %vm571_vm0, %v623_v39, %v625_v49  ;;  %v9231_v39 = vsel %vm480_vm1, %v537_v43, %v539_v34  ;;  %v9236_v49 = vld [vmem:[%s8724_s18 + $0x130] sm:$0x3]  ;;  %v630_v34 = vrot.slane %v401_v7, 2 }
  0x85   : > { %12144 = vst [vmem:[#allocation36_spill] sm:$0xff] %v9212_v28  ;;  %v8086_v19 = vpack.i.bf16 %v396_v63, %v9212_v28  ;;  %v8091_v38 = vpack.i.bf16 %v9152_v62, %v9215_v5  ;;  %12145 = vst [vmem:[#allocation37_spill] sm:$0xff] %v9231_v39  ;;  %v544_v45 = vrot.slane %v9236_v49, 1 }
  0x88   : > { %8057 = vrot.lane.b32.xlu0 %v8056_v36, %s8595_s16  ;;  %8062 = vrot.lane.b32.xlu1 %v8061_v37, %s8594_s15  ;;  %v9220_v36 = vld [vmem:[%s8724_s18 + $0x120] sm:$0xff]  ;;  %v9223_v37 = vld [vmem:[%s8724_s18 + $0x128] sm:$0xff] }
  0x89   : > { %v541_v32 = vrot.slane %v9220_v36, 1  ;;  %v542_v63 = vrot.slane %v9223_v37, 1 }
  0x8b   : > { %v9249_v3 = vsel %vm480_vm1, %v541_v32, %v542_v63 }
  0x8c   : > { %8067 = vrot.lane.b32.xlu0 %v8066_v23, %s8596_s22  ;;  %8072 = vrot.lane.b32.xlu1 %v8071_v55, %s8595_s16  ;;  %v627_v23 = vrot.slane %v9189_v46, 2  ;;  %v628_v55 = vrot.slane %v9192_v27, 2  ;;  %12146 = vst [vmem:[#allocation38_spill] sm:$0xff] %v9249_v3 }
  0x8e   : > { %v9245_v4 = vsel %vm571_vm0, %v627_v23, %v628_v55  ;;  %v8116_v23 = vpack.i.bf16 %v9189_v46, %v9249_v3  ;;  %v9260_v32 = vsel %vm571_vm0, %v628_v55, %v630_v34  ;;  %v9275_v55 = vld [vmem:[%s8724_s18 + $0x140] sm:$0xff] }
  0x8f   : > { %v8121_v34 = vpack.i.bf16 %v9186_v31, %v9260_v32 }
  0x90   : > { %8077 = vrot.lane.b32.xlu0 %v8076_v13, %s8594_s15  ;;  %8082 = vrot.lane.b32.xlu1 %v8081_v24, %s8596_s22  ;;  %v8096_v13 = vpack.i.bf16 %v9177_v51, %v9192_v27  ;;  %v8101_v24 = vpack.i.bf16 %v9156_v0, %v9231_v39  ;;  %v8111_v0 = vpack.i.bf16 %v9200_v58, %v9220_v36 }
  0x94   : > { %8087 = vrot.lane.b32.xlu0 %v8086_v19, %s8595_s16  ;;  %8092 = vrot.lane.b32.xlu1 %v8091_v38, %s8594_s15  ;;  %v8106_v38 = vpack.i.bf16 %v9174_v44, %v9245_v4 }
  0x96   : > { %v7808_v43 = vpop.permute.xlu0 %7807  ;;  %v7818_v1 = vpop.permute.xlu1 %7817 }
  0x97   : > { %v7810_v19 = vunpack.i.h.bf16 %v7808_v43  ;;  %v7809_v54 = vunpack.i.l.bf16 %v7808_v43  ;;  %v632_v43 = vrot.slane %v9220_v36, 2  ;;  %v7819_v51 = vunpack.i.l.bf16 %v7818_v1 }
  0x98   : > { %8097 = vrot.lane.b32.xlu0 %v8096_v13, %s8596_s22  ;;  %8102 = vrot.lane.b32.xlu1 %v8101_v24, %s8595_s16  ;;  %v9263_v13 = vsel %vm480_vm1, %v542_v63, %v544_v45  ;;  %v7820_v24 = vunpack.i.h.bf16 %v7818_v1 }
  0x99   : > { %12147 = vst [vmem:[#allocation39_spill] sm:$0xff] %v9263_v13  ;;  %v1483_v46 = vsel %vm1372_vm2, %v8816_v60, %v7809_v54  ;;  %v1373_v45 = vsel %vm1372_vm2, %v8741_v15, %v7810_v19  ;;  %v8126_v15 = vpack.i.bf16 %v9215_v5, %v9223_v37  ;;  %v546_v54 = vrot.slane %v9267_v57, 1 }
  0x9a   : > { %v7813_v7 = vpop.permute.xlu0 %7812  ;;  %v7823_v20 = vpop.permute.xlu1 %7822 }
  0x9b   : > { %v7815_v30 = vunpack.i.h.bf16 %v7813_v7  ;;  %v7814_v58 = vunpack.i.l.bf16 %v7813_v7  ;;  %v7825_v40 = vunpack.i.h.bf16 %v7823_v20  ;;  %v7824_v18 = vunpack.i.l.bf16 %v7823_v20 }
  0x9c   : > { %8107 = vrot.lane.b32.xlu0 %v8106_v38, %s8594_s15  ;;  %8112 = vrot.lane.b32.xlu1 %v8111_v0, %s8596_s22  ;;  %v633_v20 = vrot.slane %v9223_v37, 2 }
  0x9d   : > { %v1519_v1 = vsel %vm1409_vm3, %v1483_v46, %v7814_v58  ;;  %v1410_v63 = vsel %vm1409_vm3, %v1373_v45, %v7815_v30  ;;  %v8131_v30 = vpack.i.bf16 %v9192_v27, %v9263_v13  ;;  %v547_v46 = vrot.slane %v9275_v55, 1 }
  0x9e   : > { %v7828_v38 = vpop.permute.xlu0 %7827  ;;  %v1555_v7 = vsel %vm1446_vm4, %v1519_v1, %v7819_v51  ;;  %v1447_v60 = vsel %vm1446_vm4, %v1410_v63, %v7820_v24  ;;  %v7833_v0 = vpop.permute.xlu1 %7832  ;;  %v1484_v51 = vsel %vm1372_vm2, %v8840_v9, %v7824_v18  ;;  %v1374_v24 = vsel %vm1372_vm2, %v8744_v16, %v7825_v40  ;;  %v9297_v1 = vld [vmem:[%s8724_s18 + $0x148] sm:$0x3] }
  0x9f   : > { %v7830_v19 = vunpack.i.h.bf16 %v7828_v38  ;;  %v7829_v58 = vunpack.i.l.bf16 %v7828_v38  ;;  %1770 = vmatprep.mubr.f32.mxu0 %v1555_v7  ;;  %v7835_v45 = vunpack.i.h.bf16 %v7833_v0  ;;  %v7834_v59 = vunpack.i.l.bf16 %v7833_v0 }
  0xa0   : > { %8117 = vrot.lane.b32.xlu0 %v8116_v23, %s8595_s16  ;;  %1771 = vmatmul.mubr.f32.vlgmr.msra.gmra.mrb[0].mxu0 %v1447_v60  ;;  %v9303_v38 = vsel %vm571_vm0, %v632_v43, %v633_v20  ;;  %v635_v16 = vrot.slane %v9236_v49, 2  ;;  %v8141_v49 = vpack.i.bf16 %v9245_v4, %v9267_v57 }
  0xa1   : > { %8122 = vrot.lane.b32.xlu1 %v8121_v34, %s8594_s15  ;;  %v1520_v63 = vsel %vm1409_vm3, %v1484_v51, %v7829_v58  ;;  %v1411_v27 = vsel %vm1409_vm3, %v1374_v24, %v7830_v19  ;;  %7479 = vmatpush3.bf16.msra.mxu0 %v9092_v48  ;;  %v549_v34 = vrot.slane %v9297_v1, 1  ;;  %v8136_v48 = vpack.i.bf16 %v9212_v28, %v9303_v38 }
  0xa2   : > { %v7838_v23 = vpop.permute.xlu0 %7837  ;;  %v1556_v7 = vsel %vm1446_vm4, %v1520_v63, %v7834_v59  ;;  %v1448_v9 = vsel %vm1446_vm4, %v1411_v27, %v7835_v45  ;;  %v7843_v60 = vpop.permute.xlu1 %7842  ;;  %v9314_v59 = vsel %vm480_vm1, %v546_v54, %v547_v46  ;;  %v9324_v45 = vsel %vm571_vm0, %v633_v20, %v635_v16  ;;  %v9339_v16 = vld [vmem:[%s8724_s18 + $0x158] sm:$0xff] }
  0xa3   : > { %v7840_v18 = vunpack.i.h.bf16 %v7838_v23  ;;  %v7839_v40 = vunpack.i.l.bf16 %v7838_v23  ;;  %1775 = vmatprep.mubr.f32.mxu0 %v1556_v7  ;;  %v7845_v58 = vunpack.i.h.bf16 %v7843_v60  ;;  %v7844_v19 = vunpack.i.l.bf16 %v7843_v60  ;;  %12148 = vst [vmem:[#allocation40_spill] sm:$0xff] %v9314_v59  ;;  %v9333_v23 = vld [vmem:[%s8724_s18 + $0x150] sm:$0xff] }
  0xa4   : > { %8127 = vrot.lane.b32.xlu0 %v8126_v15, %s8596_s22  ;;  %1776 = vmatmul.mubr.f32.gmra.mrb[2].mxu0 %v1448_v9  ;;  %v637_v51 = vrot.slane %v9267_v57, 2  ;;  %v9330_v27 = vsel %vm480_vm1, %v547_v46, %v549_v34  ;;  %v8151_v46 = vpack.i.bf16 %v9231_v39, %v9324_v45  ;;  %v8156_v34 = vpack.i.bf16 %v9260_v32, %v9275_v55 }
  0xa5   : > { %8132 = vrot.lane.b32.xlu1 %v8131_v30, %s8595_s16  ;;  %v1485_v43 = vsel %vm1372_vm2, %v8768_v35, %v7839_v40  ;;  %v1375_v15 = vsel %vm1372_vm2, %v8730_v10, %v7840_v18  ;;  %v8146_v30 = vpack.i.bf16 %v9220_v36, %v9314_v59  ;;  %12149 = vst [vmem:[#allocation41_spill] sm:$0xff] %v9330_v27  ;;  %v638_v40 = vrot.slane %v9275_v55, 2 }
  0xa6   : > { %v7848_v0 = vpop.permute.xlu0 %7847  ;;  %v7853_v63 = vpop.permute.xlu1 %7852  ;;  %v1521_v10 = vsel %vm1409_vm3, %v1485_v43, %v7844_v19  ;;  %v1412_v20 = vsel %vm1409_vm3, %v1375_v15, %v7845_v58  ;;  %v551_v58 = vrot.slane %v9333_v23, 1  ;;  %v552_v15 = vrot.slane %v9339_v16, 1 }
  0xa7   : > { %v7850_v54 = vunpack.i.h.bf16 %v7848_v0  ;;  %v7849_v24 = vunpack.i.l.bf16 %v7848_v0  ;;  %v7855_v7 = vunpack.i.h.bf16 %v7853_v63  ;;  %v7854_v9 = vunpack.i.l.bf16 %v7853_v63 }
  0xa8   : > { %8137 = vrot.lane.b32.xlu0 %v8136_v48, %s8594_s15 }
  0xa9   : > { %8142 = vrot.lane.b32.xlu1 %v8141_v49, %s8596_s22  ;;  %v1557_v18 = vsel %vm1446_vm4, %v1521_v10, %v7849_v24  ;;  %v1449_v36 = vsel %vm1446_vm4, %v1412_v20, %v7850_v54  ;;  %v8161_v49 = vpack.i.bf16 %v9223_v37, %v9330_v27  ;;  %v1486_v24 = vsel %vm1372_vm2, %v8797_v52, %v7854_v9  ;;  %v1625_v10 = vld [vmem:[%s11949_s2 + $0x110] sm:$0xff]  ;;  %v1626_v37 = vld [vmem:[%s11949_s2 + $0x118] sm:$0xff] }
  0xaa   : > { %v7858_v60 = vpop.permute.xlu0 %7857  ;;  %1780 = vmatprep.mubr.f32.mxu0 %v1557_v18  ;;  %v7863_v43 = vpop.permute.xlu1 %7862  ;;  %v1376_v63 = vsel %vm1372_vm2, %v8733_v11, %v7855_v7  ;;  %v9368_v9 = vsel %vm571_vm0, %v637_v51, %v638_v40  ;;  %v7480_v18 = vpack.c.bf16 %v1626_v37, %v1625_v10 }
  0xab   : > { %v7860_v19 = vunpack.i.h.bf16 %v7858_v60  ;;  %v7859_v48 = vunpack.i.l.bf16 %v7858_v60  ;;  %1781 = vmatmul.mubr.f32.gmra.mrb[4].mxu0 %v1449_v36  ;;  %v7865_v0 = vunpack.i.h.bf16 %v7863_v43  ;;  %v7864_v54 = vunpack.i.l.bf16 %v7863_v43 }
  0xac   : > { %8147 = vrot.lane.b32.xlu0 %v8146_v30, %s8595_s16  ;;  %v640_v60 = vrot.slane %v9297_v1, 2  ;;  %7481 = vmatprep.subr.bf16.mxu0 %v7480_v18  ;;  %v8166_v51 = vpack.i.bf16 %v9249_v3, %v9368_v9  ;;  %v8171_v1 = vpack.i.bf16 %v9303_v38, %v9333_v23 }
  0xad   : > { %8152 = vrot.lane.b32.xlu1 %v8151_v46, %s8594_s15  ;;  %v1522_v20 = vsel %vm1409_vm3, %v1486_v24, %v7859_v48  ;;  %v1413_v30 = vsel %vm1409_vm3, %v1376_v63, %v7860_v19  ;;  %v9374_v46 = vld [vmem:[%s8724_s18 + $0x160] sm:$0x3]  ;;  %7483 = vmatpush3.bf16.msra.mxu0 %v7480_v18 }
  0xae   : > { %v7868_v11 = vpop.permute.xlu0 %7867  ;;  %v1558_v7 = vsel %vm1446_vm4, %v1522_v20, %v7864_v54  ;;  %v1450_v36 = vsel %vm1446_vm4, %v1413_v30, %v7865_v0  ;;  %v7873_v52 = vpop.permute.xlu1 %7872  ;;  %v9380_v54 = vsel %vm480_vm1, %v551_v58, %v552_v15  ;;  %v9390_v24 = vsel %vm571_vm0, %v638_v40, %v640_v60  ;;  %v9400_v40 = vld [vmem:[%s8724_s18 + $0x168] sm:$0xff] }
  0xaf   : > { %v7870_v43 = vunpack.i.h.bf16 %v7868_v11  ;;  %v7869_v35 = vunpack.i.l.bf16 %v7868_v11  ;;  %1785 = vmatprep.mubr.f32.mxu0 %v1558_v7  ;;  %v7875_v48 = vunpack.i.h.bf16 %v7873_v52  ;;  %v7874_v19 = vunpack.i.l.bf16 %v7873_v52  ;;  %12150 = vst [vmem:[#allocation42_spill] sm:$0xff] %v9380_v54  ;;  %v9403_v11 = vld [vmem:[%s8724_s18 + $0x170] sm:$0xff] }
  0xb0   : > { %8157 = vrot.lane.b32.xlu0 %v8156_v34, %s8596_s22  ;;  %1786 = vmatmul.mubr.f32.gmra.mrb[6].mxu0 %v1450_v36  ;;  %v554_v58 = vrot.slane %v9374_v46, 1  ;;  %v8176_v37 = vpack.i.bf16 %v9267_v57, %v9380_v54  ;;  %v8181_v36 = vpack.i.bf16 %v9263_v13, %v9390_v24  ;;  %v643_v60 = vrot.slane %v9339_v16, 2 }
  0xb1   : > { %8162 = vrot.lane.b32.xlu1 %v8161_v49, %s8595_s16  ;;  %v1487_v0 = vsel %vm1372_vm2, %v8837_v8, %v7869_v35  ;;  %v1377_v52 = vsel %vm1372_vm2, %v8747_v17, %v7870_v43  ;;  %v642_v35 = vrot.slane %v9333_v23, 2 }
  0xb2   : > { %v7878_v34 = vpop.permute.xlu0 %7877  ;;  %v7883_v10 = vpop.permute.xlu1 %7882  ;;  %v1523_v17 = vsel %vm1409_vm3, %v1487_v0, %v7874_v19  ;;  %v1414_v18 = vsel %vm1409_vm3, %v1377_v52, %v7875_v48  ;;  %v8186_v48 = vpack.i.bf16 %v9324_v45, %v9339_v16  ;;  %v9414_v19 = vsel %vm480_vm1, %v552_v15, %v554_v58 }
  0xb3   : > { %v7880_v63 = vunpack.i.h.bf16 %v7878_v34  ;;  %v7879_v49 = vunpack.i.l.bf16 %v7878_v34  ;;  %v7885_v20 = vunpack.i.h.bf16 %v7883_v10  ;;  %v7884_v30 = vunpack.i.l.bf16 %v7883_v10  ;;  %12151 = vst [vmem:[#allocation43_spill] sm:$0xff] %v9414_v19 }
  0xb4   : > { %8167 = vrot.lane.b32.xlu0 %v8166_v51, %s8594_s15  ;;  %v556_v52 = vrot.slane %v9400_v40, 1  ;;  %v557_v34 = vrot.slane %v9403_v11, 1 }
  0xb5   : > { %8172 = vrot.lane.b32.xlu1 %v8171_v1, %s8596_s22  ;;  %v1559_v7 = vsel %vm1446_vm4, %v1523_v17, %v7879_v49  ;;  %v1451_v57 = vsel %vm1446_vm4, %v1414_v18, %v7880_v63  ;;  %v1488_v10 = vsel %vm1372_vm2, %v8861_v25, %v7884_v30  ;;  %v8479_v17 = vld [vmem:[%s8724_s18 + $0x38] sm:$0xff]  ;;  %v8482_v25 = vld [vmem:[%s8724_s18 + $0x68] sm:$0xff] }
  0xb6   : > { %v7888_v43 = vpop.permute.xlu0 %7887  ;;  %1790 = vmatprep.mubr.f32.mxu0 %v1559_v7  ;;  %v7893_v0 = vpop.permute.xlu1 %7892  ;;  %v1378_v15 = vsel %vm1372_vm2, %v8479_v17, %v7885_v20  ;;  %v8191_v7 = vpack.i.bf16 %v9275_v55, %v9414_v19 }
  0xb7   : > { %v7890_v51 = vunpack.i.h.bf16 %v7888_v43  ;;  %v7889_v1 = vunpack.i.l.bf16 %v7888_v43  ;;  %1791 = vmatmul.mubr.f32.gmra.mrb[8].mxu0 %v1451_v57  ;;  %v7895_v63 = vunpack.i.h.bf16 %v7893_v0  ;;  %v7894_v49 = vunpack.i.l.bf16 %v7893_v0 }
  0xb8   : > { %8177 = vrot.lane.b32.xlu0 %v8176_v37, %s8595_s16  ;;  %v9429_v57 = vsel %vm571_vm0, %v642_v35, %v643_v60  ;;  %v645_v0 = vrot.slane %v9374_v46, 2  ;;  %v9441_v35 = vsel %vm480_vm1, %v556_v52, %v557_v34  ;;  %v8201_v46 = vpack.i.bf16 %v9368_v9, %v9400_v40 }
  0xb9   : > { %8182 = vrot.lane.b32.xlu1 %v8181_v36, %s8594_s15  ;;  %v1524_v58 = vsel %vm1409_vm3, %v1488_v10, %v7889_v1  ;;  %v1415_v18 = vsel %vm1409_vm3, %v1378_v15, %v7890_v51  ;;  %v9435_v1 = vld [vmem:[%s8724_s18 + $0x178] sm:$0x3]  ;;  %v8196_v55 = vpack.i.bf16 %v9314_v59, %v9429_v57  ;;  %12152 = vst [vmem:[#allocation44_spill] sm:$0xff] %v9441_v35 }
  0xba   : > { %v7898_v37 = vpop.permute.xlu0 %7897  ;;  %v1560_v43 = vsel %vm1446_vm4, %v1524_v58, %v7894_v49  ;;  %v1452_v30 = vsel %vm1446_vm4, %v1415_v18, %v7895_v63  ;;  %v7903_v36 = vpop.permute.xlu1 %7902  ;;  %v9451_v15 = vsel %vm571_vm0, %v643_v60, %v645_v0  ;;  %v559_v52 = vrot.slane %v9435_v1, 1  ;;  %v9461_v60 = vld [vmem:[%s8724_s18 + $0x180] sm:$0xff]  ;;  %v9464_v0 = vld [vmem:[%s8724_s18 + $0x188] sm:$0xff] }
  0xbb   : > { %v7900_v20 = vunpack.i.h.bf16 %v7898_v37  ;;  %v7899_v17 = vunpack.i.l.bf16 %v7898_v37  ;;  %1795 = vmatprep.mubr.f32.mxu0 %v1560_v43  ;;  %v7905_v51 = vunpack.i.h.bf16 %v7903_v36  ;;  %v7904_v10 = vunpack.i.l.bf16 %v7903_v36  ;;  %12153 = vst [vmem:[#allocation45_spill] sm:$0xff] %v9451_v15 }
  0xbc   : > { %8187 = vrot.lane.b32.xlu0 %v8186_v48, %s8596_s22  ;;  %1796 = vmatmul.mubr.f32.gmra.mrb[10].mxu0 %v1452_v30  ;;  %v8206_v37 = vpack.i.bf16 %v9333_v23, %v9441_v35  ;;  %v647_v43 = vrot.slane %v9400_v40, 2 }
  0xbd   : > { %8192 = vrot.lane.b32.xlu1 %v8191_v7, %s8595_s16  ;;  %v1489_v63 = vsel %vm1372_vm2, %v8896_v41, %v7899_v17  ;;  %v1379_v48 = vsel %vm1372_vm2, %v8789_v47, %v7900_v20  ;;  %v8480_v41 = vld [vmem:[%s8724_s18 + $0x50] sm:$0xff] }
  0xbe   : > { %v7908_v49 = vpop.permute.xlu0 %7907  ;;  %v7913_v7 = vpop.permute.xlu1 %7912  ;;  %v1525_v47 = vsel %vm1409_vm3, %v1489_v63, %v7904_v10  ;;  %v1416_v20 = vsel %vm1409_vm3, %v1379_v48, %v7905_v51  ;;  %v8216_v51 = vpack.i.bf16 %v9390_v24, %v9403_v11  ;;  %v9475_v10 = vsel %vm480_vm1, %v557_v34, %v559_v52 }
  0xbf   : > { %v7910_v58 = vunpack.i.h.bf16 %v7908_v49  ;;  %v7909_v18 = vunpack.i.l.bf16 %v7908_v49  ;;  %v7915_v30 = vunpack.i.h.bf16 %v7913_v7  ;;  %v7914_v17 = vunpack.i.l.bf16 %v7913_v7  ;;  %12154 = vst [vmem:[#allocation46_spill] sm:$0xff] %v9475_v10 }
  0xc0   : > { %8197 = vrot.lane.b32.xlu0 %v8196_v55, %s8594_s15  ;;  %v8211_v49 = vpack.i.bf16 %v9330_v27, %v9451_v15  ;;  %v648_v55 = vrot.slane %v9403_v11, 2 }
  0xc1   : > { %8202 = vrot.lane.b32.xlu1 %v8201_v46, %s8596_s22  ;;  %v1561_v36 = vsel %vm1446_vm4, %v1525_v47, %v7909_v18  ;;  %v1453_v23 = vsel %vm1446_vm4, %v1416_v20, %v7910_v58  ;;  %v561_v58 = vrot.slane %v9461_v60, 1  ;;  %v562_v18 = vrot.slane %v9464_v0, 1 }
  0xc2   : > { %v7918_v7 = vpop.permute.xlu0 %7917  ;;  %1800 = vmatprep.mubr.f32.mxu0 %v1561_v36  ;;  %v7923_v48 = vpop.permute.xlu1 %7922  ;;  %v1490_v36 = vsel %vm1372_vm2, %v8914_v50, %v7914_v17  ;;  %v1380_v34 = vsel %vm1372_vm2, %v8480_v41, %v7915_v30  ;;  %v650_v41 = vrot.slane %v9435_v1, 2  ;;  %v8231_v1 = vpack.i.bf16 %v9429_v57, %v9461_v60 }
  0xc3   : > { %v7920_v63 = vunpack.i.h.bf16 %v7918_v7  ;;  %v7919_v46 = vunpack.i.l.bf16 %v7918_v7  ;;  %1801 = vmatmul.mubr.f32.gmra.mrb[12].mxu0 %v1453_v23  ;;  %v7925_v47 = vunpack.i.h.bf16 %v7923_v48  ;;  %v7924_v20 = vunpack.i.l.bf16 %v7923_v48 }
  0xc4   : > { %8207 = vrot.lane.b32.xlu0 %v8206_v37, %s8595_s16  ;;  %v8221_v7 = vpack.i.bf16 %v9339_v16, %v9475_v10  ;;  %v9490_v48 = vsel %vm571_vm0, %v647_v43, %v648_v55  ;;  %v9502_v43 = vsel %vm480_vm1, %v561_v58, %v562_v18 }
  0xc5   : > { %8212 = vrot.lane.b32.xlu1 %v8211_v49, %s8594_s15  ;;  %v1526_v52 = vsel %vm1409_vm3, %v1490_v36, %v7919_v46  ;;  %v1417_v23 = vsel %vm1409_vm3, %v1380_v34, %v7920_v63  ;;  %12155 = vst [vmem:[#allocation47_spill] sm:$0xff] %v9490_v48  ;;  %v9496_v46 = vld [vmem:[%s8724_s18 + $0x190] sm:$0x3]  ;;  %v8226_v16 = vpack.i.bf16 %v9380_v54, %v9490_v48  ;;  %12156 = vst [vmem:[#allocation48_spill] sm:$0xff] %v9502_v43 }
  0xc6   : > { %v7928_v37 = vpop.permute.xlu0 %7927  ;;  %v1562_v8 = vsel %vm1446_vm4, %v1526_v52, %v7924_v20  ;;  %v1454_v17 = vsel %vm1446_vm4, %v1417_v23, %v7925_v47  ;;  %v7933_v50 = vpop.permute.xlu1 %7932  ;;  %v8481_v47 = vld [vmem:[%s8724_s18 + $0x60] sm:$0xff]  ;;  %v9512_v20 = vsel %vm571_vm0, %v648_v55, %v650_v41  ;;  %v564_v58 = vrot.slane %v9496_v46, 1  ;;  %v9522_v55 = vld [vmem:[%s8724_s18 + $0x198] sm:$0xff] }
  0xc7   : > { %v7930_v30 = vunpack.i.h.bf16 %v7928_v37  ;;  %v7929_v49 = vunpack.i.l.bf16 %v7928_v37  ;;  %1805 = vmatprep.mubr.f32.mxu0 %v1562_v8  ;;  %v7935_v63 = vunpack.i.h.bf16 %v7933_v50  ;;  %v7934_v36 = vunpack.i.l.bf16 %v7933_v50  ;;  %12157 = vst [vmem:[#allocation49_spill] sm:$0xff] %v9512_v20  ;;  %v9525_v41 = vld [vmem:[%s8724_s18 + $0x1a0] sm:$0xff] }
  0xc8   : > { %8217 = vrot.lane.b32.xlu0 %v8216_v51, %s8596_s22  ;;  %1806 = vmatmul.mubr.f32.gmra.mrb[14].mxu0 %v1454_v17  ;;  %v652_v37 = vrot.slane %v9461_v60, 2 }
  0xc9   : > { %8222 = vrot.lane.b32.xlu1 %v8221_v7, %s8595_s16  ;;  %v1491_v8 = vsel %vm1372_vm2, %v8957_v14, %v7929_v49  ;;  %v1381_v50 = vsel %vm1372_vm2, %v8481_v47, %v7930_v30  ;;  %v8236_v7 = vpack.i.bf16 %v9400_v40, %v9502_v43  ;;  %v8241_v14 = vpack.i.bf16 %v9414_v19, %v9512_v20 }
  0xca   : > { %v7938_v51 = vpop.permute.xlu0 %7937  ;;  %v7943_v23 = vpop.permute.xlu1 %7942  ;;  %v1527_v30 = vsel %vm1409_vm3, %v1491_v8, %v7934_v36  ;;  %v1418_v47 = vsel %vm1409_vm3, %v1381_v50, %v7935_v63  ;;  %v8246_v63 = vpack.i.bf16 %v9451_v15, %v9464_v0  ;;  %v9536_v36 = vsel %vm480_vm1, %v562_v18, %v564_v58 }
  0xcb   : > { %v7940_v34 = vunpack.i.h.bf16 %v7938_v51  ;;  %v7939_v52 = vunpack.i.l.bf16 %v7938_v51  ;;  %v7945_v17 = vunpack.i.h.bf16 %v7943_v23  ;;  %v7944_v49 = vunpack.i.l.bf16 %v7943_v23  ;;  %12158 = vst [vmem:[#allocation50_spill] sm:$0xff] %v9536_v36 }
  0xcc   : > { %8227 = vrot.lane.b32.xlu0 %v8226_v16, %s8594_s15  ;;  %v653_v16 = vrot.slane %v9464_v0, 2 }
  0xcd   : > { %8232 = vrot.lane.b32.xlu1 %v8231_v1, %s8596_s22  ;;  %v1563_v51 = vsel %vm1446_vm4, %v1527_v30, %v7939_v52  ;;  %v1455_v40 = vsel %vm1446_vm4, %v1418_v47, %v7940_v34  ;;  %v566_v34 = vrot.slane %v9522_v55, 1  ;;  %v567_v52 = vrot.slane %v9525_v41, 1 }
  0xce   : > { %v7948_v23 = vpop.permute.xlu0 %7947  ;;  %1810 = vmatprep.mubr.f32.mxu0 %v1563_v51  ;;  %v7953_v50 = vpop.permute.xlu1 %7952  ;;  %v1492_v51 = vsel %vm1372_vm2, %v8978_v26, %v7944_v49  ;;  %v1382_v18 = vsel %vm1372_vm2, %v8482_v25, %v7945_v17  ;;  %v655_v25 = vrot.slane %v9496_v46, 2  ;;  %v8261_v46 = vpack.i.bf16 %v9490_v48, %v9522_v55 }
  0xcf   : > { %v7950_v8 = vunpack.i.h.bf16 %v7948_v23  ;;  %v7949_v1 = vunpack.i.l.bf16 %v7948_v23  ;;  %1811 = vmatmul.mubr.f32.gmra.mrb[16].mxu0 %v1455_v40  ;;  %v7955_v30 = vunpack.i.h.bf16 %v7953_v50  ;;  %v7954_v47 = vunpack.i.l.bf16 %v7953_v50 }
  0xd0   : > { %8237 = vrot.lane.b32.xlu0 %v8236_v7, %s8595_s16  ;;  %v8251_v23 = vpack.i.bf16 %v9403_v11, %v9536_v36  ;;  %v9551_v50 = vsel %vm571_vm0, %v652_v37, %v653_v16  ;;  %v9563_v37 = vsel %vm480_vm1, %v566_v34, %v567_v52 }
  0xd1   : > { %8242 = vrot.lane.b32.xlu1 %v8241_v14, %s8594_s15  ;;  %v1528_v58 = vsel %vm1409_vm3, %v1492_v51, %v7949_v1  ;;  %v1419_v40 = vsel %vm1409_vm3, %v1382_v18, %v7950_v8  ;;  %12159 = vst [vmem:[#allocation51_spill] sm:$0xff] %v9551_v50  ;;  %v9557_v1 = vld [vmem:[%s8724_s18 + $0x1a8] sm:$0x3]  ;;  %v8256_v11 = vpack.i.bf16 %v9441_v35, %v9551_v50  ;;  %12160 = vst [vmem:[#allocation52_spill] sm:$0xff] %v9563_v37 }
  0xd2   : > { %v7958_v7 = vpop.permute.xlu0 %7957  ;;  %v1564_v15 = vsel %vm1446_vm4, %v1528_v58, %v7954_v47  ;;  %v1456_v49 = vsel %vm1446_vm4, %v1419_v40, %v7955_v30  ;;  %v7963_v26 = vpop.permute.xlu1 %7962  ;;  %v8483_v30 = vld [vmem:[%s8724_s18 + $0x78] sm:$0xff]  ;;  %v9573_v47 = vsel %vm571_vm0, %v653_v16, %v655_v25  ;;  %v569_v34 = vrot.slane %v9557_v1, 1  ;;  %v9583_v16 = vld [vmem:[%s8724_s18 + $0x1b0] sm:$0xff] }
  0xd3   : > { %v7960_v17 = vunpack.i.h.bf16 %v7958_v7  ;;  %v7959_v14 = vunpack.i.l.bf16 %v7958_v7  ;;  %1815 = vmatprep.mubr.f32.mxu0 %v1564_v15  ;;  %v7965_v8 = vunpack.i.h.bf16 %v7963_v26  ;;  %v7964_v51 = vunpack.i.l.bf16 %v7963_v26  ;;  %12161 = vst [vmem:[#allocation53_spill] sm:$0xff] %v9573_v47  ;;  %v9586_v25 = vld [vmem:[%s8724_s18 + $0x1b8] sm:$0xff] }
  0xd4   : > { %8247 = vrot.lane.b32.xlu0 %v8246_v63, %s8596_s22  ;;  %1816 = vmatmul.mubr.f32.gmra.mrb[18].mxu0 %v1456_v49  ;;  %v657_v7 = vrot.slane %v9522_v55, 2 }
  0xd5   : > { %8252 = vrot.lane.b32.xlu1 %v8251_v23, %s8595_s16  ;;  %v1493_v15 = vsel %vm1372_vm2, %v9019_v56, %v7959_v14  ;;  %v1383_v26 = vsel %vm1372_vm2, %v8483_v30, %v7960_v17  ;;  %v8266_v23 = vpack.i.bf16 %v9461_v60, %v9563_v37  ;;  %v8271_v56 = vpack.i.bf16 %v9475_v10, %v9573_v47 }
  0xd6   : > { %v7968_v63 = vpop.permute.xlu0 %7967  ;;  %v7973_v40 = vpop.permute.xlu1 %7972  ;;  %v1529_v17 = vsel %vm1409_vm3, %v1493_v15, %v7964_v51  ;;  %v1420_v30 = vsel %vm1409_vm3, %v1383_v26, %v7965_v8  ;;  %v8276_v8 = vpack.i.bf16 %v9512_v20, %v9525_v41  ;;  %v9597_v51 = vsel %vm480_vm1, %v567_v52, %v569_v34  ;;  %v8484_v20 = vld [vmem:[%s8724_s18 + $0x80] sm:$0xff] }
  0xd7   : > { %v7970_v18 = vunpack.i.h.bf16 %v7968_v63  ;;  %v7969_v58 = vunpack.i.l.bf16 %v7968_v63  ;;  %v7975_v49 = vunpack.i.h.bf16 %v7973_v40  ;;  %v7974_v14 = vunpack.i.l.bf16 %v7973_v40  ;;  %12162 = vst [vmem:[#allocation54_spill] sm:$0xff] %v9597_v51 }
  0xd8   : > { %8257 = vrot.lane.b32.xlu0 %v8256_v11, %s8594_s15  ;;  %v658_v11 = vrot.slane %v9525_v41, 2 }
  0xd9   : > { %8262 = vrot.lane.b32.xlu1 %v8261_v46, %s8596_s22  ;;  %v1565_v63 = vsel %vm1446_vm4, %v1529_v17, %v7969_v58  ;;  %v1457_v60 = vsel %vm1446_vm4, %v1420_v30, %v7970_v18  ;;  %v665_v18 = vrot.slane %v9583_v16, 1  ;;  %v666_v58 = vrot.slane %v9586_v25, 1 }
  0xda   : > { %v7978_v40 = vpop.permute.xlu0 %7977  ;;  %1820 = vmatprep.mubr.f32.mxu0 %v1565_v63  ;;  %v7983_v26 = vpop.permute.xlu1 %7982  ;;  %v1494_v63 = vsel %vm1372_vm2, %v9040_v53, %v7974_v14  ;;  %v1384_v52 = vsel %vm1372_vm2, %v8484_v20, %v7975_v49  ;;  %v660_v20 = vrot.slane %v9557_v1, 2  ;;  %v8291_v1 = vpack.i.bf16 %v9551_v50, %v9583_v16  ;;  %v8486_v50 = vld [vmem:[%s8724_s18 + $0x98] sm:$0xff] }
  0xdb   : > { %v7980_v15 = vunpack.i.h.bf16 %v7978_v40  ;;  %v7979_v46 = vunpack.i.l.bf16 %v7978_v40  ;;  %1821 = vmatmul.mubr.f32.gmra.mrb[20].mxu0 %v1457_v60  ;;  %v7985_v17 = vunpack.i.h.bf16 %v7983_v26  ;;  %v7984_v30 = vunpack.i.l.bf16 %v7983_v26 }
  0xdc   : > { %8267 = vrot.lane.b32.xlu0 %v8266_v23, %s8595_s16  ;;  %v8281_v40 = vpack.i.bf16 %v9464_v0, %v9597_v51  ;;  %v9612_v26 = vsel %vm571_vm0, %v657_v7, %v658_v11  ;;  %v9624_v7 = vsel %vm480_vm1, %v665_v18, %v666_v58 }
  0xdd   : > { %8272 = vrot.lane.b32.xlu1 %v8271_v56, %s8594_s15  ;;  %v1530_v34 = vsel %vm1409_vm3, %v1494_v63, %v7979_v46  ;;  %v1421_v60 = vsel %vm1409_vm3, %v1384_v52, %v7980_v15  ;;  %v9618_v46 = vld [vmem:[%s8724_s18 + $0x1c0] sm:$0x3]  ;;  %v8286_v0 = vpack.i.bf16 %v9502_v43, %v9612_v26 }
  0xde   : > { %v7988_v23 = vpop.permute.xlu0 %7987  ;;  %v1566_v48 = vsel %vm1446_vm4, %v1530_v34, %v7984_v30  ;;  %v1458_v14 = vsel %vm1446_vm4, %v1421_v60, %v7985_v17  ;;  %v7993_v53 = vpop.permute.xlu1 %7992  ;;  %v8485_v17 = vld [vmem:[%s8724_s18 + $0x90] sm:$0xff]  ;;  %v9634_v30 = vsel %vm571_vm0, %v658_v11, %v660_v20  ;;  %v668_v18 = vrot.slane %v9618_v46, 1  ;;  %v423_v11 = vld [vmem:[%s8724_s18 + $0x1c8] sm:$0xff] }
  0xdf   : > { %v7990_v49 = vunpack.i.h.bf16 %v7988_v23  ;;  %v7989_v56 = vunpack.i.l.bf16 %v7988_v23  ;;  %1825 = vmatprep.mubr.f32.mxu0 %v1566_v48  ;;  %v7995_v15 = vunpack.i.h.bf16 %v7993_v53  ;;  %v7994_v63 = vunpack.i.l.bf16 %v7993_v53  ;;  %v9645_v20 = vld [vmem:[%s8724_s18 + $0x1d0] sm:$0xff] }
  0xe0   : > { %8277 = vrot.lane.b32.xlu0 %v8276_v8, %s8596_s22  ;;  %1826 = vmatmul.mubr.f32.gmra.mrb[22].mxu0 %v1458_v14  ;;  %v8296_v23 = vpack.i.bf16 %v9522_v55, %v9624_v7  ;;  %v8301_v55 = vpack.i.bf16 %v9536_v36, %v9634_v30 }
  0xe1   : > { %8282 = vrot.lane.b32.xlu1 %v8281_v40, %s8595_s16  ;;  %v1495_v48 = vsel %vm1372_vm2, %v9064_v29, %v7989_v56  ;;  %v1385_v53 = vsel %vm1372_vm2, %v8485_v17, %v7990_v49  ;;  %v706_v40 = vrot.slane %v9583_v16, 2 }
  0xe2   : > { %v7998_v8 = vpop.permute.xlu0 %7997  ;;  %v8003_v60 = vpop.permute.xlu1 %8002  ;;  %v1531_v49 = vsel %vm1409_vm3, %v1495_v48, %v7994_v63  ;;  %v1422_v17 = vsel %vm1409_vm3, %v1385_v53, %v7995_v15  ;;  %v8306_v15 = vpack.i.bf16 %v9573_v47, %v9586_v25  ;;  %v9656_v63 = vsel %vm480_vm1, %v666_v58, %v668_v18 }
  0xe3   : > { %v8000_v52 = vunpack.i.h.bf16 %v7998_v8  ;;  %v7999_v34 = vunpack.i.l.bf16 %v7998_v8  ;;  %v8005_v14 = vunpack.i.h.bf16 %v8003_v60  ;;  %v8004_v56 = vunpack.i.l.bf16 %v8003_v60 }
  0xe4   : > { %8287 = vrot.lane.b32.xlu0 %v8286_v0, %s8594_s15  ;;  %v707_v60 = vrot.slane %v9586_v25, 2  ;;  %v8311_v18 = vpack.i.bf16 %v9525_v41, %v9656_v63 }
  0xe5   : > { %8292 = vrot.lane.b32.xlu1 %v8291_v1, %s8596_s22  ;;  %v1567_v8 = vsel %vm1446_vm4, %v1531_v49, %v7999_v34  ;;  %v1459_v29 = vsel %vm1446_vm4, %v1422_v17, %v8000_v52  ;;  %v714_v34 = vrot.slane %v423_v11, 1  ;;  %v715_v52 = vrot.slane %v9645_v20, 1 }
  0xe6   : > { %v8008_v0 = vpop.permute.xlu0 %8007  ;;  %1830 = vmatprep.mubr.f32.mxu0 %v1567_v8  ;;  %v8013_v53 = vpop.permute.xlu1 %8012  ;;  %v1496_v8 = vsel %vm1372_vm2, %v9077_v21, %v8004_v56  ;;  %v1386_v47 = vsel %vm1372_vm2, %v8486_v50, %v8005_v14  ;;  %v709_v50 = vrot.slane %v9618_v46, 2 }
  0xe7   : > { %v8010_v48 = vunpack.i.h.bf16 %v8008_v0  ;;  %v8009_v1 = vunpack.i.l.bf16 %v8008_v0  ;;  %1831 = vmatmul.mubr.f32.gmra.mrb[24].mxu0 %v1459_v29  ;;  %v8015_v49 = vunpack.i.h.bf16 %v8013_v53  ;;  %v8014_v17 = vunpack.i.l.bf16 %v8013_v53 }
  0xe8   : > { %8297 = vrot.lane.b32.xlu0 %v8296_v23, %s8595_s16  ;;  %v9670_v0 = vsel %vm571_vm0, %v706_v40, %v707_v60  ;;  %v716_v40 = vsel %vm480_vm1, %v714_v34, %v715_v52 }
  0xe9   : > { %8302 = vrot.lane.b32.xlu1 %v8301_v55, %s8594_s15  ;;  %v1532_v58 = vsel %vm1409_vm3, %v1496_v8, %v8009_v1  ;;  %v1423_v29 = vsel %vm1409_vm3, %v1386_v47, %v8010_v48  ;;  %v425_v1 = vld [vmem:[%s8724_s18 + $0x1d8] sm:$0x3]  ;;  %v8316_v41 = vpack.i.bf16 %v9563_v37, %v9670_v0  ;;  %v8326_v34 = vpack.i.bf16 %v9583_v16, %v716_v40 }
  0xea   : > { %v8018_v23 = vpop.permute.xlu0 %8017  ;;  %v1568_v53 = vsel %vm1446_vm4, %v1532_v58, %v8014_v17  ;;  %v1460_v56 = vsel %vm1446_vm4, %v1423_v29, %v8015_v49  ;;  %v8023_v21 = vpop.permute.xlu1 %8022  ;;  %v8321_v49 = vpack.i.bf16 %v9612_v26, %v423_v11  ;;  %v8487_v17 = vld [vmem:[%s8724_s18 + $0xa8] sm:$0xff] }
  0xeb   : > { %v8020_v14 = vunpack.i.h.bf16 %v8018_v23  ;;  %v8019_v55 = vunpack.i.l.bf16 %v8018_v23  ;;  %1835 = vmatprep.mubr.f32.mxu0 %v1568_v53  ;;  %v8025_v47 = vunpack.i.h.bf16 %v8023_v21  ;;  %v8024_v48 = vunpack.i.l.bf16 %v8023_v21 }
  0xec   : > { %8307 = vrot.lane.b32.xlu0 %v8306_v15, %s8596_s22  ;;  %1836 = vmatmul.mubr.f32.gmra.mrb[26].mxu0 %v1460_v56  ;;  %v9687_v21 = vsel %vm571_vm0, %v707_v60, %v709_v50  ;;  %v717_v15 = vrot.slane %v425_v1, 1 }
  0xed   : > { %8312 = vrot.lane.b32.xlu1 %v8311_v18, %s8595_s16  ;;  %v1497_v46 = vsel %vm1372_vm2, %v9109_v2, %v8019_v55  ;;  %v1387_v8 = vsel %vm1372_vm2, %v8487_v17, %v8020_v14  ;;  %v8331_v14 = vpack.i.bf16 %v9597_v51, %v9687_v21 }
  0xee   : > { %v8028_v58 = vpop.permute.xlu0 %8027  ;;  %v8033_v53 = vpop.permute.xlu1 %8032  ;;  %v1533_v11 = vsel %vm1409_vm3, %v1497_v46, %v8024_v48  ;;  %v1424_v55 = vsel %vm1409_vm3, %v1387_v8, %v8025_v47  ;;  %v718_v16 = vsel %vm480_vm1, %v715_v52, %v717_v15  ;;  %v8336_v47 = vpack.i.bf16 %v9634_v30, %v9645_v20  ;;  %v8488_v8 = vld [vmem:[%s8724_s18 + $0xb0] sm:$0xff] }
  0xef   : > { %v8030_v29 = vunpack.i.h.bf16 %v8028_v58  ;;  %v8029_v23 = vunpack.i.l.bf16 %v8028_v58  ;;  %v8035_v56 = vunpack.i.h.bf16 %v8033_v53  ;;  %v8034_v18 = vunpack.i.l.bf16 %v8033_v53 }
  0xf0   : > { %8317 = vrot.lane.b32.xlu0 %v8316_v41, %s8594_s15 }
  0xf1   : > { %8322 = vrot.lane.b32.xlu1 %v8321_v49, %s8596_s22  ;;  %v1569_v60 = vsel %vm1446_vm4, %v1533_v11, %v8029_v23  ;;  %v1461_v50 = vsel %vm1446_vm4, %v1424_v55, %v8030_v29  ;;  %v1498_v46 = vsel %vm1372_vm2, %v9121_v22, %v8034_v18  ;;  %v1388_v58 = vsel %vm1372_vm2, %v8488_v8, %v8035_v56 }
  0xf2   : > { %v8038_v1 = vpop.permute.xlu0 %8037  ;;  %1840 = vmatprep.mubr.f32.mxu0 %v1569_v60  ;;  %v8043_v17 = vpop.permute.xlu1 %8042  ;;  %v8341_v29 = vpack.i.bf16 %v9586_v25, %v718_v16  ;;  %v8489_v25 = vld [vmem:[%s8724_s18 + $0xc0] sm:$0xff] }
  0xf3   : > { %v8040_v40 = vunpack.i.h.bf16 %v8038_v1  ;;  %v8039_v41 = vunpack.i.l.bf16 %v8038_v1  ;;  %1841 = vmatmul.mubr.f32.gmra.mrb[28].mxu0 %v1461_v50  ;;  %v8045_v48 = vunpack.i.h.bf16 %v8043_v17  ;;  %v8044_v49 = vunpack.i.l.bf16 %v8043_v17 }
  0xf4   : > { %8327 = vrot.lane.b32.xlu0 %v8326_v34, %s8595_s16 }
  0xf5   : > { %8332 = vrot.lane.b32.xlu1 %v8331_v14, %s8594_s15  ;;  %v1534_v52 = vsel %vm1409_vm3, %v1498_v46, %v8039_v41  ;;  %v1425_v15 = vsel %vm1409_vm3, %v1388_v58, %v8040_v40 }
  0xf6   : > { %v8048_v20 = vpop.permute.xlu0 %8047  ;;  %v1570_v23 = vsel %vm1446_vm4, %v1534_v52, %v8044_v49  ;;  %v1462_v53 = vsel %vm1446_vm4, %v1425_v15, %v8045_v48  ;;  %v8053_v18 = vpop.permute.xlu1 %8052 }
  0xf7   : > { %v8050_v34 = vunpack.i.h.bf16 %v8048_v20  ;;  %v8049_v11 = vunpack.i.l.bf16 %v8048_v20  ;;  %1845 = vmatprep.mubr.f32.mxu0 %v1570_v23  ;;  %v8055_v55 = vunpack.i.h.bf16 %v8053_v18  ;;  %v8054_v56 = vunpack.i.l.bf16 %v8053_v18 }
  0xf8   : > { %8337 = vrot.lane.b32.xlu0 %v8336_v47, %s8596_s22  ;;  %1846 = vmatmul.mubr.f32.gmra.mrb[30].mxu0 %v1462_v53  ;;  %v8490_v53 = vld [vmem:[%s8724_s18 + $0xc8] sm:$0xff]  ;;  %s7743_s22 = smul.u32 288, %s8711_s23 }
  0xf9   : > { %8342 = vrot.lane.b32.xlu1 %v8341_v29, %s8595_s16  ;;  %v1499_v60 = vsel %vm1372_vm2, %v9141_v6, %v8049_v11  ;;  %v1389_v50 = vsel %vm1372_vm2, %v8489_v25, %v8050_v34 }
  0xfa   : > { %v8058_v14 = vpop.permute.xlu0 %8057  ;;  %v8063_v40 = vpop.permute.xlu1 %8062  ;;  %v1535_v48 = vsel %vm1409_vm3, %v1499_v60, %v8054_v56  ;;  %v1426_v47 = vsel %vm1409_vm3, %v1389_v50, %v8055_v55  ;;  %s9790_s10 = scalar_lea.vmem %s11948_s1, %s7743_s22 }
  0xfb   : > { %v8060_v1 = vunpack.i.h.bf16 %v8058_v14  ;;  %v8059_v16 = vunpack.i.l.bf16 %v8058_v14  ;;  %v8065_v41 = vunpack.i.h.bf16 %v8063_v40  ;;  %v8064_v17 = vunpack.i.l.bf16 %v8063_v40 }
  0xfd   : > { %v1571_v49 = vsel %vm1446_vm4, %v1535_v48, %v8059_v16  ;;  %v1463_v46 = vsel %vm1446_vm4, %v1426_v47, %v8060_v1  ;;  %v1500_v23 = vsel %vm1372_vm2, %v9152_v62, %v8064_v17  ;;  %v1390_v34 = vsel %vm1372_vm2, %v8490_v53, %v8065_v41  ;;  %v8491_v41 = vld [vmem:[%s8724_s18 + $0xd8] sm:$0xff] }
  0xfe   : > { %v8068_v8 = vpop.permute.xlu0 %8067  ;;  %1850 = vmatprep.mubr.f32.mxu0 %v1571_v49  ;;  %v8073_v15 = vpop.permute.xlu1 %8072 }
  0xff   : > { %v8070_v58 = vunpack.i.h.bf16 %v8068_v8  ;;  %v8069_v52 = vunpack.i.l.bf16 %v8068_v8  ;;  %1851 = vmatmul.mubr.f32.gmra.mrb[32].mxu0 %v1463_v46  ;;  %v8075_v29 = vunpack.i.h.bf16 %v8073_v15  ;;  %v8074_v20 = vunpack.i.l.bf16 %v8073_v15 }
 0x101   : > { %v1536_v11 = vsel %vm1409_vm3, %v1500_v23, %v8069_v52  ;;  %v1427_v18 = vsel %vm1409_vm3, %v1390_v34, %v8070_v58 }
 0x102   : > { %v8078_v55 = vpop.permute.xlu0 %8077  ;;  %v1572_v56 = vsel %vm1446_vm4, %v1536_v11, %v8074_v20  ;;  %v1464_v60 = vsel %vm1446_vm4, %v1427_v18, %v8075_v29  ;;  %v8083_v14 = vpop.permute.xlu1 %8082 }
 0x103   : > { %v8080_v25 = vunpack.i.h.bf16 %v8078_v55  ;;  %v8079_v50 = vunpack.i.l.bf16 %v8078_v55  ;;  %1855 = vmatprep.mubr.f32.mxu0 %v1572_v56  ;;  %v8085_v1 = vunpack.i.h.bf16 %v8083_v14  ;;  %v8084_v16 = vunpack.i.l.bf16 %v8083_v14 }
 0x104   : > { %1856 = vmatmul.mubr.f32.gmra.mrb[34].mxu0 %v1464_v60  ;;  %v8492_v60 = vld [vmem:[%s8724_s18 + $0xe0] sm:$0xff] }
 0x105   : > { %v1501_v40 = vsel %vm1372_vm2, %v9174_v44, %v8079_v50  ;;  %v1391_v17 = vsel %vm1372_vm2, %v8491_v41, %v8080_v25 }
 0x106   : > { %v8088_v48 = vpop.permute.xlu0 %8087  ;;  %v8093_v46 = vpop.permute.xlu1 %8092  ;;  %v1537_v52 = vsel %vm1409_vm3, %v1501_v40, %v8084_v16  ;;  %v1428_v15 = vsel %vm1409_vm3, %v1391_v17, %v8085_v1 }
 0x107   : > { %v8090_v47 = vunpack.i.h.bf16 %v8088_v48  ;;  %v8089_v49 = vunpack.i.l.bf16 %v8088_v48  ;;  %v8095_v8 = vunpack.i.h.bf16 %v8093_v46  ;;  %v8094_v58 = vunpack.i.l.bf16 %v8093_v46 }
 0x109   : > { %v1573_v29 = vsel %vm1446_vm4, %v1537_v52, %v8089_v49  ;;  %v1465_v20 = vsel %vm1446_vm4, %v1428_v15, %v8090_v47  ;;  %v1502_v56 = vsel %vm1372_vm2, %v9186_v31, %v8094_v58  ;;  %v1392_v25 = vsel %vm1372_vm2, %v8492_v60, %v8095_v8  ;;  %v8493_v8 = vld [vmem:[%s8724_s18 + $0xf0] sm:$0xff] }
 0x10a   : > { %v8098_v23 = vpop.permute.xlu0 %8097  ;;  %1860 = vmatprep.mubr.f32.mxu0 %v1573_v29  ;;  %v8103_v11 = vpop.permute.xlu1 %8102 }
 0x10b   : > { %v8100_v53 = vunpack.i.h.bf16 %v8098_v23  ;;  %v8099_v34 = vunpack.i.l.bf16 %v8098_v23  ;;  %1861 = vmatmul.mubr.f32.gmra.mrb[36].mxu0 %v1465_v20  ;;  %v8105_v18 = vunpack.i.h.bf16 %v8103_v11  ;;  %v8104_v55 = vunpack.i.l.bf16 %v8103_v11 }
 0x10d   : > { %v1538_v50 = vsel %vm1409_vm3, %v1502_v56, %v8099_v34  ;;  %v1429_v14 = vsel %vm1409_vm3, %v1392_v25, %v8100_v53 }
 0x10e   : > { %v8108_v1 = vpop.permute.xlu0 %8107  ;;  %v1574_v16 = vsel %vm1446_vm4, %v1538_v50, %v8104_v55  ;;  %v1466_v40 = vsel %vm1446_vm4, %v1429_v14, %v8105_v18  ;;  %v8113_v48 = vpop.permute.xlu1 %8112 }
 0x10f   : > { %v8110_v41 = vunpack.i.h.bf16 %v8108_v1  ;;  %v8109_v17 = vunpack.i.l.bf16 %v8108_v1  ;;  %1865 = vmatprep.mubr.f32.mxu0 %v1574_v16  ;;  %v8115_v47 = vunpack.i.h.bf16 %v8113_v48  ;;  %v8114_v49 = vunpack.i.l.bf16 %v8113_v48 }
 0x110   : > { %1866 = vmatmul.mubr.f32.gmra.mrb[38].mxu0 %v1466_v40  ;;  %v8494_v40 = vld [vmem:[%s8724_s18 + $0xf8] sm:$0xff] }
 0x111   : > { %v1503_v46 = vsel %vm1372_vm2, %v9212_v28, %v8109_v17  ;;  %v1393_v58 = vsel %vm1372_vm2, %v8493_v8, %v8110_v41 }
 0x112   : > { %v8118_v52 = vpop.permute.xlu0 %8117  ;;  %v1539_v34 = vsel %vm1409_vm3, %v1503_v46, %v8114_v49  ;;  %v1430_v11 = vsel %vm1409_vm3, %v1393_v58, %v8115_v47 }
 0x113   : > { %v8120_v15 = vunpack.i.h.bf16 %v8118_v52  ;;  %v8119_v29 = vunpack.i.l.bf16 %v8118_v52  ;;  %v8123_v20 = vpop.permute.xlu1 %8122 }
 0x114   : > { %v8125_v23 = vunpack.i.h.bf16 %v8123_v20  ;;  %v8124_v53 = vunpack.i.l.bf16 %v8123_v20 }
 0x115   : > { %v1575_v18 = vsel %vm1446_vm4, %v1539_v34, %v8119_v29  ;;  %v1467_v55 = vsel %vm1446_vm4, %v1430_v11, %v8120_v15 }
 0x116   : > { %v8128_v56 = vpop.permute.xlu0 %8127  ;;  %1870 = vmatprep.mubr.f32.mxu0 %v1575_v18  ;;  %v1504_v16 = vsel %vm1372_vm2, %v9231_v39, %v8124_v53  ;;  %v1394_v41 = vsel %vm1372_vm2, %v8494_v40, %v8125_v23  ;;  %v8495_v23 = vld [vmem:[%s8724_s18 + $0x108] sm:$0xff] }
 0x117   : > { %v8130_v60 = vunpack.i.h.bf16 %v8128_v56  ;;  %v8129_v25 = vunpack.i.l.bf16 %v8128_v56  ;;  %v8133_v50 = vpop.permute.xlu1 %8132  ;;  %1871 = vmatmul.mubr.f32.gmra.mrb[40].mxu0 %v1467_v55 }
 0x118   : > { %v8135_v14 = vunpack.i.h.bf16 %v8133_v50  ;;  %v8134_v1 = vunpack.i.l.bf16 %v8133_v50 }
 0x119   : > { %v1540_v17 = vsel %vm1409_vm3, %v1504_v16, %v8129_v25  ;;  %v1431_v48 = vsel %vm1409_vm3, %v1394_v41, %v8130_v60 }
 0x11a   : > { %v8138_v47 = vpop.permute.xlu0 %8137  ;;  %v1576_v49 = vsel %vm1446_vm4, %v1540_v17, %v8134_v1  ;;  %v1468_v46 = vsel %vm1446_vm4, %v1431_v48, %v8135_v14 }
 0x11b   : > { %v8140_v8 = vunpack.i.h.bf16 %v8138_v47  ;;  %v8139_v58 = vunpack.i.l.bf16 %v8138_v47  ;;  %v8143_v52 = vpop.permute.xlu1 %8142  ;;  %1875 = vmatprep.mubr.f32.mxu0 %v1576_v49 }
 0x11c   : > { %v8145_v15 = vunpack.i.h.bf16 %v8143_v52  ;;  %v8144_v29 = vunpack.i.l.bf16 %v8143_v52  ;;  %1876 = vmatmul.mubr.f32.gmra.mrb[42].mxu0 %v1468_v46  ;;  %v8496_v46 = vld [vmem:[%s8724_s18 + $0x110] sm:$0xff] }
 0x11d   : > { %v1505_v20 = vsel %vm1372_vm2, %v9249_v3, %v8139_v58  ;;  %v1395_v53 = vsel %vm1372_vm2, %v8495_v23, %v8140_v8 }
 0x11e   : > { %v8148_v34 = vpop.permute.xlu0 %8147  ;;  %v1541_v25 = vsel %vm1409_vm3, %v1505_v20, %v8144_v29  ;;  %v1432_v50 = vsel %vm1409_vm3, %v1395_v53, %v8145_v15 }
 0x11f   : > { %v8150_v11 = vunpack.i.h.bf16 %v8148_v34  ;;  %v8149_v18 = vunpack.i.l.bf16 %v8148_v34  ;;  %v8153_v55 = vpop.permute.xlu1 %8152 }
 0x120   : > { %v8155_v56 = vunpack.i.h.bf16 %v8153_v55  ;;  %v8154_v60 = vunpack.i.l.bf16 %v8153_v55 }
 0x121   : > { %v1577_v14 = vsel %vm1446_vm4, %v1541_v25, %v8149_v18  ;;  %v1469_v1 = vsel %vm1446_vm4, %v1432_v50, %v8150_v11 }
 0x122   : > { %v8158_v16 = vpop.permute.xlu0 %8157  ;;  %1880 = vmatprep.mubr.f32.mxu0 %v1577_v14  ;;  %v1506_v49 = vsel %vm1372_vm2, %v9263_v13, %v8154_v60  ;;  %v1396_v8 = vsel %vm1372_vm2, %v8496_v46, %v8155_v56  ;;  %v8497_v56 = vld [vmem:[%s8724_s18 + $0x120] sm:$0xff]  ;;  %v2207_v46 = vld [vmem:[%s9790_s10 + $0x58] sm:$0xff] }
 0x123   : > { %v8160_v40 = vunpack.i.h.bf16 %v8158_v16  ;;  %v8159_v41 = vunpack.i.l.bf16 %v8158_v16  ;;  %v8163_v17 = vpop.permute.xlu1 %8162  ;;  %1881 = vmatmul.mubr.f32.gmra.mrb[44].mxu0 %v1469_v1  ;;  %2290 = vrot.lane.b32.xlu1 %v2207_v46, %s8594_s15  ;;  %v2210_v46 = vld [vmem:[%s9790_s10 + $0x70] sm:$0xff] }
 0x124   : > { %v8165_v48 = vunpack.i.h.bf16 %v8163_v17  ;;  %v8164_v47 = vunpack.i.l.bf16 %v8163_v17 }
 0x125   : > { %v1542_v58 = vsel %vm1409_vm3, %v1506_v49, %v8159_v41  ;;  %v1433_v52 = vsel %vm1409_vm3, %v1396_v8, %v8160_v40 }
 0x126   : > { %v8168_v15 = vpop.permute.xlu0 %8167  ;;  %v1578_v29 = vsel %vm1446_vm4, %v1542_v58, %v8164_v47  ;;  %v1470_v20 = vsel %vm1446_vm4, %v1433_v52, %v8165_v48 }
 0x127   : > { %v8170_v23 = vunpack.i.h.bf16 %v8168_v15  ;;  %v8169_v53 = vunpack.i.l.bf16 %v8168_v15  ;;  %v8173_v34 = vpop.permute.xlu1 %8172  ;;  %1885 = vmatprep.mubr.f32.mxu0 %v1578_v29  ;;  %v2206_v15 = vld [vmem:[%s9790_s10 + $0x50] sm:$0xff] }
 0x128   : > { %v8175_v11 = vunpack.i.h.bf16 %v8173_v34  ;;  %v8174_v18 = vunpack.i.l.bf16 %v8173_v34  ;;  %1886 = vmatmul.mubr.f32.gmra.mrb[46].mxu0 %v1470_v20  ;;  %2288 = vrot.lane.b32.xlu0 %v2206_v15, %s8594_s15 }
 0x129   : > { %v1507_v55 = vsel %vm1372_vm2, %v9314_v59, %v8169_v53  ;;  %v1397_v60 = vsel %vm1372_vm2, %v8497_v56, %v8170_v23  ;;  %v8498_v53 = vld [vmem:[%s8724_s18 + $0x128] sm:$0xff] }
 0x12a   : > { %v8178_v25 = vpop.permute.xlu0 %8177  ;;  %v1543_v41 = vsel %vm1409_vm3, %v1507_v55, %v8174_v18  ;;  %v1434_v17 = vsel %vm1409_vm3, %v1397_v60, %v8175_v11  ;;  %v2209_v11 = vld [vmem:[%s9790_s10 + $0x68] sm:$0xff] }
 0x12b   : > { %v8180_v50 = vunpack.i.h.bf16 %v8178_v25  ;;  %v8179_v14 = vunpack.i.l.bf16 %v8178_v25  ;;  %v8183_v1 = vpop.permute.xlu1 %8182  ;;  %2294 = vrot.lane.b32.xlu1 %v2209_v11, %s8594_s15 }
 0x12c   : > { %v8185_v16 = vunpack.i.h.bf16 %v8183_v1  ;;  %v8184_v40 = vunpack.i.l.bf16 %v8183_v1 }
 0x12d   : > { %v1579_v48 = vsel %vm1446_vm4, %v1543_v41, %v8179_v14  ;;  %v1471_v47 = vsel %vm1446_vm4, %v1434_v17, %v8180_v50  ;;  %v2211_v17 = vld [vmem:[%s9790_s10 + $0x78] sm:$0xff] }
 0x12e   : > { %v8188_v49 = vpop.permute.xlu0 %8187  ;;  %1890 = vmatprep.mubr.f32.mxu0 %v1579_v48  ;;  %v1508_v23 = vsel %vm1372_vm2, %v9330_v27, %v8184_v40  ;;  %v1398_v34 = vsel %vm1372_vm2, %v8498_v53, %v8185_v16  ;;  %v2208_v16 = vld [vmem:[%s9790_s10 + $0x60] sm:$0xff] }
 0x12f   : > { %v8190_v8 = vunpack.i.h.bf16 %v8188_v49  ;;  %v8189_v58 = vunpack.i.l.bf16 %v8188_v49  ;;  %v8193_v52 = vpop.permute.xlu1 %8192  ;;  %1891 = vmatmul.mubr.f32.gmra.mrb[48].mxu0 %v1471_v47  ;;  %2292 = vrot.lane.b32.xlu0 %v2208_v16, %s8594_s15  ;;  %v8499_v47 = vld [vmem:[%s8724_s18 + $0x138] sm:$0xff] }
 0x130   : > { %v8195_v29 = vunpack.i.h.bf16 %v8193_v52  ;;  %v8194_v20 = vunpack.i.l.bf16 %v8193_v52  ;;  %2298 = vrot.lane.b32.xlu1 %v2211_v17, %s8594_s15  ;;  %v2215_v17 = vld [vmem:[%s9790_s10 + $0x98] sm:$0xff] }
 0x131   : > { %v1544_v18 = vsel %vm1409_vm3, %v1508_v23, %v8189_v58  ;;  %v1435_v55 = vsel %vm1409_vm3, %v1398_v34, %v8190_v8 }
 0x132   : > { %v8198_v56 = vpop.permute.xlu0 %8197  ;;  %v1580_v60 = vsel %vm1446_vm4, %v1544_v18, %v8194_v20  ;;  %v1472_v25 = vsel %vm1446_vm4, %v1435_v55, %v8195_v29  ;;  %v2213_v55 = vld [vmem:[%s9790_s10 + $0x88] sm:$0xff] }
 0x133   : > { %v8200_v50 = vunpack.i.h.bf16 %v8198_v56  ;;  %v8199_v14 = vunpack.i.l.bf16 %v8198_v56  ;;  %v8203_v1 = vpop.permute.xlu1 %8202  ;;  %1895 = vmatprep.mubr.f32.mxu0 %v1580_v60  ;;  %2296 = vrot.lane.b32.xlu0 %v2210_v46, %s8594_s15 }
 0x134   : > { %v8205_v40 = vunpack.i.h.bf16 %v8203_v1  ;;  %v8204_v41 = vunpack.i.l.bf16 %v8203_v1  ;;  %1896 = vmatmul.mubr.f32.gmra.mrb[50].mxu0 %v1472_v25  ;;  %2302 = vrot.lane.b32.xlu1 %v2213_v55, %s8594_s15  ;;  %v2216_v55 = vld [vmem:[%s9790_s10 + $0xa0] sm:$0xff] }
 0x135   : > { %v1509_v48 = vsel %vm1372_vm2, %v9380_v54, %v8199_v14  ;;  %v1399_v49 = vsel %vm1372_vm2, %v8499_v47, %v8200_v50  ;;  %v2212_v50 = vld [vmem:[%s9790_s10 + $0x80] sm:$0xff] }
 0x136   : > { %v8208_v8 = vpop.permute.xlu0 %8207  ;;  %v1545_v23 = vsel %vm1409_vm3, %v1509_v48, %v8204_v41  ;;  %v1436_v53 = vsel %vm1409_vm3, %v1399_v49, %v8205_v40  ;;  %v8500_v40 = vld [vmem:[%s8724_s18 + $0x140] sm:$0xff] }
 0x137   : > { %v8210_v58 = vunpack.i.h.bf16 %v8208_v8  ;;  %v8209_v52 = vunpack.i.l.bf16 %v8208_v8  ;;  %v8213_v15 = vpop.permute.xlu1 %8212  ;;  %2300 = vrot.lane.b32.xlu0 %v2212_v50, %s8594_s15 }
 0x138   : > { %v8215_v29 = vunpack.i.h.bf16 %v8213_v15  ;;  %v8214_v20 = vunpack.i.l.bf16 %v8213_v15  ;;  %2306 = vrot.lane.b32.xlu1 %v2215_v17, %s8594_s15 }
 0x139   : > { %v1581_v34 = vsel %vm1446_vm4, %v1545_v23, %v8209_v52  ;;  %v1473_v11 = vsel %vm1446_vm4, %v1436_v53, %v8210_v58  ;;  %v2217_v53 = vld [vmem:[%s9790_s10 + $0xa8] sm:$0xff] }
 0x13a   : > { %v8218_v18 = vpop.permute.xlu0 %8217  ;;  %1900 = vmatprep.mubr.f32.mxu0 %v1581_v34  ;;  %v1510_v16 = vsel %vm1372_vm2, %v9414_v19, %v8214_v20  ;;  %v1400_v41 = vsel %vm1372_vm2, %v8500_v40, %v8215_v29  ;;  %v2214_v29 = vld [vmem:[%s9790_s10 + $0x90] sm:$0xff] }
 0x13b   : > { %v8220_v56 = vunpack.i.h.bf16 %v8218_v18  ;;  %v8219_v60 = vunpack.i.l.bf16 %v8218_v18  ;;  %v8223_v25 = vpop.permute.xlu1 %8222  ;;  %1901 = vmatmul.mubr.f32.gmra.mrb[52].mxu0 %v1473_v11  ;;  %2304 = vrot.lane.b32.xlu0 %v2214_v29, %s8594_s15  ;;  %v8501_v11 = vld [vmem:[%s8724_s18 + $0x150] sm:$0xff] }
 0x13c   : > { %v8225_v14 = vunpack.i.h.bf16 %v8223_v25  ;;  %v8224_v1 = vunpack.i.l.bf16 %v8223_v25  ;;  %2310 = vrot.lane.b32.xlu1 %v2217_v53, %s8594_s15  ;;  %v2221_v53 = vld [vmem:[%s9790_s10 + $0xc8] sm:$0xff] }
 0x13d   : > { %v1546_v48 = vsel %vm1409_vm3, %v1510_v16, %v8219_v60  ;;  %v1437_v47 = vsel %vm1409_vm3, %v1400_v41, %v8220_v56 }
 0x13e   : > { %v8228_v49 = vpop.permute.xlu0 %8227  ;;  %v1582_v46 = vsel %vm1446_vm4, %v1546_v48, %v8224_v1  ;;  %v1474_v8 = vsel %vm1446_vm4, %v1437_v47, %v8225_v14  ;;  %v2219_v47 = vld [vmem:[%s9790_s10 + $0xb8] sm:$0xff] }
 0x13f   : > { %v8230_v58 = vunpack.i.h.bf16 %v8228_v49  ;;  %v8229_v52 = vunpack.i.l.bf16 %v8228_v49  ;;  %v8233_v15 = vpop.permute.xlu1 %8232  ;;  %1905 = vmatprep.mubr.f32.mxu0 %v1582_v46  ;;  %2308 = vrot.lane.b32.xlu0 %v2216_v55, %s8594_s15 }
 0x140   : > { %v8235_v20 = vunpack.i.h.bf16 %v8233_v15  ;;  %v8234_v23 = vunpack.i.l.bf16 %v8233_v15  ;;  %1906 = vmatmul.mubr.f32.gmra.mrb[54].mxu0 %v1474_v8  ;;  %2314 = vrot.lane.b32.xlu1 %v2219_v47, %s8594_s15  ;;  %v2222_v47 = vld [vmem:[%s9790_s10 + $0xd0] sm:$0xff] }
 0x141   : > { %v1511_v34 = vsel %vm1372_vm2, %v9441_v35, %v8229_v52  ;;  %v1401_v18 = vsel %vm1372_vm2, %v8501_v11, %v8230_v58  ;;  %v2218_v58 = vld [vmem:[%s9790_s10 + $0xb0] sm:$0xff] }
 0x142   : > { %v8238_v56 = vpop.permute.xlu0 %8237  ;;  %v1547_v16 = vsel %vm1409_vm3, %v1511_v34, %v8234_v23  ;;  %v1438_v40 = vsel %vm1409_vm3, %v1401_v18, %v8235_v20  ;;  %v8502_v20 = vld [vmem:[%s8724_s18 + $0x158] sm:$0xff] }
 0x143   : > { %v8240_v60 = vunpack.i.h.bf16 %v8238_v56  ;;  %v8239_v25 = vunpack.i.l.bf16 %v8238_v56  ;;  %v8243_v50 = vpop.permute.xlu1 %8242  ;;  %2312 = vrot.lane.b32.xlu0 %v2218_v58, %s8594_s15 }
 0x144   : > { %v8245_v14 = vunpack.i.h.bf16 %v8243_v50  ;;  %v8244_v1 = vunpack.i.l.bf16 %v8243_v50  ;;  %2318 = vrot.lane.b32.xlu1 %v2221_v53, %s8594_s15 }
 0x145   : > { %v1583_v41 = vsel %vm1446_vm4, %v1547_v16, %v8239_v25  ;;  %v1475_v17 = vsel %vm1446_vm4, %v1438_v40, %v8240_v60  ;;  %v2223_v40 = vld [vmem:[%s9790_s10 + $0xd8] sm:$0xff] }
 0x146   : > { %v8248_v48 = vpop.permute.xlu0 %8247  ;;  %1910 = vmatprep.mubr.f32.mxu0 %v1583_v41  ;;  %v1512_v29 = vsel %vm1372_vm2, %v9475_v10, %v8244_v1  ;;  %v1402_v23 = vsel %vm1372_vm2, %v8502_v20, %v8245_v14  ;;  %v2220_v14 = vld [vmem:[%s9790_s10 + $0xc0] sm:$0xff] }
 0x147   : > { %v8250_v49 = vunpack.i.h.bf16 %v8248_v48  ;;  %v8249_v46 = vunpack.i.l.bf16 %v8248_v48  ;;  %v8253_v8 = vpop.permute.xlu1 %8252  ;;  %1911 = vmatmul.mubr.f32.gmra.mrb[56].mxu0 %v1475_v17  ;;  %2316 = vrot.lane.b32.xlu0 %v2220_v14, %s8594_s15  ;;  %v8503_v17 = vld [vmem:[%s8724_s18 + $0x168] sm:$0xff] }
 0x148   : > { %v8255_v52 = vunpack.i.h.bf16 %v8253_v8  ;;  %v8254_v15 = vunpack.i.l.bf16 %v8253_v8  ;;  %2322 = vrot.lane.b32.xlu1 %v2223_v40, %s8594_s15  ;;  %v2227_v40 = vld [vmem:[%s9790_s10 + $0xf8] sm:$0xff] }
 0x149   : > { %v1548_v34 = vsel %vm1409_vm3, %v1512_v29, %v8249_v46  ;;  %v1439_v11 = vsel %vm1409_vm3, %v1402_v23, %v8250_v49 }
 0x14a   : > { %v8258_v18 = vpop.permute.xlu0 %8257  ;;  %v1584_v55 = vsel %vm1446_vm4, %v1548_v34, %v8254_v15  ;;  %v1476_v56 = vsel %vm1446_vm4, %v1439_v11, %v8255_v52  ;;  %v2225_v11 = vld [vmem:[%s9790_s10 + $0xe8] sm:$0xff] }
 0x14b   : > { %v8260_v60 = vunpack.i.h.bf16 %v8258_v18  ;;  %v8259_v25 = vunpack.i.l.bf16 %v8258_v18  ;;  %v8263_v50 = vpop.permute.xlu1 %8262  ;;  %1915 = vmatprep.mubr.f32.mxu0 %v1584_v55  ;;  %2320 = vrot.lane.b32.xlu0 %v2222_v47, %s8594_s15 }
 0x14c   : > { %v8265_v1 = vunpack.i.h.bf16 %v8263_v50  ;;  %v8264_v16 = vunpack.i.l.bf16 %v8263_v50  ;;  %1916 = vmatmul.mubr.f32.gmra.mrb[58].mxu0 %v1476_v56  ;;  %2326 = vrot.lane.b32.xlu1 %v2225_v11, %s8594_s15  ;;  %v2198_v11 = vld [vmem:[%s9790_s10 + $0x10] sm:$0xff] }
 0x14d   : > { %v1513_v41 = vsel %vm1372_vm2, %v9502_v43, %v8259_v25  ;;  %v1403_v48 = vsel %vm1372_vm2, %v8503_v17, %v8260_v60  ;;  %v2224_v60 = vld [vmem:[%s9790_s10 + $0xe0] sm:$0xff] }
 0x14e   : > { %v8268_v49 = vpop.permute.xlu0 %8267  ;;  %v1549_v29 = vsel %vm1409_vm3, %v1513_v41, %v8264_v16  ;;  %v1440_v20 = vsel %vm1409_vm3, %v1403_v48, %v8265_v1  ;;  %v8504_v1 = vld [vmem:[%s8724_s18 + $0x170] sm:$0xff] }
 0x14f   : > { %v8270_v46 = vunpack.i.h.bf16 %v8268_v49  ;;  %v8269_v8 = vunpack.i.l.bf16 %v8268_v49  ;;  %v8273_v58 = vpop.permute.xlu1 %8272  ;;  %2324 = vrot.lane.b32.xlu0 %v2224_v60, %s8594_s15 }
 0x150   : > { %v8275_v52 = vunpack.i.h.bf16 %v8273_v58  ;;  %v8274_v15 = vunpack.i.l.bf16 %v8273_v58  ;;  %2330 = vrot.lane.b32.xlu1 %v2227_v40, %s8594_s15 }
 0x151   : > { %v1585_v23 = vsel %vm1446_vm4, %v1549_v29, %v8269_v8  ;;  %v1477_v53 = vsel %vm1446_vm4, %v1440_v20, %v8270_v46  ;;  %v2199_v20 = vld [vmem:[%s9790_s10 + $0x18] sm:$0xff] }
 0x152   : > { %v8278_v34 = vpop.permute.xlu0 %8277  ;;  %1920 = vmatprep.mubr.f32.mxu0 %v1585_v23  ;;  %v1514_v14 = vsel %vm1372_vm2, %v9536_v36, %v8274_v15  ;;  %v1404_v16 = vsel %vm1372_vm2, %v8504_v1, %v8275_v52  ;;  %v2226_v52 = vld [vmem:[%s9790_s10 + $0xf0] sm:$0xff] }
 0x153   : > { %v8280_v18 = vunpack.i.h.bf16 %v8278_v34  ;;  %v8279_v55 = vunpack.i.l.bf16 %v8278_v34  ;;  %v8283_v56 = vpop.permute.xlu1 %8282  ;;  %1921 = vmatmul.mubr.f32.gmra.mrb[60].mxu0 %v1477_v53  ;;  %2328 = vrot.lane.b32.xlu0 %v2226_v52, %s8594_s15  ;;  %v8505_v53 = vld [vmem:[%s8724_s18 + $0x180] sm:$0xff] }
 0x154   : > { %v8285_v25 = vunpack.i.h.bf16 %v8283_v56  ;;  %v8284_v50 = vunpack.i.l.bf16 %v8283_v56  ;;  %2274 = vrot.lane.b32.xlu1 %v2199_v20, %s8594_s15  ;;  %v2203_v20 = vld [vmem:[%s9790_s10 + $0x38] sm:$0xff] }
 0x155   : > { %v1550_v41 = vsel %vm1409_vm3, %v1514_v14, %v8279_v55  ;;  %v1441_v17 = vsel %vm1409_vm3, %v1404_v16, %v8280_v18 }
 0x156   : > { %v8288_v48 = vpop.permute.xlu0 %8287  ;;  %v1586_v47 = vsel %vm1446_vm4, %v1550_v41, %v8284_v50  ;;  %v1478_v49 = vsel %vm1446_vm4, %v1441_v17, %v8285_v25  ;;  %v2201_v17 = vld [vmem:[%s9790_s10 + $0x28] sm:$0xff] }
 0x157   : > { %v8290_v46 = vunpack.i.h.bf16 %v8288_v48  ;;  %v8289_v8 = vunpack.i.l.bf16 %v8288_v48  ;;  %v8293_v58 = vpop.permute.xlu1 %8292  ;;  %1925 = vmatprep.mubr.f32.mxu0 %v1586_v47  ;;  %2272 = vrot.lane.b32.xlu0 %v2198_v11, %s8594_s15 }
 0x158   : > { %v8295_v15 = vunpack.i.h.bf16 %v8293_v58  ;;  %v8294_v29 = vunpack.i.l.bf16 %v8293_v58  ;;  %1926 = vmatmul.mubr.f32.gmra.mrb[62].mxu0 %v1478_v49  ;;  %2278 = vrot.lane.b32.xlu1 %v2201_v17, %s8594_s15  ;;  %v2204_v17 = vld [vmem:[%s9790_s10 + $0x40] sm:$0xff] }
 0x159   : > { %v1515_v23 = vsel %vm1372_vm2, %v9563_v37, %v8289_v8  ;;  %v1405_v34 = vsel %vm1372_vm2, %v8505_v53, %v8290_v46  ;;  %v2200_v46 = vld [vmem:[%s9790_s10 + $0x20] sm:$0xff] }
 0x15a   : > { %v8298_v18 = vpop.permute.xlu0 %8297  ;;  %v1551_v14 = vsel %vm1409_vm3, %v1515_v23, %v8294_v29  ;;  %v1442_v1 = vsel %vm1409_vm3, %v1405_v34, %v8295_v15  ;;  %v8506_v15 = vld [vmem:[%s8724_s18 + $0x188] sm:$0xff] }
 0x15b   : > { %v8300_v55 = vunpack.i.h.bf16 %v8298_v18  ;;  %v8299_v56 = vunpack.i.l.bf16 %v8298_v18  ;;  %v8303_v60 = vpop.permute.xlu1 %8302  ;;  %2276 = vrot.lane.b32.xlu0 %v2200_v46, %s8594_s15 }
 0x15c   : > { %v8305_v25 = vunpack.i.h.bf16 %v8303_v60  ;;  %v8304_v50 = vunpack.i.l.bf16 %v8303_v60  ;;  %2282 = vrot.lane.b32.xlu1 %v2203_v20, %s8594_s15 }
 0x15d   : > { %v1587_v16 = vsel %vm1446_vm4, %v1551_v14, %v8299_v56  ;;  %v1479_v40 = vsel %vm1446_vm4, %v1442_v1, %v8300_v55  ;;  %v2205_v1 = vld [vmem:[%s9790_s10 + $0x48] sm:$0xff] }
 0x15e   : > { %v8308_v41 = vpop.permute.xlu0 %8307  ;;  %1930 = vmatprep.mubr.f32.mxu0 %v1587_v16  ;;  %v1516_v52 = vsel %vm1372_vm2, %v9597_v51, %v8304_v50  ;;  %v1406_v29 = vsel %vm1372_vm2, %v8506_v15, %v8305_v25  ;;  %v2202_v25 = vld [vmem:[%s9790_s10 + $0x30] sm:$0xff] }
 0x15f   : > { %v8310_v48 = vunpack.i.h.bf16 %v8308_v41  ;;  %v8309_v47 = vunpack.i.l.bf16 %v8308_v41  ;;  %v8313_v49 = vpop.permute.xlu1 %8312  ;;  %1931 = vmatmul.mubr.f32.gmra.mrb[64].mxu0 %v1479_v40  ;;  %2280 = vrot.lane.b32.xlu0 %v2202_v25, %s8594_s15  ;;  %v8507_v40 = vld [vmem:[%s8724_s18 + $0x198] sm:$0xff] }
 0x160   : > { %v8315_v8 = vunpack.i.h.bf16 %v8313_v49  ;;  %v8314_v58 = vunpack.i.l.bf16 %v8313_v49  ;;  %2286 = vrot.lane.b32.xlu1 %v2205_v1, %s8594_s15 }
 0x161   : > { %v1552_v23 = vsel %vm1409_vm3, %v1516_v52, %v8309_v47  ;;  %v1443_v53 = vsel %vm1409_vm3, %v1406_v29, %v8310_v48 }
 0x162   : > { %v8318_v34 = vpop.permute.xlu0 %8317  ;;  %v1588_v11 = vsel %vm1446_vm4, %v1552_v23, %v8314_v58  ;;  %v1480_v18 = vsel %vm1446_vm4, %v1443_v53, %v8315_v8 }
 0x163   : > { %v8320_v55 = vunpack.i.h.bf16 %v8318_v34  ;;  %v8319_v56 = vunpack.i.l.bf16 %v8318_v34  ;;  %v8323_v60 = vpop.permute.xlu1 %8322  ;;  %1935 = vmatprep.mubr.f32.mxu0 %v1588_v11  ;;  %2284 = vrot.lane.b32.xlu0 %v2204_v17, %s8594_s15  ;;  %v12163_v17 = vld [vmem:[#allocation11_spill] sm:$0xff] }
 0x164   : > { %v8325_v50 = vunpack.i.h.bf16 %v8323_v60  ;;  %v8324_v14 = vunpack.i.l.bf16 %v8323_v60  ;;  %1936 = vmatmul.mubr.f32.gmra.mrb[66].mxu0 %v1480_v18 }
 0x165   : > { %v1517_v16 = vsel %vm1372_vm2, %v9624_v7, %v8319_v56  ;;  %v1407_v41 = vsel %vm1372_vm2, %v8507_v40, %v8320_v55  ;;  %v8508_v56 = vld [vmem:[%s8724_s18 + $0x1a0] sm:$0xff] }
 0x166   : > { %v8328_v48 = vpop.permute.xlu0 %8327  ;;  %v1553_v52 = vsel %vm1409_vm3, %v1517_v16, %v8324_v14  ;;  %v1444_v15 = vsel %vm1409_vm3, %v1407_v41, %v8325_v50 }
 0x167   : > { %v8330_v47 = vunpack.i.h.bf16 %v8328_v48  ;;  %v8329_v49 = vunpack.i.l.bf16 %v8328_v48  ;;  %v8333_v46 = vpop.permute.xlu1 %8332  ;;  %v12164_v48 = vld [vmem:[#allocation13_spill] sm:$0xff] }
 0x168   : > { %v8335_v8 = vunpack.i.h.bf16 %v8333_v46  ;;  %v8334_v58 = vunpack.i.l.bf16 %v8333_v46 }
 0x169   : > { %v1589_v7 = vsel %vm1446_vm4, %v1553_v52, %v8329_v49  ;;  %v1481_v29 = vsel %vm1446_vm4, %v1444_v15, %v8330_v47  ;;  %v12166_v49 = vld [vmem:[#allocation17_spill] sm:$0xff]  ;;  %v12171_v15 = vld [vmem:[#allocation27_spill] sm:$0xff] }
 0x16a   : > { %v8338_v20 = vpop.permute.xlu0 %8337  ;;  %1940 = vmatprep.mubr.f32.mxu0 %v1589_v7  ;;  %v1518_v55 = vsel %vm1372_vm2, %v9656_v63, %v8334_v58  ;;  %v1408_v60 = vsel %vm1372_vm2, %v8508_v56, %v8335_v8  ;;  %v12168_v8 = vld [vmem:[#allocation21_spill] sm:$0xff]  ;;  %v12169_v58 = vld [vmem:[#allocation23_spill] sm:$0xff] }
 0x16b   : > { %v8340_v23 = vunpack.i.h.bf16 %v8338_v20  ;;  %v8339_v53 = vunpack.i.l.bf16 %v8338_v20  ;;  %v8343_v34 = vpop.permute.xlu1 %8342  ;;  %1941 = vmatmul.mubr.f32.gmra.mrb[68].mxu0 %v1481_v29  ;;  %v12170_v52 = vld [vmem:[#allocation25_spill] sm:$0xff] }
 0x16c   : > { %v8345_v11 = vunpack.i.h.bf16 %v8343_v34  ;;  %v8344_v18 = vunpack.i.l.bf16 %v8343_v34  ;;  %v12172_v20 = vld [vmem:[#allocation29_spill] sm:$0xff] }
 0x16d   : > { %v1554_v25 = vsel %vm1409_vm3, %v1518_v55, %v8339_v53  ;;  %v1445_v50 = vsel %vm1409_vm3, %v1408_v60, %v8340_v23  ;;  %v12173_v23 = vld [vmem:[#allocation31_spill] sm:$0xff] }
 0x16e   : > { %v1590_v14 = vsel %vm1446_vm4, %v1554_v25, %v8344_v18  ;;  %v1482_v1 = vsel %vm1446_vm4, %v1445_v50, %v8345_v11  ;;  %v12174_v11 = vld [vmem:[#allocation33_spill] sm:$0xff]  ;;  %v12175_v18 = vld [vmem:[#allocation35_spill] sm:$0xff] }
 0x16f   : > { %1945 = vmatprep.mubr.f32.mxu0 %v1590_v14  ;;  %v12178_v14 = vld [vmem:[#allocation49_spill] sm:$0xff] }
 0x170   : > { %1946 = vmatmul.mubr.f32.gmra.mrb[70].mxu0 %v1482_v1 }
 0x171   : > { %6924 = vmatprep.mubr.msk.f32.mxu0 %vm1372_vm2, %v8819_v61  ;;  %v12165_v61 = vld [vmem:[#allocation15_spill] sm:$0xff] }
 0x173   : > { %v1772_v16 = vpop.f32.mrb[0].mxu0 }
 0x174   : > { %v1774_v40 = vpop.f32.mrb[1].mxu0  ;;  %6925 = vmatmul.mubr.msk.f32.vlgmr.msra.gmra.mrb[72].mxu0 %vm1372_vm2, %v8843_v12 }
 0x175   : > { %6927 = vmatprep.mubr.msk.f32.mxu0 %vm1372_vm2, %v8883_v33  ;;  %v12167_v33 = vld [vmem:[#allocation19_spill] sm:$0xff] }
 0x177   : > { %v1777_v63 = vpop.f32.mrb[2].mxu0 }
 0x178   : > { %v1779_v41 = vpop.f32.mrb[3].mxu0  ;;  %6928 = vmatmul.mubr.msk.f32.gmra.mrb[74].mxu0 %vm1372_vm2, %v8899_v42 }
 0x179   : > { %6930 = vmatprep.mubr.msk.f32.mxu0 %vm1372_vm2, %v12163_v17 }
 0x17c   : > { %6931 = vmatmul.mubr.msk.f32.gmra.mrb[76].mxu0 %vm1372_vm2, %v12164_v48 }
 0x17d   : > { %6933 = vmatprep.mubr.msk.f32.mxu0 %vm1372_vm2, %v12165_v61 }
 0x17e   : > { %v9954_v47 = vpop.f32.mrb[4].mxu0 }
 0x17f   : > { %v1784_v12 = vpop.f32.mrb[5].mxu0 }
 0x180   : > { %6934 = vmatmul.mubr.msk.f32.gmra.mrb[78].mxu0 %vm1372_vm2, %v12166_v49 }
 0x181   : > { %6936 = vmatprep.mubr.msk.f32.mxu0 %vm1372_vm2, %v12167_v33 }
 0x183   : > { %v9960_v46 = vpop.f32.mrb[6].mxu0 }
 0x184   : > { %v1789_v42 = vpop.f32.mrb[7].mxu0  ;;  %6937 = vmatmul.mubr.msk.f32.gmra.mrb[80].mxu0 %vm1372_vm2, %v12168_v8 }
 0x185   : > { %6939 = vmatprep.mubr.msk.f32.mxu0 %vm1372_vm2, %v12169_v58 }
 0x188   : > { %6940 = vmatmul.mubr.msk.f32.gmra.mrb[82].mxu0 %vm1372_vm2, %v12170_v52 }
 0x189   : > { %6942 = vmatprep.mubr.msk.f32.mxu0 %vm1372_vm2, %v12171_v15 }
 0x18a   : > { %v9970_v7 = vpop.f32.mrb[8].mxu0 }
 0x18b   : > { %v1794_v29 = vpop.f32.mrb[9].mxu0 }
 0x18c   : > { %6943 = vmatmul.mubr.msk.f32.gmra.mrb[84].mxu0 %vm1372_vm2, %v12172_v20 }
 0x18d   : > { %6945 = vmatprep.mubr.msk.f32.mxu0 %vm1372_vm2, %v12173_v23 }
 0x18f   : > { %v9976_v53 = vpop.f32.mrb[10].mxu0 }
 0x190   : > { %v1799_v34 = vpop.f32.mrb[11].mxu0  ;;  %6946 = vmatmul.mubr.msk.f32.gmra.mrb[86].mxu0 %vm1372_vm2, %v12174_v11 }
 0x191   : > { %6948 = vmatprep.mubr.msk.f32.mxu0 %vm1372_vm2, %v12175_v18 }
 0x194   : > { %6949 = vmatmul.mubr.msk.f32.gmra.mrb[88].mxu0 %vm1372_vm2, %v9215_v5 }
 0x195   : > { %6951 = vmatprep.mubr.msk.f32.mxu0 %vm1372_vm2, %v9245_v4 }
 0x196   : > { %v9986_v55 = vpop.f32.mrb[12].mxu0 }
 0x197   : > { %v1804_v56 = vpop.f32.mrb[13].mxu0 }
 0x198   : > { %6952 = vmatmul.mubr.msk.f32.gmra.mrb[90].mxu0 %vm1372_vm2, %v9260_v32  ;;  %v12176_v32 = vld [vmem:[#allocation45_spill] sm:$0xff] }
 0x199   : > { %6954 = vmatprep.mubr.msk.f32.mxu0 %vm1372_vm2, %v9303_v38  ;;  %v12177_v38 = vld [vmem:[#allocation47_spill] sm:$0xff] }
 0x19b   : > { %v9992_v60 = vpop.f32.mrb[14].mxu0 }
 0x19c   : > { %v1809_v25 = vpop.f32.mrb[15].mxu0  ;;  %6955 = vmatmul.mubr.msk.f32.gmra.mrb[92].mxu0 %vm1372_vm2, %v9324_v45 }
 0x19d   : > { %6957 = vmatprep.mubr.msk.f32.mxu0 %vm1372_vm2, %v9368_v9  ;;  %v12179_v9 = vld [vmem:[#allocation51_spill] sm:$0xff] }
 0x1a0   : > { %6958 = vmatmul.mubr.msk.f32.gmra.mrb[94].mxu0 %vm1372_vm2, %v9390_v24  ;;  %v12180_v24 = vld [vmem:[#allocation53_spill] sm:$0xff] }
 0x1a1   : > { %6960 = vmatprep.mubr.msk.f32.mxu0 %vm1372_vm2, %v9429_v57 }
 0x1a2   : > { %v10002_v4 = vpop.f32.mrb[16].mxu0 }
 0x1a3   : > { %v1814_v5 = vpop.f32.mrb[17].mxu0 }
 0x1a4   : > { %6961 = vmatmul.mubr.msk.f32.gmra.mrb[96].mxu0 %vm1372_vm2, %v12176_v32 }
 0x1a5   : > { %6963 = vmatprep.mubr.msk.f32.mxu0 %vm1372_vm2, %v12177_v38 }
 0x1a7   : > { %v10008_v50 = vpop.f32.mrb[18].mxu0 }
 0x1a8   : > { %v1819_v45 = vpop.f32.mrb[19].mxu0  ;;  %6964 = vmatmul.mubr.msk.f32.gmra.mrb[98].mxu0 %vm1372_vm2, %v12178_v14 }
 0x1a9   : > { %6966 = vmatprep.mubr.msk.f32.mxu0 %vm1372_vm2, %v12179_v9 }
 0x1ac   : > { %6967 = vmatmul.mubr.msk.f32.gmra.mrb[100].mxu0 %vm1372_vm2, %v12180_v24 }
 0x1ad   : > { %6969 = vmatprep.mubr.msk.f32.mxu0 %vm1372_vm2, %v9612_v26 }
 0x1ae   : > { %v10018_v57 = vpop.f32.mrb[20].mxu0 }
 0x1af   : > { %v1824_v1 = vpop.f32.mrb[21].mxu0 }
 0x1b0   : > { %6970 = vmatmul.mubr.msk.f32.gmra.mrb[102].mxu0 %vm1372_vm2, %v9634_v30 }
 0x1b1   : > { %6972 = vmatprep.mubr.msk.f32.mxu0 %vm1372_vm2, %v9670_v0 }
 0x1b3   : > { %v10024_v16 = vpop.f32.mrb[22].mxu0 }
 0x1b4   : > { %v1829_v40 = vpop.f32.mrb[23].mxu0  ;;  %6973 = vmatmul.mubr.msk.f32.gmra.mrb[104].mxu0 %vm1372_vm2, %v9687_v21 }
 0x1ba   : > { %v10028_v63 = vpop.f32.mrb[24].mxu0 }
 0x1bb   : > { %v1834_v41 = vpop.f32.mrb[25].mxu0 }
 0x1bf   : > { %v10030_v17 = vpop.f32.mrb[26].mxu0 }
 0x1c0   : > { %v1839_v26 = vpop.f32.mrb[27].mxu0 }
 0x1c6   : > { %v10032_v48 = vpop.f32.mrb[28].mxu0 }
 0x1c7   : > { %v1844_v61 = vpop.f32.mrb[29].mxu0 }
 0x1cb   : > { %v10034_v12 = vpop.f32.mrb[30].mxu0 }
 0x1cc   : > { %v1849_v30 = vpop.f32.mrb[31].mxu0 }
 0x1d2   : > { %v10036_v49 = vpop.f32.mrb[32].mxu0 }
 0x1d3   : > { %v1854_v0 = vpop.f32.mrb[33].mxu0 }
 0x1d7   : > { %v10038_v33 = vpop.f32.mrb[34].mxu0 }
 0x1d8   : > { %v1859_v42 = vpop.f32.mrb[35].mxu0 }
 0x1de   : > { %v10040_v8 = vpop.f32.mrb[36].mxu0 }
 0x1df   : > { %v1864_v21 = vpop.f32.mrb[37].mxu0 }
 0x1e3   : > { %v10042_v58 = vpop.f32.mrb[38].mxu0 }
 0x1e4   : > { %v1869_v52 = vpop.f32.mrb[39].mxu0 }
 0x1ea   : > { %v10044_v15 = vpop.f32.mrb[40].mxu0 }
 0x1eb   : > { %v1874_v29 = vpop.f32.mrb[41].mxu0 }
 0x1ef   : > { %v10046_v20 = vpop.f32.mrb[42].mxu0 }
 0x1f0   : > { %v1879_v23 = vpop.f32.mrb[43].mxu0 }
 0x1f6   : > { %v10048_v34 = vpop.f32.mrb[44].mxu0 }
 0x1f7   : > { %v1884_v11 = vpop.f32.mrb[45].mxu0 }
 0x1fb   : > { %v10050_v18 = vpop.f32.mrb[46].mxu0 }
 0x1fc   : > { %v1889_v56 = vpop.f32.mrb[47].mxu0 }
 0x202   : > { %v10052_v25 = vpop.f32.mrb[48].mxu0 }
 0x203   : > { %v1894_v5 = vpop.f32.mrb[49].mxu0 }
 0x207   : > { %v10054_v32 = vpop.f32.mrb[50].mxu0 }
 0x208   : > { %v1899_v38 = vpop.f32.mrb[51].mxu0 }
 0x20e   : > { %v10056_v45 = vpop.f32.mrb[52].mxu0 }
 0x20f   : > { %v1904_v14 = vpop.f32.mrb[53].mxu0 }
 0x213   : > { %v10058_v9 = vpop.f32.mrb[54].mxu0 }
 0x214   : > { %v1909_v24 = vpop.f32.mrb[55].mxu0 }
 0x215   : > { %v10075_v24 = vld [vmem:[%s11950_s3] ss:$0 sm:$0xff] }
 0x21a   : > { %v10060_v1 = vpop.f32.mrb[56].mxu0 }
 0x21b   : > { %v1914_v40 = vpop.f32.mrb[57].mxu0 }
 0x21f   : > { %v10062_v41 = vpop.f32.mrb[58].mxu0 }
 0x220   : > { %v1919_v26 = vpop.f32.mrb[59].mxu0 }
 0x221   : > { %v1788_v26 = vadd.f32 %v10075_v24, %v9960_v46 }
 0x226   : > { %v10064_v61 = vpop.f32.mrb[60].mxu0 }
 0x227   : > { %v1924_v30 = vpop.f32.mrb[61].mxu0 }
 0x228   : > { %v1783_v30 = vadd.f32 %v10075_v24, %v9954_v47  ;;  %v1808_v47 = vadd.f32 %v10075_v24, %v9992_v60 }
 0x22b   : > { %v10066_v0 = vpop.f32.mrb[62].mxu0 }
 0x22c   : > { %v1929_v42 = vpop.f32.mrb[63].mxu0 }
 0x232   : > { %v10068_v21 = vpop.f32.mrb[64].mxu0 }
 0x233   : > { %v1934_v52 = vpop.f32.mrb[65].mxu0 }
 0x237   : > { %v10070_v29 = vpop.f32.mrb[66].mxu0 }
 0x238   : > { %v1939_v23 = vpop.f32.mrb[67].mxu0 }
 0x23e   : > { %v1942_v11 = vpop.f32.mrb[68].mxu0 }
 0x23f   : > { %v1944_v56 = vpop.f32.mrb[69].mxu0 }
 0x240   : > { %v1798_v56 = vadd.f32 %v10075_v24, %v9976_v53  ;;  %v2291_v53 = vpop.permute.xlu1 %2290 }
 0x243   : > { %v1947_v5 = vpop.f32.mrb[70].mxu0 }
 0x244   : > { %v1949_v38 = vpop.f32.mrb[71].mxu0  ;;  %v1793_v5 = vadd.f32 %v10075_v24, %v9970_v7  ;;  %v1818_v7 = vadd.f32 %v10075_v24, %v10008_v50  ;;  %v6301_v50 = vld [vmem:[%s11951_s4 + $0x8] sm:$0x7] }
 0x245   : > { %7484 = vmatprep.subr.msk.mxu1 %vm3137_vm5, %v6301_v50 }
 0x246   : > { %7485 = vmatpush3.msk.msra.mxu1 %vm3137_vm5, %v6301_v50 }
 0x247   : > { %v6926_v14 = vpop.f32.mrb[72].mxu0 }
 0x248   : > { %v2017_v40 = vpop.f32.mrb[73].mxu0 }
 0x24b   : > { %v6929_v42 = vpop.f32.mrb[74].mxu0 }
 0x24c   : > { %v10081_v52 = vadd.f32 %v6929_v42, %v1788_v26  ;;  %v2027_v23 = vpop.f32.mrb[75].mxu0  ;;  %v1803_v26 = vadd.f32 %v10075_v24, %v9986_v55  ;;  %v1828_v55 = vadd.f32 %v10075_v24, %v10024_v16 }
 0x24d   : > { %v10083_v11 = vadd.f32 %v2027_v23, %v1783_v30 }
 0x24e   : > { %12181 = vst [vmem:[#allocation11_spill] sm:$0xff] %v10081_v52 }
 0x24f   : > { %12182 = vst [vmem:[#allocation13_spill] sm:$0xff] %v10083_v11  ;;  %v6932_v38 = vpop.f32.mrb[76].mxu0 }
 0x250   : > { %v10089_v14 = vadd.f32 %v6932_v38, %v1798_v56  ;;  %v2037_v40 = vpop.f32.mrb[77].mxu0  ;;  %v2289_v56 = vpop.permute.xlu0 %2288 }
 0x251   : > { %v10091_v46 = vadd.f32 %v2037_v40, %v1793_v5  ;;  %v1813_v5 = vadd.f32 %v10075_v24, %v10002_v4 }
 0x252   : > { %12183 = vst [vmem:[#allocation15_spill] sm:$0xff] %v10089_v14 }
 0x253   : > { %12184 = vst [vmem:[#allocation17_spill] sm:$0xff] %v10091_v46  ;;  %v6935_v30 = vpop.f32.mrb[78].mxu0 }
 0x254   : > { %v10097_v42 = vadd.f32 %v6935_v30, %v1808_v47  ;;  %v2047_v23 = vpop.f32.mrb[79].mxu0  ;;  %v1823_v47 = vadd.f32 %v10075_v24, %v10018_v57  ;;  %v2293_v4 = vpop.permute.xlu0 %2292  ;;  %v1838_v57 = vadd.f32 %v10075_v24, %v10030_v17  ;;  %v1848_v17 = vadd.f32 %v10075_v24, %v10034_v12 }
 0x255   : > { %v10099_v37 = vadd.f32 %v2047_v23, %v1803_v26  ;;  %v2295_v26 = vpop.permute.xlu1 %2294 }
 0x256   : > { %12185 = vst [vmem:[#allocation19_spill] sm:$0xff] %v10097_v42 }
 0x257   : > { %12186 = vst [vmem:[#allocation21_spill] sm:$0xff] %v10099_v37  ;;  %v6938_v38 = vpop.f32.mrb[80].mxu0 }
 0x258   : > { %v10105_v40 = vadd.f32 %v6938_v38, %v1818_v7  ;;  %v2057_v60 = vpop.f32.mrb[81].mxu0  ;;  %v1833_v38 = vadd.f32 %v10075_v24, %v10028_v63 }
 0x259   : > { %v10107_v51 = vadd.f32 %v2057_v60, %v1813_v5 }
 0x25a   : > { %12187 = vst [vmem:[#allocation23_spill] sm:$0xff] %v10105_v40 }
 0x25b   : > { %12188 = vst [vmem:[#allocation25_spill] sm:$0xff] %v10107_v51  ;;  %v6941_v30 = vpop.f32.mrb[82].mxu0 }
 0x25c   : > { %v10116_v23 = vadd.f32 %v6941_v30, %v1828_v55  ;;  %v2067_v7 = vpop.f32.mrb[83].mxu0 }
 0x25d   : > { %v10119_v5 = vadd.f32 %v2067_v7, %v1823_v47  ;;  %v2299_v7 = vpop.permute.xlu1 %2298 }
 0x25e   : > { %12189 = vst [vmem:[#allocation27_spill] sm:$0xff] %v10116_v23  ;;  %v10125_v16 = vadd.f32 %v2291_v53, %v10116_v23  ;;  %v2297_v53 = vpop.permute.xlu0 %2296 }
 0x25f   : > { %12190 = vst [vmem:[#allocation29_spill] sm:$0xff] %v10119_v5  ;;  %v10130_v60 = vadd.f32 %v2289_v56, %v10119_v5  ;;  %v6944_v55 = vpop.f32.mrb[84].mxu0  ;;  %v1843_v56 = vadd.f32 %v10075_v24, %v10032_v48  ;;  %v1858_v48 = vadd.f32 %v10075_v24, %v10038_v33 }
 0x260   : > { %v2740_v30 = vrot.slane %v10125_v16, 7  ;;  %v10133_v43 = vadd.f32 %v6944_v55, %v1838_v57  ;;  %v2077_v47 = vpop.f32.mrb[85].mxu0 }
 0x261   : > { %v2739_v50 = vrot.slane %v10130_v60, 7  ;;  %v10136_v36 = vadd.f32 %v2077_v47, %v1833_v38 }
 0x262   : > { %12191 = vst [vmem:[#allocation31_spill] sm:$0xff] %v10133_v43  ;;  %v10141_v63 = vadd.f32 %v2295_v26, %v10133_v43  ;;  %2812 = vrot.lane.b32.xlu0 %v2740_v30, %s8595_s16  ;;  %v2301_v54 = vpop.permute.xlu0 %2300 }
 0x263   : > { %12192 = vst [vmem:[#allocation33_spill] sm:$0xff] %v10136_v36  ;;  %v10147_v57 = vadd.f32 %v2293_v4, %v10136_v36  ;;  %v6947_v55 = vpop.f32.mrb[86].mxu0  ;;  %v2741_v38 = vsel %vm2723_vm6, %v2739_v50, %v2740_v30  ;;  %v1853_v4 = vadd.f32 %v10075_v24, %v10036_v49  ;;  %v2303_v30 = vpop.permute.xlu1 %2302  ;;  %v1868_v49 = vadd.f32 %v10075_v24, %v10042_v58 }
 0x264   : > { %v10150_v47 = vadd.f32 %v6947_v55, %v1848_v17  ;;  %v2087_v35 = vpop.f32.mrb[87].mxu0  ;;  %2810 = vrot.lane.b32.xlu1 %v2741_v38, %s8595_s16  ;;  %v2743_v12 = vrot.slane %v10141_v63, 7 }
 0x265   : > { %v2742_v26 = vrot.slane %v10147_v57, 7  ;;  %v10155_v10 = vadd.f32 %v2087_v35, %v1843_v56 }
 0x266   : > { %12193 = vst [vmem:[#allocation35_spill] sm:$0xff] %v10150_v47  ;;  %2808 = vrot.lane.b32.xlu0 %v2739_v50, %s8595_s16  ;;  %v10163_v17 = vadd.f32 %v2299_v7, %v10150_v47  ;;  %v1863_v7 = vadd.f32 %v10075_v24, %v10040_v8  ;;  %v1878_v8 = vadd.f32 %v10075_v24, %v10046_v20 }
 0x267   : > { %12194 = vst [vmem:[#allocation45_spill] sm:$0xff] %v10155_v10  ;;  %v10166_v55 = vadd.f32 %v2297_v53, %v10155_v10  ;;  %v6950_v38 = vpop.f32.mrb[88].mxu0  ;;  %v2744_v50 = vsel %vm2723_vm6, %v2742_v26, %v2743_v12  ;;  %v1888_v20 = vadd.f32 %v10075_v24, %v10050_v18 }
 0x268   : > { %v10168_v19 = vadd.f32 %v6950_v38, %v1858_v48  ;;  %v2097_v35 = vpop.f32.mrb[89].mxu0  ;;  %2818 = vrot.lane.b32.xlu1 %v2743_v12, %s8595_s16  ;;  %v2746_v53 = vrot.slane %v10163_v17, 7 }
 0x269   : > { %v10171_v33 = vadd.f32 %v2097_v35, %v1853_v4  ;;  %v2745_v56 = vrot.slane %v10166_v55, 7  ;;  %v2307_v4 = vpop.permute.xlu1 %2306 }
 0x26a   : > { %12195 = vst [vmem:[#allocation47_spill] sm:$0xff] %v10168_v19  ;;  %2816 = vrot.lane.b32.xlu0 %v2744_v50, %s8595_s16  ;;  %v10185_v12 = vadd.f32 %v2303_v30, %v10168_v19  ;;  %v2305_v50 = vpop.permute.xlu0 %2304 }
 0x26b   : > { %12196 = vst [vmem:[#allocation49_spill] sm:$0xff] %v10171_v33  ;;  %v6953_v48 = vpop.f32.mrb[90].mxu0  ;;  %v10188_v58 = vadd.f32 %v2301_v54, %v10171_v33 }
 0x26c   : > { %v10181_v38 = vadd.f32 %v6953_v48, %v1868_v49  ;;  %v2107_v59 = vpop.f32.mrb[91].mxu0  ;;  %2814 = vrot.lane.b32.xlu1 %v2742_v26, %s8595_s16  ;;  %v1873_v49 = vadd.f32 %v10075_v24, %v10044_v15  ;;  %v2747_v26 = vsel %vm2723_vm6, %v2745_v56, %v2746_v53  ;;  %v1883_v15 = vadd.f32 %v10075_v24, %v10048_v34 }
 0x26d   : > { %v10190_v35 = vadd.f32 %v2107_v59, %v1863_v7  ;;  %v2749_v59 = vrot.slane %v10185_v12, 7  ;;  %v2748_v54 = vrot.slane %v10188_v58, 7  ;;  %v1898_v34 = vadd.f32 %v10075_v24, %v10054_v32 }
 0x26e   : > { %12197 = vst [vmem:[#allocation51_spill] sm:$0xff] %v10181_v38  ;;  %2824 = vrot.lane.b32.xlu0 %v2746_v53, %s8595_s16  ;;  %v2311_v53 = vpop.permute.xlu1 %2310  ;;  %v2309_v3 = vpop.permute.xlu0 %2308 }
 0x26f   : > { %12198 = vst [vmem:[#allocation53_spill] sm:$0xff] %v10190_v35  ;;  %v6956_v48 = vpop.f32.mrb[92].mxu0 }
 0x270   : > { %v10198_v27 = vadd.f32 %v6956_v48, %v1878_v8  ;;  %v2117_v30 = vpop.f32.mrb[93].mxu0  ;;  %2822 = vrot.lane.b32.xlu1 %v2747_v26, %s8595_s16  ;;  %v10211_v8 = vadd.f32 %v2307_v4, %v10181_v38  ;;  %v10214_v48 = vadd.f32 %v2305_v50, %v10190_v35  ;;  %v1893_v4 = vadd.f32 %v10075_v24, %v10052_v25 }
 0x271   : > { %v10203_v7 = vadd.f32 %v2117_v30, %v1873_v49  ;;  %v1908_v25 = vadd.f32 %v10075_v24, %v10058_v9  ;;  %v1918_v9 = vadd.f32 %v10075_v24, %v10062_v41 }
 0x272   : > { %12199 = vst [vmem:[#allocation55_spill] sm:$0xff] %v10198_v27  ;;  %2820 = vrot.lane.b32.xlu0 %v2745_v56, %s8595_s16  ;;  %v2750_v56 = vsel %vm2723_vm6, %v2748_v54, %v2749_v59  ;;  %v2752_v50 = vrot.slane %v10211_v8, 7  ;;  %v2751_v30 = vrot.slane %v10214_v48, 7 }
 0x273   : > { %12200 = vst [vmem:[#allocation56_spill] sm:$0xff] %v10203_v7  ;;  %v6959_v26 = vpop.f32.mrb[94].mxu0  ;;  %v10236_v32 = vadd.f32 %v2309_v3, %v10203_v7 }
 0x274   : > { %v10216_v13 = vadd.f32 %v6959_v26, %v1888_v20  ;;  %v2127_v49 = vpop.f32.mrb[95].mxu0  ;;  %2830 = vrot.lane.b32.xlu1 %v2749_v59, %s8595_s16  ;;  %v10233_v59 = vadd.f32 %v2311_v53, %v10198_v27 }
 0x275   : > { %v10219_v18 = vadd.f32 %v2127_v49, %v1883_v15  ;;  %v2315_v15 = vpop.permute.xlu1 %2314 }
 0x276   : > { %12201 = vst [vmem:[#allocation57_spill] sm:$0xff] %v10216_v13  ;;  %2828 = vrot.lane.b32.xlu0 %v2750_v56, %s8595_s16  ;;  %v2313_v56 = vpop.permute.xlu0 %2312  ;;  %v2755_v3 = vrot.slane %v10233_v59, 7 }
 0x277   : > { %12202 = vst [vmem:[#allocation58_spill] sm:$0xff] %v10219_v18  ;;  %v6962_v20 = vpop.f32.mrb[96].mxu0 }
 0x278   : > { %v10229_v26 = vadd.f32 %v6962_v20, %v1898_v34  ;;  %v2137_v28 = vpop.f32.mrb[97].mxu0  ;;  %2826 = vrot.lane.b32.xlu1 %v2748_v54, %s8595_s16  ;;  %v1903_v34 = vadd.f32 %v10075_v24, %v10056_v45  ;;  %v2753_v54 = vsel %vm2723_vm6, %v2751_v30, %v2752_v50  ;;  %v1913_v45 = vadd.f32 %v10075_v24, %v10060_v1 }
 0x279   : > { %v10238_v49 = vadd.f32 %v2137_v28, %v1893_v4  ;;  %v2754_v28 = vrot.slane %v10236_v32, 7  ;;  %v1928_v1 = vadd.f32 %v10075_v24, %v10066_v0 }
 0x27a   : > { %12203 = vst [vmem:[#allocation59_spill] sm:$0xff] %v10229_v26  ;;  %2836 = vrot.lane.b32.xlu0 %v2752_v50, %s8595_s16  ;;  %v2319_v50 = vpop.permute.xlu1 %2318  ;;  %v2317_v7 = vpop.permute.xlu0 %2316 }
 0x27b   : > { %12204 = vst [vmem:[#allocation60_spill] sm:$0xff] %v10238_v49  ;;  %v6965_v20 = vpop.f32.mrb[98].mxu0  ;;  %v10284_v0 = vadd.f32 %v2317_v7, %v10238_v49 }
 0x27c   : > { %v10246_v39 = vadd.f32 %v6965_v20, %v1908_v25  ;;  %v2147_v53 = vpop.f32.mrb[99].mxu0  ;;  %2834 = vrot.lane.b32.xlu1 %v2753_v54, %s8595_s16  ;;  %v10259_v25 = vadd.f32 %v2315_v15, %v10216_v13  ;;  %v10262_v20 = vadd.f32 %v2313_v56, %v10219_v18  ;;  %v1923_v15 = vadd.f32 %v10075_v24, %v10064_v61 }
 0x27d   : > { %v10251_v4 = vadd.f32 %v2147_v53, %v1903_v34  ;;  %v1938_v61 = vadd.f32 %v10075_v24, %v10070_v29 }
 0x27e   : > { %12205 = vst [vmem:[#allocation61_spill] sm:$0xff] %v10246_v39  ;;  %2832 = vrot.lane.b32.xlu0 %v2751_v30, %s8595_s16  ;;  %v2756_v30 = vsel %vm2723_vm6, %v2754_v28, %v2755_v3  ;;  %v2758_v56 = vrot.slane %v10259_v25, 7  ;;  %v2757_v53 = vrot.slane %v10262_v20, 7 }
 0x27f   : > { %12206 = vst [vmem:[#allocation62_spill] sm:$0xff] %v10251_v4  ;;  %v6968_v54 = vpop.f32.mrb[100].mxu0 }
 0x280   : > { %v10264_v27 = vadd.f32 %v6968_v54, %v1918_v9  ;;  %v2157_v34 = vpop.f32.mrb[101].mxu0  ;;  %2842 = vrot.lane.b32.xlu1 %v2755_v3, %s8595_s16  ;;  %v10281_v3 = vadd.f32 %v2319_v50, %v10229_v26 }
 0x281   : > { %v10267_v41 = vadd.f32 %v2157_v34, %v1913_v45  ;;  %v2323_v34 = vpop.permute.xlu1 %2322 }
 0x282   : > { %12207 = vst [vmem:[#allocation63_spill] sm:$0xff] %v10264_v27  ;;  %2840 = vrot.lane.b32.xlu0 %v2756_v30, %s8595_s16  ;;  %v2321_v30 = vpop.permute.xlu0 %2320  ;;  %v2761_v7 = vrot.slane %v10281_v3, 7 }
 0x283   : > { %12208 = vst [vmem:[#allocation64_spill] sm:$0xff] %v10267_v41  ;;  %v6971_v9 = vpop.f32.mrb[102].mxu0 }
 0x284   : > { %v10277_v54 = vadd.f32 %v6971_v9, %v1928_v1  ;;  %v2167_v18 = vpop.f32.mrb[103].mxu0  ;;  %2838 = vrot.lane.b32.xlu1 %v2754_v28, %s8595_s16  ;;  %v1933_v1 = vadd.f32 %v10075_v24, %v10068_v21  ;;  %v2759_v28 = vsel %vm2723_vm6, %v2757_v53, %v2758_v56  ;;  %v10306_v21 = vadd.f32 %v2321_v30, %v10251_v4  ;;  %v2229_v4 = vld [vmem:[%s9790_s10 + $0x108] sm:$0xff] }
 0x285   : > { %v10286_v45 = vadd.f32 %v2167_v18, %v1923_v15  ;;  %v2760_v18 = vrot.slane %v10284_v0, 7  ;;  %v10303_v15 = vadd.f32 %v2323_v34, %v10246_v39  ;;  %v2327_v24 = vpop.permute.xlu1 %2326 }
 0x286   : > { %12209 = vst [vmem:[#allocation65_spill] sm:$0xff] %v10277_v54  ;;  %2848 = vrot.lane.b32.xlu0 %v2758_v56, %s8595_s16  ;;  %v2325_v56 = vpop.permute.xlu0 %2324 }
 0x287   : > { %12210 = vst [vmem:[#allocation66_spill] sm:$0xff] %v10286_v45  ;;  %v6974_v9 = vpop.f32.mrb[104].mxu0  ;;  %v10318_v34 = vadd.f32 %v2325_v56, %v10267_v41 }
 0x288   : > { %v10294_v50 = vadd.f32 %v6974_v9, %v1938_v61  ;;  %v2177_v26 = vpop.f32.mrb[105].mxu0  ;;  %2846 = vrot.lane.b32.xlu1 %v2759_v28, %s8595_s16  ;;  %v2762_v61 = vsel %vm2723_vm6, %v2760_v18, %v2761_v7  ;;  %v2764_v9 = vrot.slane %v10303_v15, 7 }
 0x289   : > { %v10299_v29 = vadd.f32 %v2177_v26, %v1933_v1  ;;  %v2763_v26 = vrot.slane %v10306_v21, 7  ;;  %v2331_v30 = vpop.permute.xlu1 %2330 }
 0x28a   : > { %12211 = vst [vmem:[#allocation67_spill] sm:$0xff] %v10294_v50  ;;  %2844 = vrot.lane.b32.xlu0 %v2757_v53, %s8595_s16  ;;  %v10315_v53 = vadd.f32 %v2327_v24, %v10264_v27  ;;  %v2329_v1 = vpop.permute.xlu0 %2328  ;;  %v2228_v27 = vld [vmem:[%s9790_s10 + $0x100] sm:$0xff] }
 0x28b   : > { %12212 = vst [vmem:[#allocation68_spill] sm:$0xff] %v10299_v29  ;;  %v2765_v28 = vsel %vm2723_vm6, %v2763_v26, %v2764_v9  ;;  %v10330_v24 = vadd.f32 %v2329_v1, %v10286_v45 }
 0x28c   : > { %2854 = vrot.lane.b32.xlu1 %v2761_v7, %s8595_s16  ;;  %v2767_v7 = vrot.slane %v10315_v53, 7 }
 0x28d   : > { %v2275_v56 = vpop.permute.xlu1 %2274  ;;  %v2769_v1 = vrot.slane %v10330_v24, 7 }
 0x28e   : > { %2852 = vrot.lane.b32.xlu0 %v2762_v61, %s8595_s16  ;;  %v2766_v61 = vrot.slane %v10318_v34, 7  ;;  %v2273_v41 = vpop.permute.xlu0 %2272 }
 0x290   : > { %2850 = vrot.lane.b32.xlu1 %v2760_v18, %s8595_s16  ;;  %v10327_v18 = vadd.f32 %v2331_v30, %v10277_v54  ;;  %v10350_v54 = vadd.f32 %v2273_v41, %v10083_v11 }
 0x292   : > { %2860 = vrot.lane.b32.xlu0 %v2764_v9, %s8595_s16  ;;  %v2768_v9 = vsel %vm2723_vm6, %v2766_v61, %v2767_v7  ;;  %v2770_v30 = vrot.slane %v10327_v18, 7  ;;  %v2277_v45 = vpop.permute.xlu0 %2276 }
 0x294   : > { %2858 = vrot.lane.b32.xlu1 %v2765_v28, %s8595_s16  ;;  %v2279_v28 = vpop.permute.xlu1 %2278 }
 0x295   : > { %v2381_v39 = vadd.f32 %v2279_v28, %v10089_v14 }
 0x296   : > { %2856 = vrot.lane.b32.xlu0 %v2763_v26, %s8595_s16  ;;  %v10338_v26 = vld [vmem:[%s11951_s4 + $0xc] sm:$0x7]  ;;  %v2281_v13 = vpop.permute.xlu0 %2280 }
 0x297   : > { %7128 = vmatprep.subr.msk.mxu1 %vm3137_vm5, %v10338_v26  ;;  %v2731_v41 = vrot.slane %v2381_v39, 7 }
 0x298   : > { %2866 = vrot.lane.b32.xlu1 %v2767_v7, %s8595_s16  ;;  %v2771_v7 = vsel %vm2723_vm6, %v2769_v1, %v2770_v30  ;;  %v2283_v49 = vpop.permute.xlu1 %2282 }
 0x29a   : > { %2864 = vrot.lane.b32.xlu0 %v2768_v9, %s8595_s16  ;;  %v2379_v9 = vadd.f32 %v2275_v56, %v10081_v52 }
 0x29c   : > { %2862 = vrot.lane.b32.xlu1 %v2766_v61, %s8595_s16  ;;  %v10357_v61 = vadd.f32 %v2277_v45, %v10091_v46  ;;  %v10368_v45 = vadd.f32 %v2281_v13, %v10099_v37  ;;  %v2287_v44 = vpop.permute.xlu1 %2286 }
 0x29e   : > { %2868 = vrot.lane.b32.xlu0 %v2769_v1, %s8595_s16  ;;  %v2728_v1 = vrot.slane %v2379_v9, 7  ;;  %v2730_v56 = vrot.slane %v10357_v61, 7  ;;  %v2733_v35 = vrot.slane %v10368_v45, 7 }
 0x2a0   : > { %2870 = vrot.lane.b32.xlu1 %v2771_v7, %s8595_s16  ;;  %v2727_v7 = vrot.slane %v10350_v54, 7 }
 0x2a2   : > { %2872 = vrot.lane.b32.xlu0 %v2770_v30, %s8595_s16  ;;  %v10365_v30 = vadd.f32 %v2283_v49, %v10097_v42  ;;  %v2729_v28 = vsel %vm2723_vm6, %v2727_v7, %v2728_v1  ;;  %v2385_v49 = vadd.f32 %v2287_v44, %v10105_v40 }
 0x2a4   : > { %2332 = vrot.lane.b32.xlu1 %v2228_v27, %s8594_s15  ;;  %v2285_v27 = vpop.permute.xlu0 %2284  ;;  %v12015_v31 = vrot.slane %v10365_v30, 7  ;;  %v2737_v13 = vrot.slane %v2385_v49, 7 }
 0x2a5   : > { %v10378_v38 = vadd.f32 %v2285_v27, %v10107_v51 }
 0x2a6   : > { %2334 = vrot.lane.b32.xlu0 %v2229_v4, %s8594_s15  ;;  %v2732_v4 = vsel %vm2723_vm6, %v2730_v56, %v2731_v41 }
 0x2a8   : > { %2784 = vrot.lane.b32.xlu1 %v2727_v7, %s8595_s16  ;;  %v2736_v7 = vrot.slane %v10378_v38, 7 }
 0x2aa   : > { %2786 = vrot.lane.b32.xlu0 %v2729_v28, %s8595_s16  ;;  %v2738_v44 = vsel %vm2723_vm6, %v2736_v7, %v2737_v13  ;;  %v8597_v28 = vmov 0.0  }
 0x2ab   : > { %v10392_v27 = vrot.slane %v8597_v28, 7 }
 0x2ac   : > { %2790 = vrot.lane.b32.xlu1 %v2730_v56, %s8595_s16  ;;  %v2735_v56 = vsel %vm2723_vm6, %v2733_v35, %v12015_v31  ;;  %v10433_v31 = vld [vmem:[%s11951_s4 + $0x10] sm:$0x7] }
 0x2ae   : > { %2792 = vrot.lane.b32.xlu0 %v2732_v4, %s8595_s16 }
 0x2b0   : > { %2796 = vrot.lane.b32.xlu1 %v2733_v35, %s8595_s16  ;;  %v8346_v35 = vpack.i.bf16 %v10392_v27, %v10392_v27 }
 0x2b2   : > { %2798 = vrot.lane.b32.xlu0 %v2735_v56, %s8595_s16 }
 0x2b4   : > { %2802 = vrot.lane.b32.xlu1 %v2736_v7, %s8595_s16 }
 0x2b6   : > { %2804 = vrot.lane.b32.xlu0 %v2738_v44, %s8595_s16 }
 0x2ba   : > { %2788 = vrot.lane.b32.xlu0 %v2728_v1, %s8595_s16 }
 0x2be   : > { %2794 = vrot.lane.b32.xlu0 %v2731_v41, %s8595_s16 }
 0x2c2   : > { %2806 = vrot.lane.b32.xlu0 %v2737_v13, %s8595_s16 }
 0x2c6   : > { %8347 = vrot.lane.b32.xlu0 %v8346_v35, %s8595_s16 }
 0x2ca   : > { %2880 = vrot.lane.b32.xlu0 %v10392_v27, %s8595_s16 }
 0x2ce   : > { %2884 = vrot.lane.b32.xlu0 %v10392_v27, %s8595_s16 }
 0x2d2   : > { %2592 = vrot.lane.b32.xlu0 %v2379_v9, %s8595_s16 }
 0x2d4   : > { %v2813_v1 = vpop.permute.xlu0 %2812 }
 0x2d5   : > { %v10404_v41 = vsel %vm2723_vm6, %v2813_v1, 0.0 }
 0x2d6   : > { %v10406_v4 = vpop.permute.xlu1 %2810  ;;  %2596 = vrot.lane.b32.xlu0 %v2381_v39, %s8595_s16  ;;  %v3686_v7 = vrot.slane %v10404_v41, 2 }
 0x2d7   : > { %v3684_v44 = vrot.slane %v10406_v4, 2 }
 0x2d8   : > { %v2809_v13 = vpop.permute.xlu0 %2808 }
 0x2d9   : > { %v10411_v56 = vsel %vm2723_vm6, 0.0, %v2809_v13  ;;  %v10428_v13 = vsel %vm571_vm0, %v3684_v44, %v3686_v7 }
 0x2da   : > { %12213 = vst [vmem:[#allocation69_spill] sm:$0xff] %v10411_v56  ;;  %v2819_v28 = vpop.permute.xlu1 %2818  ;;  %2600 = vrot.lane.b32.xlu0 %v10365_v30, %s8595_s16  ;;  %v3683_v9 = vrot.slane %v10411_v56, 2  ;;  %12215 = vst [vmem:[#allocation71_spill] sm:$0xff] %v10428_v13 }
 0x2db   : > { %v10418_v35 = vsel %vm2723_vm6, %v2819_v28, 0.0 }
 0x2dc   : > { %v10420_v1 = vpop.permute.xlu0 %2816  ;;  %v10423_v39 = vsel %vm571_vm0, %v3683_v9, %v3684_v44  ;;  %v3691_v9 = vrot.slane %v10418_v35, 2 }
 0x2dd   : > { %12214 = vst [vmem:[#allocation70_spill] sm:$0xff] %v10423_v39  ;;  %7095 = vmatprep.mubr.msk.f32.mxu1 %vm2686_vm7, %v10423_v39  ;;  %v3689_v62 = vrot.slane %v10420_v1, 2  ;;  %v8509_v39 = vld [vmem:[%s8724_s18 + $0x1c8] sm:$0xff] }
 0x2de   : > { %7096 = vmatmul.mubr.msk.f32.vlgmr.msra.gmra.mrb[0].mxu1 %vm2686_vm7, %v10428_v13  ;;  %v2815_v28 = vpop.permute.xlu1 %2814  ;;  %2604 = vrot.lane.b32.xlu0 %v2385_v49, %s8595_s16 }
 0x2df   : > { %v10440_v6 = vsel %vm2723_vm6, 0.0, %v2815_v28  ;;  %7129 = vmatpush3.msk.msra.mxu1 %vm3137_vm5, %v10338_v26  ;;  %v10461_v26 = vsel %vm571_vm0, %v3689_v62, %v3691_v9 }
 0x2e0   : > { %v3688_v7 = vrot.slane %v10440_v6, 2  ;;  %v2825_v44 = vpop.permute.xlu0 %2824  ;;  %7178 = vmatprep.subr.msk.mxu1 %vm3137_vm5, %v10433_v31  ;;  %12217 = vst [vmem:[#allocation73_spill] sm:$0xff] %v10461_v26 }
 0x2e1   : > { %v10449_v33 = vsel %vm2723_vm6, %v2825_v44, 0.0 }
 0x2e2   : > { %v10451_v49 = vpop.permute.xlu1 %2822  ;;  %2608 = vrot.lane.b32.xlu0 %v10125_v16, %s8595_s16  ;;  %v10456_v28 = vsel %vm571_vm0, %v3688_v7, %v3689_v62  ;;  %v3696_v44 = vrot.slane %v10449_v33, 2 }
 0x2e3   : > { %12216 = vst [vmem:[#allocation72_spill] sm:$0xff] %v10456_v28  ;;  %7098 = vmatprep.mubr.msk.f32.mxu1 %vm2686_vm7, %v10456_v28  ;;  %v3694_v16 = vrot.slane %v10451_v49, 2 }
 0x2e4   : > { %v2821_v19 = vpop.permute.xlu0 %2820  ;;  %7099 = vmatmul.mubr.msk.f32.gmra.mrb[2].mxu1 %vm2686_vm7, %v10461_v26 }
 0x2e5   : > { %v10467_v2 = vsel %vm2723_vm6, 0.0, %v2821_v19  ;;  %v10484_v19 = vsel %vm571_vm0, %v3694_v16, %v3696_v44 }
 0x2e6   : > { %v3693_v7 = vrot.slane %v10467_v2, 2  ;;  %v2831_v10 = vpop.permute.xlu1 %2830  ;;  %2612 = vrot.lane.b32.xlu0 %v10141_v63, %s8595_s16  ;;  %12219 = vst [vmem:[#allocation75_spill] sm:$0xff] %v10484_v19 }
 0x2e7   : > { %v10474_v62 = vsel %vm2723_vm6, %v2831_v10, 0.0 }
 0x2e8   : > { %v10476_v9 = vpop.permute.xlu0 %2828  ;;  %v10479_v22 = vsel %vm571_vm0, %v3693_v7, %v3694_v16  ;;  %v3701_v10 = vrot.slane %v10474_v62, 2 }
 0x2e9   : > { %12218 = vst [vmem:[#allocation74_spill] sm:$0xff] %v10479_v22  ;;  %7101 = vmatprep.mubr.msk.f32.mxu1 %vm2686_vm7, %v10479_v22  ;;  %v3699_v7 = vrot.slane %v10476_v9, 2 }
 0x2ea   : > { %7102 = vmatmul.mubr.msk.f32.gmra.mrb[4].mxu1 %vm2686_vm7, %v10484_v19  ;;  %v2827_v47 = vpop.permute.xlu1 %2826  ;;  %2616 = vrot.lane.b32.xlu0 %v10163_v17, %s8595_s16 }
 0x2eb   : > { %v10492_v63 = vsel %vm2723_vm6, 0.0, %v2827_v47  ;;  %v10509_v47 = vsel %vm571_vm0, %v3699_v7, %v3701_v10 }
 0x2ec   : > { %v3698_v36 = vrot.slane %v10492_v63, 2  ;;  %v2837_v43 = vpop.permute.xlu0 %2836  ;;  %12221 = vst [vmem:[#allocation77_spill] sm:$0xff] %v10509_v47 }
 0x2ed   : > { %v10497_v44 = vsel %vm2723_vm6, %v2837_v43, 0.0 }
 0x2ee   : > { %v10499_v16 = vpop.permute.xlu1 %2834  ;;  %2620 = vrot.lane.b32.xlu0 %v10185_v12, %s8595_s16  ;;  %v10504_v17 = vsel %vm571_vm0, %v3698_v36, %v3699_v7  ;;  %v3706_v43 = vrot.slane %v10497_v44, 2 }
 0x2ef   : > { %12220 = vst [vmem:[#allocation76_spill] sm:$0xff] %v10504_v17  ;;  %7104 = vmatprep.mubr.msk.f32.mxu1 %vm2686_vm7, %v10504_v17  ;;  %v3704_v12 = vrot.slane %v10499_v16, 2 }
 0x2f0   : > { %v2833_v5 = vpop.permute.xlu0 %2832  ;;  %7105 = vmatmul.mubr.msk.f32.gmra.mrb[6].mxu1 %vm2686_vm7, %v10509_v47 }
 0x2f1   : > { %v10515_v23 = vsel %vm2723_vm6, 0.0, %v2833_v5  ;;  %v10532_v5 = vsel %vm571_vm0, %v3704_v12, %v3706_v43 }
 0x2f2   : > { %v3703_v36 = vrot.slane %v10515_v23, 2  ;;  %v2843_v51 = vpop.permute.xlu1 %2842  ;;  %2624 = vrot.lane.b32.xlu0 %v10211_v8, %s8595_s16  ;;  %12223 = vst [vmem:[#allocation79_spill] sm:$0xff] %v10532_v5 }
 0x2f3   : > { %v10522_v10 = vsel %vm2723_vm6, %v2843_v51, 0.0 }
 0x2f4   : > { %v10524_v7 = vpop.permute.xlu0 %2840  ;;  %v10527_v40 = vsel %vm571_vm0, %v3703_v36, %v3704_v12  ;;  %v3711_v51 = vrot.slane %v10522_v10, 2 }
 0x2f5   : > { %12222 = vst [vmem:[#allocation78_spill] sm:$0xff] %v10527_v40  ;;  %7107 = vmatprep.mubr.msk.f32.mxu1 %vm2686_vm7, %v10527_v40  ;;  %v3709_v36 = vrot.slane %v10524_v7, 2 }
 0x2f6   : > { %7108 = vmatmul.mubr.msk.f32.gmra.mrb[8].mxu1 %vm2686_vm7, %v10532_v5  ;;  %v2839_v37 = vpop.permute.xlu1 %2838  ;;  %2628 = vrot.lane.b32.xlu0 %v10233_v59, %s8595_s16 }
 0x2f7   : > { %v10540_v8 = vsel %vm2723_vm6, 0.0, %v2839_v37  ;;  %v10557_v37 = vsel %vm571_vm0, %v3709_v36, %v3711_v51 }
 0x2f8   : > { %v3708_v42 = vrot.slane %v10540_v8, 2  ;;  %v2849_v46 = vpop.permute.xlu0 %2848  ;;  %12225 = vst [vmem:[#allocation81_spill] sm:$0xff] %v10557_v37 }
 0x2f9   : > { %v10545_v43 = vsel %vm2723_vm6, %v2849_v46, 0.0 }
 0x2fa   : > { %v10547_v12 = vpop.permute.xlu1 %2846  ;;  %2632 = vrot.lane.b32.xlu0 %v10259_v25, %s8595_s16  ;;  %v10552_v59 = vsel %vm571_vm0, %v3708_v42, %v3709_v36  ;;  %v3716_v46 = vrot.slane %v10545_v43, 2 }
 0x2fb   : > { %12224 = vst [vmem:[#allocation80_spill] sm:$0xff] %v10552_v59  ;;  %7110 = vmatprep.mubr.msk.f32.mxu1 %vm2686_vm7, %v10552_v59  ;;  %v3714_v25 = vrot.slane %v10547_v12, 2 }
 0x2fc   : > { %v2845_v14 = vpop.permute.xlu0 %2844  ;;  %7111 = vmatmul.mubr.msk.f32.gmra.mrb[10].mxu1 %vm2686_vm7, %v10557_v37 }
 0x2fd   : > { %v10563_v11 = vsel %vm2723_vm6, 0.0, %v2845_v14  ;;  %v10580_v14 = vsel %vm571_vm0, %v3714_v25, %v3716_v46 }
 0x2fe   : > { %v3713_v42 = vrot.slane %v10563_v11, 2  ;;  %v2855_v52 = vpop.permute.xlu1 %2854  ;;  %2636 = vrot.lane.b32.xlu0 %v10281_v3, %s8595_s16  ;;  %12227 = vst [vmem:[#allocation83_spill] sm:$0xff] %v10580_v14 }
 0x2ff   : > { %v10570_v51 = vsel %vm2723_vm6, %v2855_v52, 0.0 }
 0x300   : > { %v10572_v36 = vpop.permute.xlu0 %2852  ;;  %v10575_v37 = vsel %vm571_vm0, %v3713_v42, %v3714_v25  ;;  %v3721_v52 = vrot.slane %v10570_v51, 2 }
 0x301   : > { %12226 = vst [vmem:[#allocation82_spill] sm:$0xff] %v10575_v37  ;;  %7113 = vmatprep.mubr.msk.f32.mxu1 %vm2686_vm7, %v10575_v37  ;;  %v3719_v42 = vrot.slane %v10572_v36, 2 }
 0x302   : > { %7114 = vmatmul.mubr.msk.f32.gmra.mrb[12].mxu1 %vm2686_vm7, %v10580_v14  ;;  %v2851_v59 = vpop.permute.xlu1 %2850  ;;  %2640 = vrot.lane.b32.xlu0 %v10303_v15, %s8595_s16 }
 0x303   : > { %v10588_v3 = vsel %vm2723_vm6, 0.0, %v2851_v59  ;;  %v10605_v59 = vsel %vm571_vm0, %v3719_v42, %v3721_v52 }
 0x304   : > { %v3718_v5 = vrot.slane %v10588_v3, 2  ;;  %v2861_v37 = vpop.permute.xlu0 %2860  ;;  %12230 = vst [vmem:[#allocation86_spill] sm:$0xff] %v10605_v59 }
 0x305   : > { %v10593_v46 = vsel %vm2723_vm6, %v2861_v37, 0.0 }
 0x306   : > { %12228 = vst [vmem:[#allocation84_spill] sm:$0xff] %v10593_v46  ;;  %v10595_v25 = vpop.permute.xlu1 %2858  ;;  %2644 = vrot.lane.b32.xlu0 %v10315_v53, %s8595_s16  ;;  %v10600_v15 = vsel %vm571_vm0, %v3718_v5, %v3719_v42  ;;  %v3726_v37 = vrot.slane %v10593_v46, 2 }
 0x307   : > { %12229 = vst [vmem:[#allocation85_spill] sm:$0xff] %v10600_v15  ;;  %7116 = vmatprep.mubr.msk.f32.mxu1 %vm2686_vm7, %v10600_v15  ;;  %v3724_v53 = vrot.slane %v10595_v25, 2 }
 0x308   : > { %v2857_v14 = vpop.permute.xlu0 %2856  ;;  %7117 = vmatmul.mubr.msk.f32.gmra.mrb[14].mxu1 %vm2686_vm7, %v10605_v59 }
 0x309   : > { %v10611_v40 = vsel %vm2723_vm6, 0.0, %v2857_v14  ;;  %v10628_v14 = vsel %vm571_vm0, %v3724_v53, %v3726_v37 }
 0x30a   : > { %v3723_v5 = vrot.slane %v10611_v40, 2  ;;  %v2867_v47 = vpop.permute.xlu1 %2866  ;;  %2648 = vrot.lane.b32.xlu0 %v10327_v18, %s8595_s16  ;;  %12233 = vst [vmem:[#allocation89_spill] sm:$0xff] %v10628_v14 }
 0x30b   : > { %v10618_v52 = vsel %vm2723_vm6, %v2867_v47, 0.0 }
 0x30c   : > { %12231 = vst [vmem:[#allocation87_spill] sm:$0xff] %v10618_v52  ;;  %v10620_v42 = vpop.permute.xlu0 %2864  ;;  %v10623_v59 = vsel %vm571_vm0, %v3723_v5, %v3724_v53  ;;  %v3731_v18 = vrot.slane %v10618_v52, 2 }
 0x30d   : > { %12232 = vst [vmem:[#allocation88_spill] sm:$0xff] %v10623_v59  ;;  %7119 = vmatprep.mubr.msk.f32.mxu1 %vm2686_vm7, %v10623_v59  ;;  %v3729_v17 = vrot.slane %v10620_v42, 2 }
 0x30e   : > { %7120 = vmatmul.mubr.msk.f32.gmra.mrb[16].mxu1 %vm2686_vm7, %v10628_v14  ;;  %v2863_v15 = vpop.permute.xlu1 %2862 }
 0x30f   : > { %v10634_v47 = vsel %vm2723_vm6, 0.0, %v2863_v15  ;;  %v10650_v15 = vsel %vm571_vm0, %v3729_v17, %v3731_v18 }
 0x310   : > { %v3728_v5 = vrot.slane %v10634_v47, 2  ;;  %v2869_v19 = vpop.permute.xlu0 %2868  ;;  %12235 = vst [vmem:[#allocation91_spill] sm:$0xff] %v10650_v15 }
 0x311   : > { %v10639_v22 = vsel %vm2723_vm6, 0.0, %v2869_v19 }
 0x312   : > { %v3733_v37 = vrot.slane %v10639_v22, 2  ;;  %v10642_v53 = vpop.permute.xlu1 %2870  ;;  %v10645_v14 = vsel %vm571_vm0, %v3728_v5, %v3729_v17 }
 0x313   : > { %12234 = vst [vmem:[#allocation90_spill] sm:$0xff] %v10645_v14  ;;  %7122 = vmatprep.mubr.msk.f32.mxu1 %vm2686_vm7, %v10645_v14  ;;  %v3734_v59 = vrot.slane %v10642_v53, 2 }
 0x314   : > { %v2873_v26 = vpop.permute.xlu0 %2872  ;;  %7123 = vmatmul.mubr.msk.f32.gmra.mrb[18].mxu1 %vm2686_vm7, %v10650_v15 }
 0x315   : > { %v10656_v19 = vsel %vm2723_vm6, %v2873_v26, 0.0  ;;  %v10659_v5 = vsel %vm571_vm0, %v3733_v37, %v3734_v59 }
 0x316   : > { %12236 = vst [vmem:[#allocation92_spill] sm:$0xff] %v10656_v19  ;;  %12237 = vst [vmem:[#allocation93_spill] sm:$0xff] %v10659_v5  ;;  %v3736_v28 = vrot.slane %v10656_v19, 2  ;;  %7125 = vmatprep.mubr.msk.f32.mxu1 %vm2686_vm7, %v10659_v5  ;;  %v2333_v17 = vpop.permute.xlu1 %2332  ;;  %v719_v19 = vrot.slane %v8509_v39, 2  ;;  %v8510_v5 = vld [vmem:[%s8724_s18 + $0x1d0] sm:$0xff] }
 0x317   : > { %v10665_v18 = vadd.f32 %v2333_v17, %v10299_v29  ;;  %v720_v52 = vrot.slane %v8510_v5, 2  ;;  %v10689_v39 = vld [vmem:[%s11951_s4 + $0x14] sm:$0x7] }
 0x318   : > { %v2335_v14 = vpop.permute.xlu0 %2334  ;;  %v10668_v13 = vsel %vm571_vm0, %v3734_v59, %v3736_v28  ;;  %v8511_v28 = vld [vmem:[%s8724_s18 + $0x1d8] sm:$0x3] }
 0x319   : > { %12238 = vst [vmem:[#allocation94_spill] sm:$0xff] %v10668_v13  ;;  %v2772_v26 = vrot.slane %v10665_v18, 7  ;;  %v2409_v15 = vadd.f32 %v2335_v14, %v10294_v50  ;;  %7126 = vmatmul.mubr.msk.f32.gmra.mrb[20].mxu1 %vm2686_vm7, %v10668_v13  ;;  %v722_v59 = vrot.slane %v8511_v28, 2  ;;  %v721_v5 = vsel %vm571_vm0, %v719_v19, %v720_v52  ;;  %v6234_v19 = vld [vmem:[%s11951_s4 + $0x4] sm:$0x7] }
 0x31a   : > { %v2785_v37 = vpop.permute.xlu1 %2784  ;;  %6975 = vmatprep.mubr.msk.f32.mxu0 %vm1372_vm2, %v721_v5  ;;  %6978 = vmatprep.subr.msk.mxu0 %vm3137_vm5, %v6234_v19 }
 0x31b   : > { %v2773_v46 = vrot.slane %v2409_v15, 7  ;;  %v10677_v17 = vsel %vm2723_vm6, 0.0, %v2785_v37  ;;  %2874 = vrot.lane.b32.xlu1 %v2772_v26, %s8595_s16  ;;  %2652 = vrot.lane.b32.xlu0 %v2409_v15, %s8595_s16  ;;  %v723_v15 = vsel %vm571_vm0, %v720_v52, %v722_v59  ;;  %v12239_v59 = vrot.slane %v10365_v30, 7 }
 0x31c   : > { %7130 = vmatprep.mubr.msk.f32.mxu1 %vm2686_vm7, %v10677_v17  ;;  %v10684_v14 = vpop.permute.xlu0 %2786  ;;  %6976 = vmatmul.mubr.msk.f32.gmra.mrb[106].mxu0 %vm1372_vm2, %v723_v15 }
 0x31d   : > { %7131 = vmatmul.mubr.msk.f32.vlgmr.msra.gmra.mrb[22].mxu1 %vm2686_vm7, %v10684_v14  ;;  %v2774_v37 = vsel %vm2723_vm6, %v2772_v26, %v2773_v46  ;;  %6979 = vmatpush3.msk.msra.mxu0 %vm3137_vm5, %v6234_v19 }
 0x31e   : > { %v2791_v28 = vpop.permute.xlu1 %2790  ;;  %7179 = vmatpush3.msk.msra.mxu1 %vm3137_vm5, %v10433_v31 }
 0x31f   : > { %v10701_v29 = vsel %vm2723_vm6, 0.0, %v2791_v28  ;;  %2876 = vrot.lane.b32.xlu1 %v2774_v37, %s8595_s16  ;;  %7228 = vmatprep.subr.msk.mxu1 %vm3137_vm5, %v10689_v39 }
 0x320   : > { %7133 = vmatprep.mubr.msk.f32.mxu1 %vm2686_vm7, %v10701_v29  ;;  %v10711_v52 = vpop.permute.xlu0 %2792 }
 0x321   : > { %7134 = vmatmul.mubr.msk.f32.gmra.mrb[24].mxu1 %vm2686_vm7, %v10711_v52 }
 0x322   : > { %v2797_v31 = vpop.permute.xlu1 %2796 }
 0x323   : > { %v10718_v26 = vsel %vm2723_vm6, 0.0, %v2797_v31  ;;  %2800 = vrot.lane.b32.xlu1 %v12239_v59, %s8595_s16 }
 0x324   : > { %7136 = vmatprep.mubr.msk.f32.mxu1 %vm2686_vm7, %v10718_v26  ;;  %v10725_v5 = vpop.permute.xlu0 %2798 }
 0x325   : > { %7137 = vmatmul.mubr.msk.f32.gmra.mrb[26].mxu1 %vm2686_vm7, %v10725_v5 }
 0x326   : > { %v2803_v37 = vpop.permute.xlu1 %2802 }
 0x327   : > { %v10730_v15 = vsel %vm2723_vm6, 0.0, %v2803_v37  ;;  %2878 = vrot.lane.b32.xlu1 %v2773_v46, %s8595_s16 }
 0x328   : > { %7139 = vmatprep.mubr.msk.f32.mxu1 %vm2686_vm7, %v10730_v15  ;;  %v10735_v28 = vpop.permute.xlu0 %2804 }
 0x329   : > { %12240 = vst [vmem:[#allocation95_spill] sm:$0xff] %v10735_v28  ;;  %7140 = vmatmul.mubr.msk.f32.gmra.mrb[28].mxu1 %vm2686_vm7, %v10735_v28 }
 0x32a   : > { %7142 = vmatprep.mubr.msk.f32.mxu1 %vm2686_vm7, %v10411_v56 }
 0x32b   : > { %2782 = vrot.lane.b32.xlu1 %v10392_v27, %s8595_s16 }
 0x32c   : > { %v10743_v30 = vpop.permute.xlu0 %2788 }
 0x32d   : > { %7143 = vmatmul.mubr.msk.f32.gmra.mrb[30].mxu1 %vm2686_vm7, %v10406_v4 }
 0x32e   : > { %7145 = vmatprep.mubr.msk.f32.mxu1 %vm2686_vm7, %v10440_v6 }
 0x32f   : > { %2882 = vrot.lane.b32.xlu1 %v10392_v27, %s8595_s16 }
 0x330   : > { %v10751_v46 = vpop.permute.xlu0 %2794 }
 0x331   : > { %7146 = vmatmul.mubr.msk.f32.gmra.mrb[0].mxu1 %vm2686_vm7, %v10420_v1 }
 0x332   : > { %7148 = vmatprep.mubr.msk.f32.mxu1 %vm2686_vm7, %v10467_v2 }
 0x333   : > { %2590 = vrot.lane.b32.xlu1 %v10350_v54, %s8595_s16 }
 0x334   : > { %v10759_v19 = vpop.permute.xlu0 %2806 }
 0x335   : > { %7149 = vmatmul.mubr.msk.f32.gmra.mrb[2].mxu1 %vm2686_vm7, %v10451_v49 }
 0x336   : > { %7151 = vmatprep.mubr.msk.f32.mxu1 %vm2686_vm7, %v10492_v63 }
 0x337   : > { %2594 = vrot.lane.b32.xlu1 %v10357_v61, %s8595_s16 }
 0x338   : > { %v8348_v27 = vpop.permute.xlu0 %8347 }
 0x339   : > { %v10767_v31 = vunpack.i.h.bf16 %v8348_v27  ;;  %v8349_v59 = vunpack.i.l.bf16 %v8348_v27  ;;  %7152 = vmatmul.mubr.msk.f32.gmra.mrb[4].mxu1 %vm2686_vm7, %v10476_v9 }
 0x33a   : > { %7154 = vmatprep.mubr.msk.f32.mxu1 %vm2686_vm7, %v10515_v23 }
 0x33b   : > { %v12083_v54 = vrot.slane %v10767_v31, 1  ;;  %v10775_v37 = vsel %vm2723_vm6, 0.0, %v8349_v59  ;;  %2598 = vrot.lane.b32.xlu1 %v10368_v45, %s8595_s16 }
 0x33c   : > { %12241 = vst [vmem:[#allocation96_spill] sm:$0xff] %v10775_v37  ;;  %v2991_v61 = vrot.slane %v10775_v37, 1  ;;  %v10780_v50 = vpop.permute.xlu0 %2880 }
 0x33d   : > { %12242 = vst [vmem:[#allocation97_spill] sm:$0xff] %v10780_v50  ;;  %7155 = vmatmul.mubr.msk.f32.gmra.mrb[6].mxu1 %vm2686_vm7, %v10499_v16 }
 0x33e   : > { %7157 = vmatprep.mubr.msk.f32.mxu1 %vm2686_vm7, %v10540_v8  ;;  %v2993_v27 = vsel %vm480_vm1, %v2991_v61, %v12083_v54  ;;  %v10940_v54 = vsel %vm2723_vm6, %v10759_v19, 0.0  ;;  %v3016_v19 = vrot.slane %v10411_v56, 1 }
 0x33f   : > { %2602 = vrot.lane.b32.xlu1 %v10378_v38, %s8595_s16  ;;  %6980 = vmatprep.mubr.msk.f32.mxu0 %vm2686_vm7, %v2993_v27  ;;  %12244 = vst [vmem:[#allocation99_spill] sm:$0xff] %v10940_v54 }
 0x340   : > { %v10793_v45 = vpop.permute.xlu0 %2884 }
 0x341   : > { %12243 = vst [vmem:[#allocation98_spill] sm:$0xff] %v10793_v45  ;;  %7158 = vmatmul.mubr.msk.f32.gmra.mrb[8].mxu1 %vm2686_vm7, %v10524_v7  ;;  %v3012_v45 = vrot.slane %v10735_v28, 1 }
 0x342   : > { %7160 = vmatprep.mubr.msk.f32.mxu1 %vm2686_vm7, %v10563_v11 }
 0x343   : > { %2606 = vrot.lane.b32.xlu1 %v10130_v60, %s8595_s16 }
 0x344   : > { %v2593_v38 = vpop.permute.xlu0 %2592 }
 0x345   : > { %2688 = vst.msk [vmem:[%s10802_s21 + $0x8] sm:$0xff] %vm2686_vm7, %v2593_v38  ;;  %7161 = vmatmul.mubr.msk.f32.gmra.mrb[10].mxu1 %vm2686_vm7, %v10547_v12 }
 0x346   : > { %7163 = vmatprep.mubr.msk.f32.mxu1 %vm2686_vm7, %v10588_v3 }
 0x347   : > { %2610 = vrot.lane.b32.xlu1 %v10147_v57, %s8595_s16 }
 0x348   : > { %v2597_v59 = vpop.permute.xlu0 %2596 }
 0x349   : > { %2690 = vst.msk [vmem:[%s10802_s21 + $0x18] sm:$0xff] %vm2686_vm7, %v2597_v59  ;;  %7164 = vmatmul.mubr.msk.f32.gmra.mrb[12].mxu1 %vm2686_vm7, %v10572_v36 }
 0x34a   : > { %7166 = vmatprep.mubr.msk.f32.mxu1 %vm2686_vm7, %v10611_v40 }
 0x34b   : > { %2614 = vrot.lane.b32.xlu1 %v10166_v55, %s8595_s16 }
 0x34c   : > { %v2601_v60 = vpop.permute.xlu0 %2600 }
 0x34d   : > { %2692 = vst.msk [vmem:[%s10802_s21 + $0x28] sm:$0xff] %vm2686_vm7, %v2601_v60  ;;  %7167 = vmatmul.mubr.msk.f32.gmra.mrb[14].mxu1 %vm2686_vm7, %v10595_v25 }
 0x34e   : > { %7169 = vmatprep.mubr.msk.f32.mxu1 %vm2686_vm7, %v10634_v47 }
 0x34f   : > { %2618 = vrot.lane.b32.xlu1 %v10188_v58, %s8595_s16 }
 0x350   : > { %v2605_v57 = vpop.permute.xlu0 %2604 }
 0x351   : > { %2694 = vst.msk [vmem:[%s10802_s21 + $0x38] sm:$0xff] %vm2686_vm7, %v2605_v57  ;;  %7170 = vmatmul.mubr.msk.f32.gmra.mrb[16].mxu1 %vm2686_vm7, %v10620_v42  ;;  %v2996_v57 = vrot.slane %v10677_v17, 1 }
 0x352   : > { %7172 = vmatprep.mubr.msk.f32.mxu1 %vm2686_vm7, %v10639_v22 }
 0x353   : > { %2622 = vrot.lane.b32.xlu1 %v10214_v48, %s8595_s16  ;;  %v10855_v48 = vld [vmem:[%s11951_s4] sm:$0x7] }
 0x354   : > { %v2609_v55 = vpop.permute.xlu0 %2608  ;;  %7028 = vmatprep.subr.msk.mxu0 %vm3137_vm5, %v10855_v48 }
 0x355   : > { %2696 = vst.msk [vmem:[%s10802_s21 + $0x48] sm:$0xff] %vm2686_vm7, %v2609_v55  ;;  %7173 = vmatmul.mubr.msk.f32.gmra.mrb[18].mxu1 %vm2686_vm7, %v10642_v53  ;;  %v2997_v55 = vrot.slane %v10684_v14, 1 }
 0x357   : > { %2626 = vrot.lane.b32.xlu1 %v10236_v32, %s8595_s16 }
 0x358   : > { %v2613_v58 = vpop.permute.xlu0 %2612 }
 0x359   : > { %2698 = vst.msk [vmem:[%s10802_s21 + $0x58] sm:$0xff] %vm2686_vm7, %v2613_v58 }
 0x35b   : > { %2630 = vrot.lane.b32.xlu1 %v10262_v20, %s8595_s16 }
 0x35c   : > { %v2617_v61 = vpop.permute.xlu0 %2616 }
 0x35d   : > { %2700 = vst.msk [vmem:[%s10802_s21 + $0x68] sm:$0xff] %vm2686_vm7, %v2617_v61 }
 0x35f   : > { %2634 = vrot.lane.b32.xlu1 %v10284_v0, %s8595_s16 }
 0x360   : > { %v2621_v32 = vpop.permute.xlu0 %2620 }
 0x361   : > { %2702 = vst.msk [vmem:[%s10802_s21 + $0x78] sm:$0xff] %vm2686_vm7, %v2621_v32 }
 0x363   : > { %2638 = vrot.lane.b32.xlu1 %v10306_v21, %s8595_s16 }
 0x364   : > { %v2625_v20 = vpop.permute.xlu0 %2624 }
 0x365   : > { %2704 = vst.msk [vmem:[%s10802_s21 + $0x88] sm:$0xff] %vm2686_vm7, %v2625_v20  ;;  %v3001_v20 = vrot.slane %v10701_v29, 1 }
 0x367   : > { %2642 = vrot.lane.b32.xlu1 %v10318_v34, %s8595_s16 }
 0x368   : > { %v2629_v0 = vpop.permute.xlu0 %2628 }
 0x369   : > { %2706 = vst.msk [vmem:[%s10802_s21 + $0x98] sm:$0xff] %vm2686_vm7, %v2629_v0  ;;  %v10902_v0 = vsel %vm2723_vm6, %v10751_v46, 0.0  ;;  %v3006_v46 = vrot.slane %v10718_v26, 1 }
 0x36b   : > { %2646 = vrot.lane.b32.xlu1 %v10330_v24, %s8595_s16 }
 0x36c   : > { %v2633_v27 = vpop.permute.xlu0 %2632 }
 0x36d   : > { %2708 = vst.msk [vmem:[%s10802_s21 + $0xa8] sm:$0xff] %vm2686_vm7, %v2633_v27  ;;  %v3002_v27 = vrot.slane %v10711_v52, 1 }
 0x36f   : > { %2650 = vrot.lane.b32.xlu1 %v10665_v18, %s8595_s16  ;;  %v10887_v18 = vsel %vm2723_vm6, %v10743_v30, 0.0  ;;  %v2998_v30 = vsel %vm480_vm1, %v2996_v57, %v2997_v55  ;;  %v3007_v57 = vrot.slane %v10725_v5, 1  ;;  %s6578_s16 = sshll.u32 %s8583_s27, 12 }
 0x370   : > { %v2637_v21 = vpop.permute.xlu0 %2636  ;;  %v2999_v61 = vrot.slane %v10887_v18, 1  ;;  %s11892_s10 = scalar_lea.hbm %s11953_s6, %s6578_s16 }
 0x371   : > { %2710 = vst.msk [vmem:[%s10802_s21 + $0xb8] sm:$0xff] %vm2686_vm7, %v2637_v21 }
 0x372   : > { %v3000_v21 = vsel %vm480_vm1, %v2997_v55, %v2999_v61 }
 0x374   : > { %v2641_v38 = vpop.permute.xlu0 %2640 }
 0x375   : > { %2712 = vst.msk [vmem:[%s10802_s21 + $0xc8] sm:$0xff] %vm2686_vm7, %v2641_v38  ;;  %v3004_v38 = vrot.slane %v10902_v0, 1 }
 0x378   : > { %v2645_v34 = vpop.permute.xlu0 %2644 }
 0x379   : > { %2714 = vst.msk [vmem:[%s10802_s21 + $0xd8] sm:$0xff] %vm2686_vm7, %v2645_v34 }
 0x37c   : > { %v2649_v59 = vpop.permute.xlu0 %2648 }
 0x37d   : > { %2716 = vst.msk [vmem:[%s10802_s21 + $0xe8] sm:$0xff] %vm2686_vm7, %v2649_v59  ;;  %v10914_v59 = vld [vmem:[%s11951_s4 + $0x18] sm:$0x7] }
 0x38d   : > { %v2875_v24 = vpop.permute.xlu1 %2874  ;;  %v2653_v60 = vpop.permute.xlu0 %2652 }
 0x38e   : > { %v10890_v58 = vsel %vm2723_vm6, 0.0, %v2875_v24  ;;  %2718 = vst.msk [vmem:[%s10802_s21 + $0xf8] sm:$0xff] %vm2686_vm7, %v2653_v60  ;;  %v10922_v60 = vsel %vm480_vm1, %v3001_v20, %v3002_v27  ;;  %v3011_v20 = vrot.slane %v10730_v15, 1 }
 0x38f   : > { %7175 = vmatprep.mubr.msk.f32.mxu1 %vm2686_vm7, %v10890_v58 }
 0x391   : > { %v10897_v32 = vpop.permute.xlu1 %2876 }
 0x392   : > { %7176 = vmatmul.mubr.msk.f32.gmra.mrb[20].mxu1 %vm2686_vm7, %v10897_v32 }
 0x393   : > { %7180 = vmatprep.mubr.msk.f32.mxu1 %vm2686_vm7, %v2998_v30 }
 0x395   : > { %v2801_v34 = vpop.permute.xlu1 %2800 }
 0x396   : > { %v10918_v24 = vsel %vm2723_vm6, %v2801_v34, 0.0  ;;  %7181 = vmatmul.mubr.msk.f32.vlgmr.msra.gmra.mrb[22].mxu1 %vm2686_vm7, %v3000_v21  ;;  %v10935_v34 = vsel %vm480_vm1, %v3002_v27, %v3004_v38  ;;  %v3014_v27 = vrot.slane %v10940_v54, 1  ;;  %v3017_v54 = vrot.slane %v10406_v4, 1 }
 0x397   : > { %7229 = vmatpush3.msk.msra.mxu1 %vm3137_vm5, %v10689_v39  ;;  %7183 = vmatprep.mubr.msk.f32.mxu1 %vm2686_vm7, %v10922_v60  ;;  %v3009_v55 = vrot.slane %v10918_v24, 1  ;;  %v10945_v39 = vsel %vm480_vm1, %v3006_v46, %v3007_v57  ;;  %v10961_v46 = vsel %vm480_vm1, %v3011_v20, %v3012_v45  ;;  %v3021_v20 = vrot.slane %v10440_v6, 1 }
 0x398   : > { %7278 = vmatprep.subr.msk.mxu1 %vm3137_vm5, %v10914_v59  ;;  %v10974_v28 = vsel %vm480_vm1, %v3012_v45, %v3014_v27 }
 0x399   : > { %v10932_v61 = vpop.permute.xlu1 %2878  ;;  %v10952_v50 = vsel %vm480_vm1, %v3007_v57, %v3009_v55  ;;  %v3019_v57 = vrot.slane %v10404_v41, 1  ;;  %v12246_v55 = vrot.slane %v10767_v31, 1  ;;  %12247 = vst [vmem:[#allocation101_spill] sm:$0xff] %v10974_v28  ;;  %v3022_v41 = vrot.slane %v10420_v1, 1 }
 0x39a   : > { %7184 = vmatmul.mubr.msk.f32.gmra.mrb[24].mxu1 %vm2686_vm7, %v10935_v34 }
 0x39b   : > { %7186 = vmatprep.mubr.msk.f32.mxu1 %vm2686_vm7, %v10945_v39  ;;  %v10991_v27 = vsel %vm480_vm1, %v3017_v54, %v3019_v57 }
 0x39c   : > { %12248 = vst [vmem:[#allocation102_spill] sm:$0xff] %v10991_v27 }
 0x39d   : > { %v2783_v38 = vpop.permute.xlu1 %2782 }
 0x39e   : > { %v10956_v13 = vsel %vm2723_vm6, %v2783_v38, 0.0  ;;  %7187 = vmatmul.mubr.msk.f32.gmra.mrb[26].mxu1 %vm2686_vm7, %v10952_v50 }
 0x39f   : > { %12245 = vst [vmem:[#allocation100_spill] sm:$0xff] %v10956_v13  ;;  %v2994_v37 = vrot.slane %v10956_v13, 1  ;;  %7189 = vmatprep.mubr.msk.f32.mxu1 %vm2686_vm7, %v10961_v46  ;;  %v10981_v13 = vsel %vm480_vm1, %v3016_v19, %v3017_v54  ;;  %v10996_v19 = vld [vmem:[%s11951_s4 + $0x8] sm:$0x7]  ;;  %v3027_v54 = vrot.slane %v10451_v49, 1 }
 0x3a1   : > { %v2995_v38 = vsel %vm480_vm1, %v12246_v55, %v2994_v37  ;;  %v10971_v56 = vpop.permute.xlu1 %2882  ;;  %v3024_v37 = vrot.slane %v10418_v35, 1  ;;  %v11007_v35 = vsel %vm480_vm1, %v3021_v20, %v3022_v41  ;;  %v3031_v55 = vrot.slane %v10492_v63, 1 }
 0x3a2   : > { %6981 = vmatmul.mubr.msk.f32.vlgmr.msra.gmra.mrb[108].mxu0 %vm2686_vm7, %v2995_v38  ;;  %7190 = vmatmul.mubr.msk.f32.gmra.mrb[28].mxu1 %vm2686_vm7, %v10974_v28  ;;  %v3034_v20 = vrot.slane %v10474_v62, 1  ;;  %v3037_v62 = vrot.slane %v10499_v16, 1 }
 0x3a3   : > { %6983 = vmatprep.mubr.msk.f32.mxu0 %vm2686_vm7, %v2998_v30  ;;  %7192 = vmatprep.mubr.msk.f32.mxu1 %vm2686_vm7, %v10981_v13  ;;  %v3026_v30 = vrot.slane %v10467_v2, 1 }
 0x3a4   : > { %7029 = vmatpush3.msk.msra.mxu0 %vm3137_vm5, %v10855_v48  ;;  %v3029_v48 = vrot.slane %v10449_v33, 1  ;;  %v3032_v33 = vrot.slane %v10476_v9, 1 }
 0x3a5   : > { %v2591_v45 = vpop.permute.xlu1 %2590  ;;  %7078 = vmatprep.subr.msk.mxu0 %vm3137_vm5, %v10996_v19  ;;  %v11026_v38 = vsel %vm480_vm1, %v3026_v30, %v3027_v54 }
 0x3a6   : > { %2687 = vst.msk [vmem:[%s10802_s21] sm:$0xff] %vm2686_vm7, %v2591_v45  ;;  %6984 = vmatmul.mubr.msk.f32.gmra.mrb[110].mxu0 %vm2686_vm7, %v3000_v21  ;;  %7193 = vmatmul.mubr.msk.f32.gmra.mrb[30].mxu1 %vm2686_vm7, %v10991_v27  ;;  %v11016_v21 = vsel %vm480_vm1, %v3022_v41, %v3024_v37  ;;  %12250 = vst [vmem:[#allocation104_spill] sm:$0xff] %v11026_v38  ;;  %v11035_v37 = vsel %vm480_vm1, %v3027_v54, %v3029_v48  ;;  %v3036_v45 = vrot.slane %v10515_v23, 1 }
 0x3a7   : > { %6986 = vmatprep.mubr.msk.f32.mxu0 %vm2686_vm7, %v10922_v60  ;;  %7195 = vmatprep.mubr.msk.f32.mxu1 %vm2686_vm7, %v11007_v35  ;;  %12249 = vst [vmem:[#allocation103_spill] sm:$0xff] %v11016_v21  ;;  %12251 = vst [vmem:[#allocation105_spill] sm:$0xff] %v11035_v37  ;;  %v11045_v30 = vsel %vm480_vm1, %v3031_v55, %v3032_v33  ;;  %v3039_v54 = vrot.slane %v10497_v44, 1  ;;  %v3042_v44 = vrot.slane %v10524_v7, 1 }
 0x3a8   : > { %12252 = vst [vmem:[#allocation106_spill] sm:$0xff] %v11045_v30  ;;  %v11064_v55 = vsel %vm480_vm1, %v3036_v45, %v3037_v62 }
 0x3a9   : > { %v2595_v57 = vpop.permute.xlu1 %2594  ;;  %12254 = vst [vmem:[#allocation108_spill] sm:$0xff] %v11064_v55 }
 0x3aa   : > { %2689 = vst.msk [vmem:[%s10802_s21 + $0x10] sm:$0xff] %vm2686_vm7, %v2595_v57  ;;  %6987 = vmatmul.mubr.msk.f32.gmra.mrb[112].mxu0 %vm2686_vm7, %v10935_v34  ;;  %7196 = vmatmul.mubr.msk.f32.gmra.mrb[0].mxu1 %vm2686_vm7, %v11016_v21  ;;  %v11054_v57 = vsel %vm480_vm1, %v3032_v33, %v3034_v20  ;;  %v3044_v33 = vrot.slane %v10522_v10, 1  ;;  %v3047_v10 = vrot.slane %v10547_v12, 1 }
 0x3ab   : > { %6989 = vmatprep.mubr.msk.f32.mxu0 %vm2686_vm7, %v10945_v39  ;;  %7198 = vmatprep.mubr.msk.f32.mxu1 %vm2686_vm7, %v11026_v38  ;;  %12253 = vst [vmem:[#allocation107_spill] sm:$0xff] %v11054_v57 }
 0x3ad   : > { %v2599_v41 = vpop.permute.xlu1 %2598 }
 0x3ae   : > { %2691 = vst.msk [vmem:[%s10802_s21 + $0x20] sm:$0xff] %vm2686_vm7, %v2599_v41  ;;  %6990 = vmatmul.mubr.msk.f32.gmra.mrb[114].mxu0 %vm2686_vm7, %v10952_v50  ;;  %7199 = vmatmul.mubr.msk.f32.gmra.mrb[2].mxu1 %vm2686_vm7, %v11035_v37  ;;  %v3041_v41 = vrot.slane %v10540_v8, 1 }
 0x3af   : > { %6992 = vmatprep.mubr.msk.f32.mxu0 %vm2686_vm7, %v10961_v46  ;;  %7201 = vmatprep.mubr.msk.f32.mxu1 %vm2686_vm7, %v11045_v30 }
 0x3b0   : > { %v11083_v45 = vsel %vm480_vm1, %v3041_v41, %v3042_v44 }
 0x3b1   : > { %v2603_v48 = vpop.permute.xlu1 %2602 }
 0x3b2   : > { %2693 = vst.msk [vmem:[%s10802_s21 + $0x30] sm:$0xff] %vm2686_vm7, %v2603_v48  ;;  %6993 = vmatmul.mubr.msk.f32.gmra.mrb[116].mxu0 %vm2686_vm7, %v10974_v28  ;;  %7202 = vmatmul.mubr.msk.f32.gmra.mrb[4].mxu1 %vm2686_vm7, %v11054_v57  ;;  %v11073_v48 = vsel %vm480_vm1, %v3037_v62, %v3039_v54  ;;  %v3046_v28 = vrot.slane %v10563_v11, 1  ;;  %v3049_v62 = vrot.slane %v10545_v43, 1  ;;  %v3052_v43 = vrot.slane %v10572_v36, 1 }
 0x3b3   : > { %6995 = vmatprep.mubr.msk.f32.mxu0 %vm2686_vm7, %v10981_v13  ;;  %7204 = vmatprep.mubr.msk.f32.mxu1 %vm2686_vm7, %v11064_v55  ;;  %12255 = vst [vmem:[#allocation109_spill] sm:$0xff] %v11073_v48 }
 0x3b4   : > { %v11102_v41 = vsel %vm480_vm1, %v3046_v28, %v3047_v10 }
 0x3b5   : > { %v2607_v20 = vpop.permute.xlu1 %2606  ;;  %12257 = vst [vmem:[#allocation111_spill] sm:$0xff] %v11102_v41 }
 0x3b6   : > { %2695 = vst.msk [vmem:[%s10802_s21 + $0x40] sm:$0xff] %vm2686_vm7, %v2607_v20  ;;  %6996 = vmatmul.mubr.msk.f32.gmra.mrb[118].mxu0 %vm2686_vm7, %v10991_v27  ;;  %7205 = vmatmul.mubr.msk.f32.gmra.mrb[6].mxu1 %vm2686_vm7, %v11073_v48  ;;  %v11092_v20 = vsel %vm480_vm1, %v3042_v44, %v3044_v33  ;;  %v3051_v27 = vrot.slane %v10588_v3, 1  ;;  %v3054_v44 = vrot.slane %v10570_v51, 1  ;;  %v3057_v51 = vrot.slane %v10595_v25, 1 }
 0x3b7   : > { %6998 = vmatprep.mubr.msk.f32.mxu0 %vm2686_vm7, %v11007_v35  ;;  %7207 = vmatprep.mubr.msk.f32.mxu1 %vm2686_vm7, %v11083_v45  ;;  %12256 = vst [vmem:[#allocation110_spill] sm:$0xff] %v11092_v20 }
 0x3b8   : > { %v11121_v28 = vsel %vm480_vm1, %v3051_v27, %v3052_v43 }
 0x3b9   : > { %v2611_v54 = vpop.permute.xlu1 %2610 }
 0x3ba   : > { %2697 = vst.msk [vmem:[%s10802_s21 + $0x50] sm:$0xff] %vm2686_vm7, %v2611_v54  ;;  %6999 = vmatmul.mubr.msk.f32.gmra.mrb[120].mxu0 %vm2686_vm7, %v11016_v21  ;;  %7208 = vmatmul.mubr.msk.f32.gmra.mrb[8].mxu1 %vm2686_vm7, %v11092_v20  ;;  %v11111_v54 = vsel %vm480_vm1, %v3047_v10, %v3049_v62  ;;  %v3056_v21 = vrot.slane %v10611_v40, 1  ;;  %v12258_v10 = vld [vmem:[#allocation84_spill] sm:$0xff] }
 0x3bb   : > { %7001 = vmatprep.mubr.msk.f32.mxu0 %vm2686_vm7, %v11026_v38  ;;  %7210 = vmatprep.mubr.msk.f32.mxu1 %vm2686_vm7, %v11102_v41  ;;  %v3059_v62 = vrot.slane %v12258_v10, 1  ;;  %v3061_v38 = vrot.slane %v10634_v47, 1 }
 0x3bc   : > { %v11140_v27 = vsel %vm480_vm1, %v3056_v21, %v3057_v51 }
 0x3bd   : > { %v2615_v33 = vpop.permute.xlu1 %2614 }
 0x3be   : > { %2699 = vst.msk [vmem:[%s10802_s21 + $0x60] sm:$0xff] %vm2686_vm7, %v2615_v33  ;;  %7002 = vmatmul.mubr.msk.f32.gmra.mrb[122].mxu0 %vm2686_vm7, %v11035_v37  ;;  %7211 = vmatmul.mubr.msk.f32.gmra.mrb[10].mxu1 %vm2686_vm7, %v11111_v54  ;;  %v11130_v37 = vsel %vm480_vm1, %v3052_v43, %v3054_v44  ;;  %v3062_v43 = vrot.slane %v10620_v42, 1  ;;  %v12259_v44 = vld [vmem:[#allocation87_spill] sm:$0xff] }
 0x3bf   : > { %7004 = vmatprep.mubr.msk.f32.mxu0 %vm2686_vm7, %v11045_v30  ;;  %7213 = vmatprep.mubr.msk.f32.mxu1 %vm2686_vm7, %v11121_v28  ;;  %v3064_v10 = vrot.slane %v12259_v44, 1  ;;  %v3066_v30 = vrot.slane %v10639_v22, 1  ;;  %v3067_v44 = vrot.slane %v10642_v53, 1 }
 0x3c0   : > { %v11159_v21 = vsel %vm480_vm1, %v3061_v38, %v3062_v43  ;;  %v11173_v38 = vsel %vm2723_vm6, %v10932_v61, 0.0  ;;  %v4332_v61 = vrot.slane %v10890_v58, 1 }
 0x3c1   : > { %v2619_v33 = vpop.permute.xlu1 %2618  ;;  %12261 = vst [vmem:[#allocation87_spill] sm:$0xff] %v11159_v21 }
 0x3c2   : > { %2701 = vst.msk [vmem:[%s10802_s21 + $0x70] sm:$0xff] %vm2686_vm7, %v2619_v33  ;;  %7005 = vmatmul.mubr.msk.f32.gmra.mrb[124].mxu0 %vm2686_vm7, %v11054_v57  ;;  %7214 = vmatmul.mubr.msk.f32.gmra.mrb[12].mxu1 %vm2686_vm7, %v11130_v37  ;;  %v11149_v57 = vsel %vm480_vm1, %v3057_v51, %v3059_v62  ;;  %v12262_v51 = vld [vmem:[#allocation92_spill] sm:$0xff] }
 0x3c3   : > { %7007 = vmatprep.mubr.msk.f32.mxu0 %vm2686_vm7, %v11064_v55  ;;  %7216 = vmatprep.mubr.msk.f32.mxu1 %vm2686_vm7, %v11140_v27  ;;  %12260 = vst [vmem:[#allocation84_spill] sm:$0xff] %v11149_v57  ;;  %v3069_v62 = vrot.slane %v12262_v51, 1  ;;  %v4333_v55 = vrot.slane %v10897_v32, 1  ;;  %v11182_v51 = vsel %vm480_vm1, %v3066_v30, %v3067_v44  ;;  %v3664_v30 = vrot.slane %v10684_v14, 2 }
 0x3c4   : > { %12264 = vst [vmem:[#allocation112_spill] sm:$0xff] %v11182_v51 }
 0x3c5   : > { %v2623_v33 = vpop.permute.xlu1 %2622 }
 0x3c6   : > { %2703 = vst.msk [vmem:[%s10802_s21 + $0x80] sm:$0xff] %vm2686_vm7, %v2623_v33  ;;  %7008 = vmatmul.mubr.msk.f32.gmra.mrb[126].mxu0 %vm2686_vm7, %v11073_v48  ;;  %7217 = vmatmul.mubr.msk.f32.gmra.mrb[14].mxu1 %vm2686_vm7, %v11149_v57  ;;  %v11168_v48 = vsel %vm480_vm1, %v3062_v43, %v3064_v10  ;;  %v4335_v43 = vrot.slane %v11173_v38, 1 }
 0x3c7   : > { %7010 = vmatprep.mubr.msk.f32.mxu0 %vm2686_vm7, %v11083_v45  ;;  %7219 = vmatprep.mubr.msk.f32.mxu1 %vm2686_vm7, %v11159_v21  ;;  %12263 = vst [vmem:[#allocation92_spill] sm:$0xff] %v11168_v48 }
 0x3c9   : > { %v2627_v33 = vpop.permute.xlu1 %2626 }
 0x3ca   : > { %2705 = vst.msk [vmem:[%s10802_s21 + $0x90] sm:$0xff] %vm2686_vm7, %v2627_v33  ;;  %7011 = vmatmul.mubr.msk.f32.gmra.mrb[128].mxu0 %vm2686_vm7, %v11092_v20  ;;  %7220 = vmatmul.mubr.msk.f32.gmra.mrb[16].mxu1 %vm2686_vm7, %v11168_v48  ;;  %v11191_v33 = vsel %vm480_vm1, %v3067_v44, %v3069_v62  ;;  %v3663_v20 = vrot.slane %v10677_v17, 2  ;;  %v3666_v44 = vrot.slane %v10887_v18, 2  ;;  %v3669_v18 = vrot.slane %v10711_v52, 2 }
 0x3cb   : > { %7013 = vmatprep.mubr.msk.f32.mxu0 %vm2686_vm7, %v11102_v41  ;;  %7222 = vmatprep.mubr.msk.f32.mxu1 %vm2686_vm7, %v11182_v51  ;;  %v11202_v41 = vsel %vm480_vm1, %v4332_v61, %v4333_v55 }
 0x3cc   : > { %12265 = vst [vmem:[#allocation113_spill] sm:$0xff] %v11202_v41  ;;  %v11219_v61 = vsel %vm571_vm0, %v3663_v20, %v3664_v30  ;;  %v11234_v20 = vld [vmem:[%s11951_s4 + $0x1c] sm:$0x7] }
 0x3cd   : > { %v2631_v10 = vpop.permute.xlu1 %2630 }
 0x3ce   : > { %2707 = vst.msk [vmem:[%s10802_s21 + $0xa0] sm:$0xff] %vm2686_vm7, %v2631_v10  ;;  %7014 = vmatmul.mubr.msk.f32.gmra.mrb[130].mxu0 %vm2686_vm7, %v11111_v54  ;;  %7223 = vmatmul.mubr.msk.f32.gmra.mrb[18].mxu1 %vm2686_vm7, %v11191_v33  ;;  %v11210_v10 = vsel %vm480_vm1, %v4333_v55, %v4335_v43  ;;  %v11228_v55 = vsel %vm571_vm0, %v3664_v30, %v3666_v44  ;;  %v3671_v43 = vrot.slane %v10902_v0, 2  ;;  %v3674_v30 = vrot.slane %v10725_v5, 2 }
 0x3cf   : > { %7016 = vmatprep.mubr.msk.f32.mxu0 %vm2686_vm7, %v11121_v28  ;;  %7225 = vmatprep.mubr.msk.f32.mxu1 %vm2686_vm7, %v11202_v41  ;;  %12266 = vst [vmem:[#allocation114_spill] sm:$0xff] %v11210_v10  ;;  %v3668_v41 = vrot.slane %v10701_v29, 2  ;;  %v3676_v44 = vrot.slane %v10918_v24, 2 }
 0x3d1   : > { %v2635_v62 = vpop.permute.xlu1 %2634  ;;  %v11249_v0 = vsel %vm571_vm0, %v3668_v41, %v3669_v18 }
 0x3d2   : > { %2709 = vst.msk [vmem:[%s10802_s21 + $0xb0] sm:$0xff] %vm2686_vm7, %v2635_v62  ;;  %7017 = vmatmul.mubr.msk.f32.gmra.mrb[132].mxu0 %vm2686_vm7, %v11130_v37  ;;  %7226 = vmatmul.mubr.msk.f32.gmra.mrb[20].mxu1 %vm2686_vm7, %v11210_v10  ;;  %v3673_v10 = vrot.slane %v10718_v26, 2 }
 0x3d3   : > { %7019 = vmatprep.mubr.msk.f32.mxu0 %vm2686_vm7, %v11140_v27  ;;  %7230 = vmatprep.mubr.msk.f32.mxu1 %vm2686_vm7, %v11219_v61 }
 0x3d4   : > { %v11267_v41 = vsel %vm571_vm0, %v3673_v10, %v3674_v30 }
 0x3d5   : > { %v2639_v62 = vpop.permute.xlu1 %2638 }
 0x3d6   : > { %2711 = vst.msk [vmem:[%s10802_s21 + $0xc0] sm:$0xff] %vm2686_vm7, %v2639_v62  ;;  %7020 = vmatmul.mubr.msk.f32.gmra.mrb[134].mxu0 %vm2686_vm7, %v11149_v57  ;;  %7231 = vmatmul.mubr.msk.f32.vlgmr.msra.gmra.mrb[22].mxu1 %vm2686_vm7, %v11228_v55  ;;  %v11257_v57 = vsel %vm571_vm0, %v3669_v18, %v3671_v43  ;;  %v12268_v18 = vld [vmem:[#allocation99_spill] sm:$0xff] }
 0x3d7   : > { %7279 = vmatpush3.msk.msra.mxu1 %vm3137_vm5, %v10914_v59  ;;  %7022 = vmatprep.mubr.msk.f32.mxu0 %vm2686_vm7, %v11159_v21  ;;  %v3678_v59 = vrot.slane %v10730_v15, 2  ;;  %v12267_v21 = vld [vmem:[#allocation95_spill] sm:$0xff]  ;;  %v3681_v43 = vrot.slane %v12268_v18, 2 }
 0x3d8   : > { %7233 = vmatprep.mubr.msk.f32.mxu1 %vm2686_vm7, %v11249_v0  ;;  %7328 = vmatprep.subr.msk.mxu1 %vm3137_vm5, %v11234_v20  ;;  %v3679_v24 = vrot.slane %v12267_v21, 2 }
 0x3d9   : > { %v2643_v62 = vpop.permute.xlu1 %2642 }
 0x3da   : > { %2713 = vst.msk [vmem:[%s10802_s21 + $0xd0] sm:$0xff] %vm2686_vm7, %v2643_v62  ;;  %7023 = vmatmul.mubr.msk.f32.gmra.mrb[136].mxu0 %vm2686_vm7, %v11168_v48  ;;  %7234 = vmatmul.mubr.msk.f32.gmra.mrb[24].mxu1 %vm2686_vm7, %v11257_v57  ;;  %v11276_v48 = vsel %vm571_vm0, %v3674_v30, %v3676_v44  ;;  %v11285_v10 = vsel %vm571_vm0, %v3678_v59, %v3679_v24  ;;  %v12270_v44 = vld [vmem:[#allocation70_spill] sm:$0xff]  ;;  %v12271_v59 = vld [vmem:[#allocation71_spill] sm:$0xff] }
 0x3db   : > { %7025 = vmatprep.mubr.msk.f32.mxu0 %vm2686_vm7, %v11182_v51  ;;  %7236 = vmatprep.mubr.msk.f32.mxu1 %vm2686_vm7, %v11267_v41  ;;  %v12269_v51 = vld [vmem:[#allocation96_spill] sm:$0xff]  ;;  %v11292_v30 = vsel %vm571_vm0, %v3679_v24, %v3681_v43 }
 0x3dc   : > { %v12272_v24 = vld [vmem:[#allocation72_spill] sm:$0xff] }
 0x3dd   : > { %v2647_v62 = vpop.permute.xlu1 %2646  ;;  %v12276_v43 = vld [vmem:[#allocation76_spill] sm:$0xff] }
 0x3de   : > { %2715 = vst.msk [vmem:[%s10802_s21 + $0xe0] sm:$0xff] %vm2686_vm7, %v2647_v62  ;;  %7026 = vmatmul.mubr.msk.f32.gmra.mrb[138].mxu0 %vm2686_vm7, %v11191_v33  ;;  %7237 = vmatmul.mubr.msk.f32.gmra.mrb[26].mxu1 %vm2686_vm7, %v11276_v48 }
 0x3df   : > { %7239 = vmatprep.mubr.msk.f32.mxu1 %vm2686_vm7, %v11285_v10  ;;  %7030 = vmatprep.mubr.msk.f32.mxu0 %vm2686_vm7, %v12269_v51 }
 0x3e1   : > { %v2651_v18 = vpop.permute.xlu1 %2650 }
 0x3e2   : > { %2717 = vst.msk [vmem:[%s10802_s21 + $0xf0] sm:$0xff] %vm2686_vm7, %v2651_v18  ;;  %7031 = vmatmul.mubr.msk.f32.vlgmr.msra.gmra.mrb[108].mxu0 %vm2686_vm7, %v10767_v31  ;;  %7240 = vmatmul.mubr.msk.f32.gmra.mrb[28].mxu1 %vm2686_vm7, %v11292_v30  ;;  %v12277_v18 = vld [vmem:[#allocation77_spill] sm:$0xff]  ;;  %s321_s21 = sand.u32 1, %s8575_s25  }
 0x3e3   : > { %7033 = vmatprep.mubr.msk.f32.mxu0 %vm2686_vm7, %v10677_v17  ;;  %7242 = vmatprep.mubr.msk.f32.mxu1 %vm2686_vm7, %v12270_v44  ;;  %v12273_v17 = vld [vmem:[#allocation73_spill] sm:$0xff]  ;;  %s11721_s23 = sshll.u32 %s321_s21, 8  ;;  %s11901_s27 = scalar_lea.sflag [#allocation3], %s321_s21 }
 0x3e4   : > { %7079 = vmatpush3.msk.msra.mxu0 %vm3137_vm5, %v10996_v19  ;;  %v12274_v19 = vld [vmem:[#allocation74_spill] sm:$0xff]  ;;  %s11733_s22 = scalar_lea.vmem [#allocation2], %s11721_s23 }
 0x3e5   : > { %s6038_s15 = sshll.u32 %s11733_s22, 4  ;;  %s11894_s15 = int_to_ptr.vmem [resolvable:$true] %s6038_s15 }
 0x3e6   : > { %7034 = vmatmul.mubr.msk.f32.gmra.mrb[110].mxu0 %vm2686_vm7, %v10684_v14  ;;  %7243 = vmatmul.mubr.msk.f32.gmra.mrb[30].mxu1 %vm2686_vm7, %v12271_v59  ;;  %v12275_v14 = vld [vmem:[#allocation75_spill] sm:$0xff]  ;;  %s8513_s18 = scalar_lea.vmem %s11894_s15, 4096  ;;  %p8520_p1 = scmp.lt.s32.totalorder %s11894_s15, %s8518_s17 }
 0x3e7   : > { %7036 = vmatprep.mubr.msk.f32.mxu0 %vm2686_vm7, %v10701_v29  ;;  %7245 = vmatprep.mubr.msk.f32.mxu1 %vm2686_vm7, %v12272_v24  ;;  %v12279_v24 = vld [vmem:[#allocation78_spill] sm:$0xff]  ;;  %p8514_p12 = scmp.ne.s32.totalorder %s11894_s15, %s8513_s18  ;;  %p8521_p2 = scmp.lt.s32.totalorder %s8519_s19, %s8513_s18 }
 0x3e9   : > { %p8515_p13 = pnand %p8514_p12, %p8681_p4  ;;  %p8522_p3 = por %p8521_p2, %p8520_p1 }
 0x3ea   : > { %7037 = vmatmul.mubr.msk.f32.gmra.mrb[112].mxu0 %vm2686_vm7, %v10711_v52  ;;  %7246 = vmatmul.mubr.msk.f32.gmra.mrb[0].mxu1 %vm2686_vm7, %v12273_v17  ;;  %v12278_v17 = vld [vmem:[#allocation69_spill] sm:$0xff] }
 0x3eb   : > { %7039 = vmatprep.mubr.msk.f32.mxu0 %vm2686_vm7, %v10718_v26  ;;  %7248 = vmatprep.mubr.msk.f32.mxu1 %vm2686_vm7, %v12274_v19  ;;  %p8516_p0 = pneg %p8515_p13 }
 0x3ed   : > { %p8523_p5 = pnand %p8522_p3, %p8516_p0 }
 0x3ee   : > { %7040 = vmatmul.mubr.msk.f32.gmra.mrb[114].mxu0 %vm2686_vm7, %v10725_v5  ;;  %7249 = vmatmul.mubr.msk.f32.gmra.mrb[2].mxu1 %vm2686_vm7, %v12275_v14  ;;  %v12280_v14 = vld [vmem:[#allocation79_spill] sm:$0xff] }
 0x3ef   : > { %7042 = vmatprep.mubr.msk.f32.mxu0 %vm2686_vm7, %v10730_v15  ;;  %7251 = vmatprep.mubr.msk.f32.mxu1 %vm2686_vm7, %v12276_v43  ;;  %v6977_v62 = vpop.f32.mrb[106].mxu0  ;;  %v4606_v43 = vrot.slane %v11173_v38, 2  ;;  %v6505_v38 = vld [vmem:[%s11951_s4 + $0x20] sm:$0x7] }
 0x3f0   : > { %v2187_v19 = vpop.f32.mrb[107].mxu0  ;;  %v12281_v62 = vld [vmem:[#allocation80_spill] sm:$0xff] }
 0x3f1   : > { %v12282_v19 = vld [vmem:[#allocation81_spill] sm:$0xff] }
 0x3f2   : > { %7043 = vmatmul.mubr.msk.f32.gmra.mrb[116].mxu0 %vm2686_vm7, %v12267_v21  ;;  %7252 = vmatmul.mubr.msk.f32.gmra.mrb[4].mxu1 %vm2686_vm7, %v12277_v18  ;;  %v12290_v18 = vld [vmem:[#allocation91_spill] sm:$0xff] }
 0x3f3   : > { %7045 = vmatprep.mubr.msk.f32.mxu0 %vm2686_vm7, %v12278_v17  ;;  %7254 = vmatprep.mubr.msk.f32.mxu1 %vm2686_vm7, %v12279_v24  ;;  %v12283_v24 = vld [vmem:[#allocation82_spill] sm:$0xff] }
 0x3f6   : > { %7046 = vmatmul.mubr.msk.f32.gmra.mrb[118].mxu0 %vm2686_vm7, %v10406_v4  ;;  %7255 = vmatmul.mubr.msk.f32.gmra.mrb[6].mxu1 %vm2686_vm7, %v12280_v14  ;;  %v12284_v14 = vld [vmem:[#allocation83_spill] sm:$0xff] }
 0x3f7   : > { %7048 = vmatprep.mubr.msk.f32.mxu0 %vm2686_vm7, %v10440_v6  ;;  %7257 = vmatprep.mubr.msk.f32.mxu1 %vm2686_vm7, %v12281_v62  ;;  %v12285_v62 = vld [vmem:[#allocation85_spill] sm:$0xff] }
 0x3fa   : > { %7049 = vmatmul.mubr.msk.f32.gmra.mrb[120].mxu0 %vm2686_vm7, %v10420_v1  ;;  %7258 = vmatmul.mubr.msk.f32.gmra.mrb[8].mxu1 %vm2686_vm7, %v12282_v19  ;;  %v12286_v19 = vld [vmem:[#allocation86_spill] sm:$0xff] }
 0x3fb   : > { %7051 = vmatprep.mubr.msk.f32.mxu0 %vm2686_vm7, %v10467_v2  ;;  %7260 = vmatprep.mubr.msk.f32.mxu1 %vm2686_vm7, %v12283_v24  ;;  %v12287_v24 = vld [vmem:[#allocation88_spill] sm:$0xff] }
 0x3fe   : > { %7052 = vmatmul.mubr.msk.f32.gmra.mrb[122].mxu0 %vm2686_vm7, %v10451_v49  ;;  %7261 = vmatmul.mubr.msk.f32.gmra.mrb[10].mxu1 %vm2686_vm7, %v12284_v14  ;;  %v12288_v14 = vld [vmem:[#allocation89_spill] sm:$0xff] }
 0x3ff   : > { %7054 = vmatprep.mubr.msk.f32.mxu0 %vm2686_vm7, %v10492_v63  ;;  %7263 = vmatprep.mubr.msk.f32.mxu1 %vm2686_vm7, %v12285_v62  ;;  %v12289_v62 = vld [vmem:[#allocation90_spill] sm:$0xff] }
 0x402   : > { %7055 = vmatmul.mubr.msk.f32.gmra.mrb[124].mxu0 %vm2686_vm7, %v10476_v9  ;;  %7264 = vmatmul.mubr.msk.f32.gmra.mrb[12].mxu1 %vm2686_vm7, %v12286_v19  ;;  %v4604_v19 = vrot.slane %v10897_v32, 2 }
 0x403   : > { %7057 = vmatprep.mubr.msk.f32.mxu0 %vm2686_vm7, %v10515_v23  ;;  %7266 = vmatprep.mubr.msk.f32.mxu1 %vm2686_vm7, %v12287_v24  ;;  %v12291_v24 = vld [vmem:[#allocation93_spill] sm:$0xff] }
 0x406   : > { %7058 = vmatmul.mubr.msk.f32.gmra.mrb[126].mxu0 %vm2686_vm7, %v10499_v16  ;;  %7267 = vmatmul.mubr.msk.f32.gmra.mrb[14].mxu1 %vm2686_vm7, %v12288_v14  ;;  %v4603_v14 = vrot.slane %v10890_v58, 2 }
 0x407   : > { %7060 = vmatprep.mubr.msk.f32.mxu0 %vm2686_vm7, %v10540_v8  ;;  %7269 = vmatprep.mubr.msk.f32.mxu1 %vm2686_vm7, %v12289_v62  ;;  %v12292_v62 = vld [vmem:[#allocation94_spill] sm:$0xff] }
 0x408   : > { %v11394_v59 = vsel %vm571_vm0, %v4603_v14, %v4604_v19  ;;  %v3659_v14 = vrot.slane %v10767_v31, 2 }
 0x40a   : > { %7061 = vmatmul.mubr.msk.f32.gmra.mrb[128].mxu0 %vm2686_vm7, %v10524_v7  ;;  %7270 = vmatmul.mubr.msk.f32.gmra.mrb[16].mxu1 %vm2686_vm7, %v12290_v18 }
 0x40b   : > { %7063 = vmatprep.mubr.msk.f32.mxu0 %vm2686_vm7, %v10563_v11  ;;  %7272 = vmatprep.mubr.msk.f32.mxu1 %vm2686_vm7, %v12291_v24  ;;  %v11401_v24 = vsel %vm571_vm0, %v4604_v19, %v4606_v43 }
 0x40e   : > { %7064 = vmatmul.mubr.msk.f32.gmra.mrb[130].mxu0 %vm2686_vm7, %v10547_v12  ;;  %7273 = vmatmul.mubr.msk.f32.gmra.mrb[18].mxu1 %vm2686_vm7, %v12292_v62 }
 0x40f   : > { %7066 = vmatprep.mubr.msk.f32.mxu0 %vm2686_vm7, %v10588_v3  ;;  %7275 = vmatprep.mubr.msk.f32.mxu1 %vm2686_vm7, %v11394_v59 }
 0x412   : > { %7067 = vmatmul.mubr.msk.f32.gmra.mrb[132].mxu0 %vm2686_vm7, %v10572_v36  ;;  %7276 = vmatmul.mubr.msk.f32.gmra.mrb[20].mxu1 %vm2686_vm7, %v11401_v24 }
 0x413   : > { %7069 = vmatprep.mubr.msk.f32.mxu0 %vm2686_vm7, %v10611_v40  ;;  %7280 = vmatprep.mubr.msk.f32.mxu1 %vm2686_vm7, %v10701_v29  ;;  %v3658_v29 = vrot.slane %v12269_v51, 2  ;;  %v12327_v51 = vld [vmem:[#allocation86_spill] sm:$0xff] }
 0x415   : > { %v3660_v31 = vsel %vm571_vm0, %v3658_v29, %v3659_v14 }
 0x416   : > { %7070 = vmatmul.mubr.msk.f32.gmra.mrb[134].mxu0 %vm2686_vm7, %v10595_v25  ;;  %7281 = vmatmul.mubr.msk.f32.vlgmr.msra.gmra.mrb[22].mxu1 %vm2686_vm7, %v10711_v52  ;;  %v12293_v52 = vld [vmem:[#allocation100_spill] sm:$0xff] }
 0x417   : > { %7329 = vmatpush3.msk.msra.mxu1 %vm3137_vm5, %v11234_v20  ;;  %7072 = vmatprep.mubr.msk.f32.mxu0 %vm2686_vm7, %v10634_v47  ;;  %v3661_v20 = vrot.slane %v12293_v52, 2 }
 0x418   : > { %7283 = vmatprep.mubr.msk.f32.mxu1 %vm2686_vm7, %v10718_v26  ;;  %7378 = vmatprep.subr.msk.mxu1 %vm3137_vm5, %v6505_v38 }
 0x419   : > { %v3662_v26 = vsel %vm571_vm0, %v3659_v14, %v3661_v20 }
 0x41a   : > { %7073 = vmatmul.mubr.msk.f32.gmra.mrb[136].mxu0 %vm2686_vm7, %v10620_v42  ;;  %7284 = vmatmul.mubr.msk.f32.gmra.mrb[24].mxu1 %vm2686_vm7, %v10725_v5  ;;  %v12312_v5 = vld [vmem:[#allocation114_spill] sm:$0xff] }
 0x41b   : > { %7075 = vmatprep.mubr.msk.f32.mxu0 %vm2686_vm7, %v10639_v22  ;;  %7286 = vmatprep.mubr.msk.f32.mxu1 %vm2686_vm7, %v10730_v15 }
 0x41e   : > { %7076 = vmatmul.mubr.msk.f32.gmra.mrb[138].mxu0 %vm2686_vm7, %v10642_v53  ;;  %7287 = vmatmul.mubr.msk.f32.gmra.mrb[26].mxu1 %vm2686_vm7, %v12267_v21  ;;  %v12326_v21 = vld [vmem:[#allocation85_spill] sm:$0xff] }
 0x41f   : > { %7289 = vmatprep.mubr.msk.f32.mxu1 %vm2686_vm7, %v12278_v17  ;;  %7080 = vmatprep.mubr.msk.f32.mxu0 %vm2686_vm7, %v3660_v31 }
 0x422   : > { %7081 = vmatmul.mubr.msk.f32.vlgmr.msra.gmra.mrb[108].mxu0 %vm2686_vm7, %v3662_v26  ;;  %7290 = vmatmul.mubr.msk.f32.gmra.mrb[28].mxu1 %vm2686_vm7, %v10406_v4  ;;  %v12300_v4 = vld [vmem:[#allocation106_spill] sm:$0xff] }
 0x423   : > { %7083 = vmatprep.mubr.msk.f32.mxu0 %vm2686_vm7, %v11219_v61  ;;  %7292 = vmatprep.mubr.msk.f32.mxu1 %vm2686_vm7, %v10440_v6  ;;  %v12329_v61 = vld [vmem:[#allocation89_spill] sm:$0xff] }
 0x426   : > { %7084 = vmatmul.mubr.msk.f32.gmra.mrb[110].mxu0 %vm2686_vm7, %v11228_v55  ;;  %7293 = vmatmul.mubr.msk.f32.gmra.mrb[30].mxu1 %vm2686_vm7, %v10420_v1  ;;  %v12301_v1 = vld [vmem:[#allocation107_spill] sm:$0xff]  ;;  %v12330_v55 = vld [vmem:[#allocation90_spill] sm:$0xff] }
 0x427   : > { %7086 = vmatprep.mubr.msk.f32.mxu0 %vm2686_vm7, %v11249_v0  ;;  %7295 = vmatprep.mubr.msk.f32.mxu1 %vm2686_vm7, %v10467_v2  ;;  %v12294_v2 = vld [vmem:[#allocation97_spill] sm:$0xff] }
 0x428   : > { %v11508_v6 = vsel %vm2723_vm6, 0.0, %v12294_v2 }
 0x42a   : > { %7087 = vmatmul.mubr.msk.f32.gmra.mrb[112].mxu0 %vm2686_vm7, %v11257_v57  ;;  %7296 = vmatmul.mubr.msk.f32.gmra.mrb[0].mxu1 %vm2686_vm7, %v10451_v49  ;;  %v12303_v49 = vld [vmem:[#allocation109_spill] sm:$0xff] }
 0x42b   : > { %7089 = vmatprep.mubr.msk.f32.mxu0 %vm2686_vm7, %v11267_v41  ;;  %7298 = vmatprep.mubr.msk.f32.mxu1 %vm2686_vm7, %v10492_v63  ;;  %v12305_v63 = vld [vmem:[#allocation111_spill] sm:$0xff] }
 0x42e   : > { %7090 = vmatmul.mubr.msk.f32.gmra.mrb[114].mxu0 %vm2686_vm7, %v11276_v48  ;;  %7299 = vmatmul.mubr.msk.f32.gmra.mrb[2].mxu1 %vm2686_vm7, %v10476_v9  ;;  %v12304_v9 = vld [vmem:[#allocation110_spill] sm:$0xff] }
 0x42f   : > { %7092 = vmatprep.mubr.msk.f32.mxu0 %vm2686_vm7, %v11285_v10  ;;  %7301 = vmatprep.mubr.msk.f32.mxu1 %vm2686_vm7, %v10515_v23  ;;  %v12298_v23 = vld [vmem:[#allocation104_spill] sm:$0xff] }
 0x432   : > { %7093 = vmatmul.mubr.msk.f32.gmra.mrb[116].mxu0 %vm2686_vm7, %v11292_v30  ;;  %7302 = vmatmul.mubr.msk.f32.gmra.mrb[4].mxu1 %vm2686_vm7, %v10499_v16  ;;  %v12306_v16 = vld [vmem:[#allocation84_spill] sm:$0xff] }
 0x433   : > { %7304 = vmatprep.mubr.msk.f32.mxu1 %vm2686_vm7, %v10540_v8  ;;  %v12308_v8 = vld [vmem:[#allocation92_spill] sm:$0xff] }
 0x436   : > { %7305 = vmatmul.mubr.msk.f32.gmra.mrb[6].mxu1 %vm2686_vm7, %v10524_v7  ;;  %v12307_v7 = vld [vmem:[#allocation87_spill] sm:$0xff] }
 0x437   : > { %7307 = vmatprep.mubr.msk.f32.mxu1 %vm2686_vm7, %v10563_v11  ;;  %v12296_v11 = vld [vmem:[#allocation102_spill] sm:$0xff] }
 0x43a   : > { %7308 = vmatmul.mubr.msk.f32.gmra.mrb[8].mxu1 %vm2686_vm7, %v10547_v12  ;;  %v12309_v12 = vld [vmem:[#allocation112_spill] sm:$0xff] }
 0x43b   : > { %7310 = vmatprep.mubr.msk.f32.mxu1 %vm2686_vm7, %v10588_v3  ;;  %v12310_v3 = vld [vmem:[#allocation98_spill] sm:$0xff] }
 0x43e   : > { %7311 = vmatmul.mubr.msk.f32.gmra.mrb[10].mxu1 %vm2686_vm7, %v10572_v36  ;;  %v5142_v36 = vrot.slane %v11508_v6, 1 }
 0x43f   : > { %7313 = vmatprep.mubr.msk.f32.mxu1 %vm2686_vm7, %v10611_v40  ;;  %v12297_v40 = vld [vmem:[#allocation103_spill] sm:$0xff] }
 0x442   : > { %7314 = vmatmul.mubr.msk.f32.gmra.mrb[12].mxu1 %vm2686_vm7, %v10595_v25  ;;  %v2957_v25 = vsel %vm2723_vm6, %v12310_v3, 0.0 }
 0x443   : > { %7316 = vmatprep.mubr.msk.f32.mxu1 %vm2686_vm7, %v10634_v47  ;;  %v12311_v47 = vld [vmem:[#allocation113_spill] sm:$0xff]  ;;  %v5416_v17 = vrot.slane %v2957_v25, 2 }
 0x446   : > { %7317 = vmatmul.mubr.msk.f32.gmra.mrb[14].mxu1 %vm2686_vm7, %v10620_v42  ;;  %v5143_v42 = vrot.slane %v10971_v56, 1 }
 0x447   : > { %7319 = vmatprep.mubr.msk.f32.mxu1 %vm2686_vm7, %v10639_v22  ;;  %v12295_v22 = vld [vmem:[#allocation101_spill] sm:$0xff] }
 0x448   : > { %v5144_v15 = vsel %vm480_vm1, %v5142_v36, %v5143_v42 }
 0x44a   : > { %7320 = vmatmul.mubr.msk.f32.gmra.mrb[16].mxu1 %vm2686_vm7, %v10642_v53  ;;  %v5145_v53 = vrot.slane %v2957_v25, 1  ;;  %v11698_v25 = vld [vmem:[%s11952_s5] ss:$0 sm:$0xff] }
 0x44b   : > { %7322 = vmatprep.mubr.msk.f32.mxu1 %vm2686_vm7, %v10890_v58 }
 0x44c   : > { %v5146_v58 = vsel %vm480_vm1, %v5143_v42, %v5145_v53 }
 0x44e   : > { %7323 = vmatmul.mubr.msk.f32.gmra.mrb[18].mxu1 %vm2686_vm7, %v10897_v32  ;;  %v12313_v32 = vld [vmem:[#allocation71_spill] sm:$0xff] }
 0x44f   : > { %7325 = vmatprep.mubr.msk.f32.mxu1 %vm2686_vm7, %v11508_v6 }
 0x452   : > { %7326 = vmatmul.mubr.msk.f32.gmra.mrb[20].mxu1 %vm2686_vm7, %v10971_v56 }
 0x453   : > { %7330 = vmatprep.mubr.msk.f32.mxu1 %vm2686_vm7, %v10922_v60  ;;  %v12314_v60 = vld [vmem:[#allocation72_spill] sm:$0xff] }
 0x456   : > { %7331 = vmatmul.mubr.msk.f32.vlgmr.msra.gmra.mrb[22].mxu1 %vm2686_vm7, %v10935_v34  ;;  %v12315_v34 = vld [vmem:[#allocation73_spill] sm:$0xff] }
 0x457   : > { %7379 = vmatpush3.msk.msra.mxu1 %vm3137_vm5, %v6505_v38  ;;  %7333 = vmatprep.mubr.msk.f32.mxu1 %vm2686_vm7, %v10945_v39  ;;  %v12316_v39 = vld [vmem:[#allocation74_spill] sm:$0xff] }
 0x45a   : > { %7334 = vmatmul.mubr.msk.f32.gmra.mrb[24].mxu1 %vm2686_vm7, %v10952_v50  ;;  %v12299_v50 = vld [vmem:[#allocation105_spill] sm:$0xff] }
 0x45b   : > { %7336 = vmatprep.mubr.msk.f32.mxu1 %vm2686_vm7, %v10961_v46  ;;  %v12317_v46 = vld [vmem:[#allocation75_spill] sm:$0xff] }
 0x45e   : > { %7337 = vmatmul.mubr.msk.f32.gmra.mrb[26].mxu1 %vm2686_vm7, %v12295_v22 }
 0x45f   : > { %7339 = vmatprep.mubr.msk.f32.mxu1 %vm2686_vm7, %v10981_v13  ;;  %v12302_v13 = vld [vmem:[#allocation108_spill] sm:$0xff] }
 0x462   : > { %7340 = vmatmul.mubr.msk.f32.gmra.mrb[28].mxu1 %vm2686_vm7, %v12296_v11 }
 0x463   : > { %7342 = vmatprep.mubr.msk.f32.mxu1 %vm2686_vm7, %v11007_v35  ;;  %v12318_v35 = vld [vmem:[#allocation76_spill] sm:$0xff] }
 0x466   : > { %7343 = vmatmul.mubr.msk.f32.gmra.mrb[30].mxu1 %vm2686_vm7, %v12297_v40 }
 0x467   : > { %7345 = vmatprep.mubr.msk.f32.mxu1 %vm2686_vm7, %v12298_v23 }
 0x46a   : > { %7346 = vmatmul.mubr.msk.f32.gmra.mrb[0].mxu1 %vm2686_vm7, %v12299_v50 }
 0x46b   : > { %7348 = vmatprep.mubr.msk.f32.mxu1 %vm2686_vm7, %v12300_v4 }
 0x46e   : > { %7349 = vmatmul.mubr.msk.f32.gmra.mrb[2].mxu1 %vm2686_vm7, %v12301_v1 }
 0x46f   : > { %7351 = vmatprep.mubr.msk.f32.mxu1 %vm2686_vm7, %v12302_v13 }
 0x472   : > { %7352 = vmatmul.mubr.msk.f32.gmra.mrb[4].mxu1 %vm2686_vm7, %v12303_v49 }
 0x473   : > { %7354 = vmatprep.mubr.msk.f32.mxu1 %vm2686_vm7, %v11083_v45  ;;  %v12322_v45 = vld [vmem:[#allocation80_spill] sm:$0xff] }
 0x476   : > { %7355 = vmatmul.mubr.msk.f32.gmra.mrb[6].mxu1 %vm2686_vm7, %v12304_v9 }
 0x477   : > { %7357 = vmatprep.mubr.msk.f32.mxu1 %vm2686_vm7, %v12305_v63 }
 0x47a   : > { %7358 = vmatmul.mubr.msk.f32.gmra.mrb[8].mxu1 %vm2686_vm7, %v11111_v54  ;;  %v12323_v54 = vld [vmem:[#allocation81_spill] sm:$0xff] }
 0x47b   : > { %7360 = vmatprep.mubr.msk.f32.mxu1 %vm2686_vm7, %v11121_v28  ;;  %v12324_v28 = vld [vmem:[#allocation82_spill] sm:$0xff] }
 0x47e   : > { %7361 = vmatmul.mubr.msk.f32.gmra.mrb[10].mxu1 %vm2686_vm7, %v11130_v37  ;;  %v12319_v37 = vld [vmem:[#allocation77_spill] sm:$0xff] }
 0x47f   : > { %7363 = vmatprep.mubr.msk.f32.mxu1 %vm2686_vm7, %v11140_v27  ;;  %v12325_v27 = vld [vmem:[#allocation83_spill] sm:$0xff] }
 0x482   : > { %7364 = vmatmul.mubr.msk.f32.gmra.mrb[12].mxu1 %vm2686_vm7, %v12306_v16 }
 0x483   : > { %7366 = vmatprep.mubr.msk.f32.mxu1 %vm2686_vm7, %v12307_v7 }
 0x486   : > { %7367 = vmatmul.mubr.msk.f32.gmra.mrb[14].mxu1 %vm2686_vm7, %v12308_v8 }
 0x487   : > { %7369 = vmatprep.mubr.msk.f32.mxu1 %vm2686_vm7, %v12309_v12 }
 0x48a   : > { %7370 = vmatmul.mubr.msk.f32.gmra.mrb[16].mxu1 %vm2686_vm7, %v11191_v33  ;;  %v12328_v33 = vld [vmem:[#allocation88_spill] sm:$0xff] }
 0x48b   : > { %7372 = vmatprep.mubr.msk.f32.mxu1 %vm2686_vm7, %v12311_v47 }
 0x48e   : > { %7373 = vmatmul.mubr.msk.f32.gmra.mrb[18].mxu1 %vm2686_vm7, %v12312_v5 }
 0x48f   : > { %7375 = vmatprep.mubr.msk.f32.mxu1 %vm2686_vm7, %v5144_v15 }
 0x492   : > { %7376 = vmatmul.mubr.msk.f32.gmra.mrb[20].mxu1 %vm2686_vm7, %v5146_v58 }
 0x493   : > { %7380 = vmatprep.mubr.msk.f32.mxu1 %vm2686_vm7, %v11249_v0  ;;  %v12331_v0 = vld [vmem:[#allocation93_spill] sm:$0xff] }
 0x496   : > { %7381 = vmatmul.mubr.msk.f32.vlgmr.msra.gmra.mrb[22].mxu1 %vm2686_vm7, %v11257_v57  ;;  %v12320_v57 = vld [vmem:[#allocation78_spill] sm:$0xff] }
 0x497   : > { %7383 = vmatprep.mubr.msk.f32.mxu1 %vm2686_vm7, %v11267_v41 }
 0x49a   : > { %7384 = vmatmul.mubr.msk.f32.gmra.mrb[24].mxu1 %vm2686_vm7, %v11276_v48  ;;  %v12321_v48 = vld [vmem:[#allocation79_spill] sm:$0xff] }
 0x49b   : > { %7386 = vmatprep.mubr.msk.f32.mxu1 %vm2686_vm7, %v11285_v10  ;;  %v5413_v10 = vrot.slane %v11508_v6, 2 }
 0x49e   : > { %7387 = vmatmul.mubr.msk.f32.gmra.mrb[26].mxu1 %vm2686_vm7, %v11292_v30  ;;  %v5414_v30 = vrot.slane %v10971_v56, 2 }
 0x49f   : > { %7389 = vmatprep.mubr.msk.f32.mxu1 %vm2686_vm7, %v12270_v44 }
 0x4a0   : > { %v5415_v19 = vsel %vm571_vm0, %v5413_v10, %v5414_v30  ;;  %v5417_v38 = vsel %vm571_vm0, %v5414_v30, %v5416_v17 }
 0x4a2   : > { %7390 = vmatmul.mubr.msk.f32.gmra.mrb[28].mxu1 %vm2686_vm7, %v12313_v32 }
 0x4a3   : > { %7392 = vmatprep.mubr.msk.f32.mxu1 %vm2686_vm7, %v12314_v60 }
 0x4a6   : > { %7393 = vmatmul.mubr.msk.f32.gmra.mrb[30].mxu1 %vm2686_vm7, %v12315_v34 }
 0x4a7   : > { %7395 = vmatprep.mubr.msk.f32.mxu1 %vm2686_vm7, %v12316_v39 }
 0x4aa   : > { %7396 = vmatmul.mubr.msk.f32.gmra.mrb[0].mxu1 %vm2686_vm7, %v12317_v46 }
 0x4ab   : > { %7398 = vmatprep.mubr.msk.f32.mxu1 %vm2686_vm7, %v12318_v35 }
 0x4ae   : > { %7399 = vmatmul.mubr.msk.f32.gmra.mrb[2].mxu1 %vm2686_vm7, %v12319_v37 }
 0x4af   : > { %7401 = vmatprep.mubr.msk.f32.mxu1 %vm2686_vm7, %v12320_v57 }
 0x4b2   : > { %7402 = vmatmul.mubr.msk.f32.gmra.mrb[4].mxu1 %vm2686_vm7, %v12321_v48 }
 0x4b3   : > { %7404 = vmatprep.mubr.msk.f32.mxu1 %vm2686_vm7, %v12322_v45 }
 0x4b6   : > { %7405 = vmatmul.mubr.msk.f32.gmra.mrb[6].mxu1 %vm2686_vm7, %v12323_v54 }
 0x4b7   : > { %7407 = vmatprep.mubr.msk.f32.mxu1 %vm2686_vm7, %v12324_v28 }
 0x4ba   : > { %7408 = vmatmul.mubr.msk.f32.gmra.mrb[8].mxu1 %vm2686_vm7, %v12325_v27 }
 0x4bb   : > { %7410 = vmatprep.mubr.msk.f32.mxu1 %vm2686_vm7, %v12326_v21 }
 0x4be   : > { %7411 = vmatmul.mubr.msk.f32.gmra.mrb[10].mxu1 %vm2686_vm7, %v12327_v51 }
 0x4bf   : > { %7413 = vmatprep.mubr.msk.f32.mxu1 %vm2686_vm7, %v12328_v33 }
 0x4c2   : > { %7414 = vmatmul.mubr.msk.f32.gmra.mrb[12].mxu1 %vm2686_vm7, %v12329_v61 }
 0x4c3   : > { %7416 = vmatprep.mubr.msk.f32.mxu1 %vm2686_vm7, %v12330_v55 }
 0x4c6   : > { %7417 = vmatmul.mubr.msk.f32.gmra.mrb[14].mxu1 %vm2686_vm7, %v12290_v18 }
 0x4c7   : > { %7419 = vmatprep.mubr.msk.f32.mxu1 %vm2686_vm7, %v12331_v0 }
 0x4c9   : > { %v11639_v41 = vpop.f32.mrb[118].mxu0 }
 0x4ca   : > { %v11643_v44 = vpop.f32.mrb[119].mxu0  ;;  %7420 = vmatmul.mubr.msk.f32.gmra.mrb[16].mxu1 %vm2686_vm7, %v12292_v62 }
 0x4cb   : > { %7422 = vmatprep.mubr.msk.f32.mxu1 %vm2686_vm7, %v11394_v59 }
 0x4cd   : > { %v11649_v43 = vpop.f32.mrb[120].mxu0 }
 0x4ce   : > { %v11651_v18 = vpop.f32.mrb[121].mxu0  ;;  %7423 = vmatmul.mubr.msk.f32.gmra.mrb[18].mxu1 %vm2686_vm7, %v11401_v24 }
 0x4cf   : > { %7425 = vmatprep.mubr.msk.f32.mxu1 %vm2686_vm7, %v5415_v19 }
 0x4d1   : > { %v11657_v56 = vpop.f32.mrb[122].mxu0 }
 0x4d2   : > { %v11660_v62 = vpop.f32.mrb[123].mxu0  ;;  %7426 = vmatmul.mubr.msk.f32.gmra.mrb[20].mxu1 %vm2686_vm7, %v5417_v38 }
 0x4d5   : > { %v11663_v59 = vpop.f32.mrb[124].mxu0 }
 0x4d6   : > { %v11665_v14 = vpop.f32.mrb[125].mxu0 }
 0x4d9   : > { %v11667_v29 = vpop.f32.mrb[126].mxu0 }
 0x4da   : > { %v11669_v52 = vpop.f32.mrb[127].mxu0 }
 0x4dd   : > { %v11671_v24 = vpop.f32.mrb[128].mxu0 }
 0x4de   : > { %v11673_v20 = vpop.f32.mrb[129].mxu0 }
 0x4e1   : > { %v11675_v31 = vpop.f32.mrb[130].mxu0 }
 0x4e2   : > { %v11677_v26 = vpop.f32.mrb[131].mxu0 }
 0x4e5   : > { %v11679_v2 = vpop.f32.mrb[132].mxu0 }
 0x4e6   : > { %v11681_v6 = vpop.f32.mrb[133].mxu0 }
 0x4e9   : > { %v11683_v22 = vpop.f32.mrb[134].mxu0 }
 0x4ea   : > { %v11685_v11 = vpop.f32.mrb[135].mxu0 }
 0x4ed   : > { %v11687_v40 = vpop.f32.mrb[136].mxu0 }
 0x4ee   : > { %v11689_v23 = vpop.f32.mrb[137].mxu0 }
 0x4f1   : > { %v11691_v50 = vpop.f32.mrb[138].mxu0 }
 0x4f2   : > { %v11693_v4 = vpop.f32.mrb[139].mxu0 }
 0x4f5   : > { %v7082_v1 = vpop.f32.mrb[108].mxu0 }
 0x4f6   : > { %v3873_v13 = vpop.f32.mrb[109].mxu0 }
 0x4f9   : > { %v7085_v49 = vpop.f32.mrb[110].mxu0 }
 0x4fa   : > { %v3883_v9 = vpop.f32.mrb[111].mxu0 }
 0x4fd   : > { %v7088_v63 = vpop.f32.mrb[112].mxu0 }
 0x4fe   : > { %v3893_v16 = vpop.f32.mrb[113].mxu0 }
 0x501   : > { %v7091_v7 = vpop.f32.mrb[114].mxu0 }
 0x502   : > { %v3903_v8 = vpop.f32.mrb[115].mxu0 }
 0x505   : > { %v7094_v12 = vpop.f32.mrb[116].mxu0 }
 0x506   : > { %v3913_v36 = vpop.f32.mrb[117].mxu0 }
 0x569   : > { %v7382_v3 = vpop.f32.mrb[22].mxu1 }
 0x56a   : > { %v7486_v42 = vadd.f32 %v7382_v3, %v7082_v1  ;;  %v5493_v47 = vpop.f32.mrb[23].mxu1 }
 0x56b   : > { %v7487_v53 = vadd.f32 %v5493_v47, %v3873_v13 }
 0x56c   : > { %v5692_v5 = vadd.f32 %v7486_v42, %v11698_v25 }
 0x56d   : > { %v5691_v15 = vadd.f32 %v7487_v53, %v11698_v25  ;;  %v7385_v58 = vpop.f32.mrb[24].mxu1 }
 0x56e   : > { %v6541_v32 = vmul.f32 -1.442695, %v5692_v5  ;;  %v7488_v60 = vadd.f32 %v7385_v58, %v7085_v49  ;;  %v5503_v34 = vpop.f32.mrb[25].mxu1 }
 0x56f   : > { %v6540_v39 = vmul.f32 -1.442695, %v5691_v15  ;;  %v7489_v46 = vadd.f32 %v5503_v34, %v3883_v9 }
 0x570   : > { %8351 = vpow2.f32 %v6541_v32  ;;  %v5694_v35 = vadd.f32 %v7488_v60, %v11698_v25 }
 0x571   : > { %8353 = vpow2.f32 %v6540_v39  ;;  %v5693_v37 = vadd.f32 %v7489_v46, %v11698_v25  ;;  %v7388_v57 = vpop.f32.mrb[26].mxu1 }
 0x572   : > { %v6543_v48 = vmul.f32 -1.442695, %v5694_v35  ;;  %v7490_v45 = vadd.f32 %v7388_v57, %v7088_v63  ;;  %v5513_v54 = vpop.f32.mrb[27].mxu1 }
 0x573   : > { %v6542_v28 = vmul.f32 -1.442695, %v5693_v37  ;;  %v7491_v27 = vadd.f32 %v5513_v54, %v3893_v16 }
 0x574   : > { %8355 = vpow2.f32 %v6543_v48  ;;  %v5696_v21 = vadd.f32 %v7490_v45, %v11698_v25 }
 0x575   : > { %8357 = vpow2.f32 %v6542_v28  ;;  %v5695_v51 = vadd.f32 %v7491_v27, %v11698_v25  ;;  %v7391_v33 = vpop.f32.mrb[28].mxu1 }
 0x576   : > { %v6545_v61 = vmul.f32 -1.442695, %v5696_v21  ;;  %v7492_v55 = vadd.f32 %v7391_v33, %v7091_v7  ;;  %v5523_v0 = vpop.f32.mrb[29].mxu1 }
 0x577   : > { %v6544_v10 = vmul.f32 -1.442695, %v5695_v51  ;;  %v7493_v30 = vadd.f32 %v5523_v0, %v3903_v8 }
 0x578   : > { %8359 = vpow2.f32 %v6545_v61  ;;  %v5698_v17 = vadd.f32 %v7492_v55, %v11698_v25 }
 0x579   : > { %8361 = vpow2.f32 %v6544_v10  ;;  %v5697_v19 = vadd.f32 %v7493_v30, %v11698_v25  ;;  %v7394_v38 = vpop.f32.mrb[30].mxu1 }
 0x57a   : > { %v8352_v1 = vpop.eup %8351  ;;  %v6547_v13 = vmul.f32 -1.442695, %v5698_v17  ;;  %v7494_v49 = vadd.f32 %v7394_v38, %v7094_v12  ;;  %v5533_v9 = vpop.f32.mrb[31].mxu1 }
 0x57b   : > { %v8354_v63 = vpop.eup %8353  ;;  %v5820_v16 = vadd.f32 1.0, %v8352_v1  ;;  %v6546_v3 = vmul.f32 -1.442695, %v5697_v19  ;;  %v7495_v42 = vadd.f32 %v5533_v9, %v3913_v36  ;;  %v12332_v1 = vld [vmem:[#allocation11_spill] sm:$0xff] }
 0x57c   : > { %v5819_v47 = vadd.f32 1.0, %v8354_v63  ;;  %8363 = vpow2.f32 %v6547_v13  ;;  %v5700_v7 = vadd.f32 %v7494_v49, %v11698_v25  ;;  %v12333_v63 = vld [vmem:[#allocation13_spill] sm:$0xff] }
 0x57d   : > { %8365 = vrcp.f32 %v5820_v16  ;;  %v5699_v8 = vadd.f32 %v7495_v42, %v11698_v25  ;;  %v7397_v53 = vpop.f32.mrb[0].mxu1 }
 0x57e   : > { %v8356_v5 = vpop.eup %8355  ;;  %8367 = vrcp.f32 %v5819_v47  ;;  %v6549_v15 = vmul.f32 -1.442695, %v5700_v7  ;;  %v7496_v58 = vadd.f32 %v7397_v53, %v11639_v41  ;;  %v5543_v32 = vpop.f32.mrb[1].mxu1  ;;  %v12334_v47 = vld [vmem:[#allocation6_spill] sm:$0xff] }
 0x57f   : > { %v8358_v12 = vpop.eup %8357  ;;  %v5822_v60 = vadd.f32 1.0, %v8356_v5  ;;  %8369 = vpow2.f32 %v6546_v3  ;;  %v6548_v34 = vmul.f32 -1.442695, %v5699_v8  ;;  %v7497_v36 = vadd.f32 %v5543_v32, %v11643_v44 }
 0x580   : > { %v5821_v39 = vadd.f32 1.0, %v8358_v12  ;;  %8371 = vpow2.f32 %v6549_v15  ;;  %v5702_v46 = vadd.f32 %v7496_v58, %v11698_v25  ;;  %v12335_v15 = vld [vmem:[#allocation5_spill] sm:$0xff] }
 0x581   : > { %8373 = vrcp.f32 %v5822_v60  ;;  %v5701_v35 = vadd.f32 %v7497_v36, %v11698_v25  ;;  %v7400_v37 = vpop.f32.mrb[2].mxu1  ;;  %v12336_v36 = vld [vmem:[#allocation15_spill] sm:$0xff] }
 0x582   : > { %v8360_v57 = vpop.eup %8359  ;;  %8375 = vrcp.f32 %v5821_v39  ;;  %v6551_v48 = vmul.f32 -1.442695, %v5702_v46  ;;  %v7498_v41 = vadd.f32 %v7400_v37, %v11649_v43  ;;  %v5553_v45 = vpop.f32.mrb[3].mxu1  ;;  %v12337_v37 = vld [vmem:[#allocation17_spill] sm:$0xff] }
 0x583   : > { %v8362_v54 = vpop.eup %8361  ;;  %v5824_v28 = vadd.f32 1.0, %v8360_v57  ;;  %8377 = vpow2.f32 %v6548_v34  ;;  %v6550_v44 = vmul.f32 -1.442695, %v5701_v35  ;;  %v7499_v27 = vadd.f32 %v5553_v45, %v11651_v18  ;;  %v12338_v45 = vld [vmem:[#allocation8_spill] sm:$0xff] }
 0x584   : > { %v5823_v21 = vadd.f32 1.0, %v8362_v54  ;;  %8379 = vpow2.f32 %v6551_v48  ;;  %v5704_v51 = vadd.f32 %v7498_v41, %v11698_v25 }
 0x585   : > { %8381 = vrcp.f32 %v5824_v28  ;;  %v5703_v33 = vadd.f32 %v7499_v27, %v11698_v25  ;;  %v7403_v61 = vpop.f32.mrb[4].mxu1 }
 0x586   : > { %v8364_v55 = vpop.eup %8363  ;;  %8383 = vrcp.f32 %v5823_v21  ;;  %v6553_v43 = vmul.f32 -1.442695, %v5704_v51  ;;  %v7500_v0 = vadd.f32 %v7403_v61, %v11657_v56  ;;  %v5563_v10 = vpop.f32.mrb[5].mxu1  ;;  %v12339_v21 = vld [vmem:[#allocation7_spill] sm:$0xff] }
 0x587   : > { %v8366_v30 = vpop.eup %8365  ;;  %v5826_v17 = vadd.f32 1.0, %v8364_v55  ;;  %8385 = vpow2.f32 %v6550_v44  ;;  %v6552_v18 = vmul.f32 -1.442695, %v5703_v33  ;;  %v7501_v19 = vadd.f32 %v5563_v10, %v11660_v62 }
 0x588   : > { %v8368_v38 = vpop.eup %8367  ;;  %v5916_v13 = vmul.f32 %v8366_v30, %v12332_v1  ;;  %8387 = vpow2.f32 %v6553_v43  ;;  %v5706_v49 = vadd.f32 %v7500_v0, %v11698_v25  ;;  %v12340_v43 = vld [vmem:[#allocation19_spill] sm:$0xff] }
 0x589   : > { %v8370_v9 = vpop.eup %8369  ;;  %v5915_v16 = vmul.f32 %v8368_v38, %v12333_v63  ;;  %8389 = vrcp.f32 %v5826_v17  ;;  %v5705_v56 = vadd.f32 %v7501_v19, %v11698_v25  ;;  %v7406_v3 = vpop.f32.mrb[6].mxu1 }
 0x58a   : > { %v8372_v42 = vpop.eup %8371  ;;  %v5948_v7 = vadd.f32 %v5916_v13, %v12334_v47  ;;  %v5825_v8 = vadd.f32 1.0, %v8370_v9  ;;  %8391 = vpow2.f32 %v6552_v18  ;;  %v6555_v62 = vmul.f32 -1.442695, %v5706_v49  ;;  %v5573_v53 = vpop.f32.mrb[7].mxu1  ;;  %v12341_v18 = vld [vmem:[#allocation21_spill] sm:$0xff]  ;;  %v12342_v49 = vld [vmem:[#allocation10_spill] sm:$0xff] }
 0x58b   : > { %v8374_v5 = vpop.eup %8373  ;;  %v5947_v58 = vadd.f32 %v5915_v16, %v12335_v15  ;;  %v5828_v32 = vadd.f32 1.0, %v8372_v42  ;;  %v6554_v12 = vmul.f32 -1.442695, %v5705_v56  ;;  %v7502_v60 = vadd.f32 %v7406_v3, %v11663_v59  ;;  %v12343_v3 = vld [vmem:[#allocation9_spill] sm:$0xff] }
 0x58c   : > { %v8376_v34 = vpop.eup %8375  ;;  %5980 = vst.msk [vmem:[%s11733_s22 + $0x8] sm:$0xff] %vm1372_vm2, %v5948_v7  ;;  %v5918_v39 = vmul.f32 %v8374_v5, %v12336_v36  ;;  %8393 = vrcp.f32 %v5825_v8  ;;  %v7503_v46 = vadd.f32 %v5573_v53, %v11665_v14 }
 0x58d   : > { %v8378_v35 = vpop.eup %8377  ;;  %5979 = vst.msk [vmem:[%s11733_s22] sm:$0xff] %vm1372_vm2, %v5947_v58  ;;  %v5917_v57 = vmul.f32 %v8376_v34, %v12337_v37  ;;  %8395 = vrcp.f32 %v5828_v32  ;;  %v5708_v59 = vadd.f32 %v7502_v60, %v11698_v25  ;;  %v7409_v48 = vpop.f32.mrb[8].mxu1  ;;  %v12345_v34 = vld [vmem:[#allocation14_spill] sm:$0xff] }
 0x58e   : > { %v8380_v41 = vpop.eup %8379  ;;  %v5950_v54 = vadd.f32 %v5918_v39, %v12338_v45  ;;  %v5827_v28 = vadd.f32 1.0, %v8378_v35  ;;  %8397 = vpow2.f32 %v6555_v62  ;;  %v5707_v44 = vadd.f32 %v7503_v46, %v11698_v25  ;;  %v5583_v27 = vpop.f32.mrb[9].mxu1 }
 0x58f   : > { %v8382_v14 = vpop.eup %8381  ;;  %v5949_v51 = vadd.f32 %v5917_v57, %v12339_v21  ;;  %v5830_v33 = vadd.f32 1.0, %v8380_v41  ;;  %8399 = vpow2.f32 %v6554_v12  ;;  %v6557_v61 = vmul.f32 -1.442695, %v5708_v59 }
 0x590   : > { %v8384_v55 = vpop.eup %8383  ;;  %5982 = vst.msk [vmem:[%s11733_s22 + $0x18] sm:$0xff] %vm1372_vm2, %v5950_v54  ;;  %v5920_v0 = vmul.f32 %v8382_v14, %v12340_v43  ;;  %8401 = vrcp.f32 %v5827_v28  ;;  %v6556_v10 = vmul.f32 -1.442695, %v5707_v44  ;;  %v7504_v30 = vadd.f32 %v7409_v48, %v11667_v29  ;;  %v12348_v44 = vld [vmem:[#allocation12_spill] sm:$0xff] }
 0x591   : > { %v8386_v17 = vpop.eup %8385  ;;  %5981 = vst.msk [vmem:[%s11733_s22 + $0x10] sm:$0xff] %vm1372_vm2, %v5949_v51  ;;  %v5919_v19 = vmul.f32 %v8384_v55, %v12341_v18  ;;  %8403 = vrcp.f32 %v5830_v33  ;;  %v7505_v38 = vadd.f32 %v5583_v27, %v11669_v52  ;;  %v7412_v1 = vpop.f32.mrb[10].mxu1  ;;  %v12344_v52 = vld [vmem:[#allocation23_spill] sm:$0xff] }
 0x592   : > { %v8388_v13 = vpop.eup %8387  ;;  %v5952_v9 = vadd.f32 %v5920_v0, %v12342_v49  ;;  %v5829_v63 = vadd.f32 1.0, %v8386_v17  ;;  %8405 = vpow2.f32 %v6557_v61  ;;  %v5710_v16 = vadd.f32 %v7504_v30, %v11698_v25  ;;  %v5593_v56 = vpop.f32.mrb[11].mxu1  ;;  %v12349_v61 = vld [vmem:[#allocation18_spill] sm:$0xff]  ;;  %v12350_v17 = vld [vmem:[#allocation29_spill] sm:$0xff] }
 0x593   : > { %v8390_v29 = vpop.eup %8389  ;;  %v5951_v42 = vadd.f32 %v5919_v19, %v12343_v3  ;;  %v5832_v47 = vadd.f32 1.0, %v8388_v13  ;;  %8407 = vpow2.f32 %v6556_v10  ;;  %v5709_v7 = vadd.f32 %v7505_v38, %v11698_v25 }
 0x594   : > { %v8392_v8 = vpop.eup %8391  ;;  %5984 = vst.msk [vmem:[%s11733_s22 + $0x28] sm:$0xff] %vm1372_vm2, %v5952_v9  ;;  %v5922_v62 = vmul.f32 %v8390_v29, %v12344_v52  ;;  %8409 = vrcp.f32 %v5829_v63  ;;  %v6559_v53 = vmul.f32 -1.442695, %v5710_v16  ;;  %v7506_v5 = vadd.f32 %v7412_v1, %v11671_v24  ;;  %v12346_v24 = vld [vmem:[#allocation25_spill] sm:$0xff]  ;;  %v12351_v1 = vld [vmem:[#allocation31_spill] sm:$0xff]  ;;  %v12352_v16 = vld [vmem:[#allocation16_spill] sm:$0xff] }
 0x595   : > { %5983 = vst.msk [vmem:[%s11733_s22 + $0x20] sm:$0xff] %vm1372_vm2, %v5951_v42  ;;  %8411 = vrcp.f32 %v5832_v47  ;;  %v5831_v15 = vadd.f32 1.0, %v8392_v8  ;;  %v6558_v58 = vmul.f32 -1.442695, %v5709_v7  ;;  %v7507_v32 = vadd.f32 %v5593_v56, %v11673_v20  ;;  %v7415_v12 = vpop.f32.mrb[12].mxu1  ;;  %v12347_v20 = vld [vmem:[#allocation27_spill] sm:$0xff] }
 0x596   : > { %v8394_v60 = vpop.eup %8393  ;;  %v5954_v36 = vadd.f32 %v5922_v62, %v12345_v34  ;;  %8413 = vpow2.f32 %v6559_v53  ;;  %v5712_v39 = vadd.f32 %v7506_v5, %v11698_v25  ;;  %v7508_v46 = vadd.f32 %v7415_v12, %v11675_v31  ;;  %v5603_v35 = vpop.f32.mrb[13].mxu1  ;;  %v12353_v47 = vld [vmem:[#allocation22_spill] sm:$0xff]  ;;  %v12355_v12 = vld [vmem:[#allocation35_spill] sm:$0xff] }
 0x597   : > { %v8396_v37 = vpop.eup %8395  ;;  %v5921_v57 = vmul.f32 %v8394_v60, %v12346_v24  ;;  %8415 = vrcp.f32 %v5831_v15  ;;  %v5711_v59 = vadd.f32 %v7507_v32, %v11698_v25  ;;  %v7509_v48 = vadd.f32 %v5603_v35, %v11677_v26 }
 0x598   : > { %v8398_v41 = vpop.eup %8397  ;;  %5986 = vst.msk [vmem:[%s11733_s22 + $0x38] sm:$0xff] %vm1372_vm2, %v5954_v36  ;;  %v5924_v45 = vmul.f32 %v8396_v37, %v12347_v20  ;;  %8417 = vpow2.f32 %v6558_v58  ;;  %v6561_v54 = vmul.f32 -1.442695, %v5712_v39  ;;  %v5714_v28 = vadd.f32 %v7508_v46, %v11698_v25  ;;  %v12356_v46 = vld [vmem:[#allocation20_spill] sm:$0xff] }
 0x599   : > { %v8400_v31 = vpop.eup %8399  ;;  %v5953_v27 = vadd.f32 %v5921_v57, %v12348_v44  ;;  %v5834_v14 = vadd.f32 1.0, %v8398_v41  ;;  %v6560_v21 = vmul.f32 -1.442695, %v5711_v59  ;;  %v5713_v51 = vadd.f32 %v7509_v48, %v11698_v25  ;;  %v7418_v33 = vpop.f32.mrb[14].mxu1  ;;  %v12357_v59 = vld [vmem:[#allocation26_spill] sm:$0xff]  ;;  %v12358_v41 = vld [vmem:[#allocation45_spill] sm:$0xff] }
 0x59a   : > { %v8402_v26 = vpop.eup %8401  ;;  %v5956_v55 = vadd.f32 %v5924_v45, %v12349_v61  ;;  %v5833_v43 = vadd.f32 1.0, %v8400_v31  ;;  %8419 = vpow2.f32 %v6561_v54  ;;  %v6563_v0 = vmul.f32 -1.442695, %v5714_v28  ;;  %v5613_v10 = vpop.f32.mrb[15].mxu1 }
 0x59b   : > { %v8404_v30 = vpop.eup %8403  ;;  %5985 = vst.msk [vmem:[%s11733_s22 + $0x30] sm:$0xff] %vm1372_vm2, %v5953_v27  ;;  %v5923_v18 = vmul.f32 %v8402_v26, %v12350_v17  ;;  %8421 = vrcp.f32 %v5834_v14  ;;  %v7510_v19 = vadd.f32 %v7418_v33, %v11679_v2  ;;  %v6562_v49 = vmul.f32 -1.442695, %v5713_v51  ;;  %v12359_v27 = vld [vmem:[#allocation24_spill] sm:$0xff] }
 0x59c   : > { %v8406_v38 = vpop.eup %8405  ;;  %5988 = vst.msk [vmem:[%s11733_s22 + $0x48] sm:$0xff] %vm1372_vm2, %v5956_v55  ;;  %v5926_v13 = vmul.f32 %v8404_v30, %v12351_v1  ;;  %8423 = vrcp.f32 %v5833_v43  ;;  %v7511_v9 = vadd.f32 %v5613_v10, %v11681_v6  ;;  %v12354_v6 = vld [vmem:[#allocation33_spill] sm:$0xff] }
 0x59d   : > { %v8408_v63 = vpop.eup %8407  ;;  %v5955_v56 = vadd.f32 %v5923_v18, %v12352_v16  ;;  %v5836_v29 = vadd.f32 1.0, %v8406_v38  ;;  %8425 = vpow2.f32 %v6560_v21  ;;  %v5716_v3 = vadd.f32 %v7510_v19, %v11698_v25  ;;  %v7421_v42 = vpop.f32.mrb[16].mxu1  ;;  %v12361_v19 = vld [vmem:[#allocation49_spill] sm:$0xff] }
 0x59e   : > { %v8410_v2 = vpop.eup %8409  ;;  %v5958_v7 = vadd.f32 %v5926_v13, %v12353_v47  ;;  %v5835_v8 = vadd.f32 1.0, %v8408_v63  ;;  %8427 = vpow2.f32 %v6563_v0  ;;  %v5715_v52 = vadd.f32 %v7511_v9, %v11698_v25  ;;  %v5623_v62 = vpop.f32.mrb[17].mxu1  ;;  %v12360_v0 = vld [vmem:[#allocation47_spill] sm:$0xff] }
 0x59f   : > { %v8412_v53 = vpop.eup %8411  ;;  %5987 = vst.msk [vmem:[%s11733_s22 + $0x40] sm:$0xff] %vm1372_vm2, %v5955_v56  ;;  %v5925_v5 = vmul.f32 %v8410_v2, %v12354_v6  ;;  %8429 = vrcp.f32 %v5836_v29  ;;  %v6565_v15 = vmul.f32 -1.442695, %v5716_v3  ;;  %v7512_v58 = vadd.f32 %v7421_v42, %v11683_v22  ;;  %v12363_v29 = vld [vmem:[#allocation28_spill] sm:$0xff]  ;;  %v12364_v47 = vld [vmem:[#allocation51_spill] sm:$0xff] }
 0x5a0   : > { %v8414_v32 = vpop.eup %8413  ;;  %5990 = vst.msk [vmem:[%s11733_s22 + $0x58] sm:$0xff] %vm1372_vm2, %v5958_v7  ;;  %v5928_v60 = vmul.f32 %v8412_v53, %v12355_v12  ;;  %8431 = vrcp.f32 %v5835_v8  ;;  %v6564_v34 = vmul.f32 -1.442695, %v5715_v52  ;;  %v7513_v36 = vadd.f32 %v5623_v62, %v11685_v11  ;;  %v12365_v52 = vld [vmem:[#allocation53_spill] sm:$0xff] }
 0x5a1   : > { %v8416_v39 = vpop.eup %8415  ;;  %v5957_v35 = vadd.f32 %v5925_v5, %v12356_v46  ;;  %v5838_v37 = vadd.f32 1.0, %v8414_v32  ;;  %8433 = vpow2.f32 %v6562_v49  ;;  %v5718_v24 = vadd.f32 %v7512_v58, %v11698_v25  ;;  %v7424_v57 = vpop.f32.mrb[18].mxu1  ;;  %v12362_v49 = vld [vmem:[#allocation30_spill] sm:$0xff] }
 0x5a2   : > { %v8418_v22 = vpop.eup %8417  ;;  %v5960_v48 = vadd.f32 %v5928_v60, %v12357_v59  ;;  %v5927_v20 = vmul.f32 %v8416_v39, %v12358_v41  ;;  %8435 = vpow2.f32 %v6565_v15  ;;  %v5717_v45 = vadd.f32 %v7513_v36, %v11698_v25  ;;  %v5633_v54 = vpop.f32.mrb[19].mxu1  ;;  %v12366_v5 = vld [vmem:[#allocation34_spill] sm:$0xff]  ;;  %v12367_v60 = vld [vmem:[#allocation32_spill] sm:$0xff]  ;;  %v12368_v39 = vld [vmem:[#allocation55_spill] sm:$0xff] }
 0x5a3   : > { %5989 = vst.msk [vmem:[%s11733_s22 + $0x50] sm:$0xff] %vm1372_vm2, %v5957_v35  ;;  %8437 = vrcp.f32 %v5838_v37  ;;  %v5837_v11 = vadd.f32 1.0, %v8418_v22  ;;  %v6567_v28 = vmul.f32 -1.442695, %v5718_v24  ;;  %v7514_v31 = vadd.f32 %v7424_v57, %v11687_v40  ;;  %v12369_v57 = vld [vmem:[#allocation37_spill] sm:$0xff]  ;;  %v12370_v59 = vld [vmem:[#allocation56_spill] sm:$0xff] }
 0x5a4   : > { %v8420_v44 = vpop.eup %8419  ;;  %5992 = vst.msk [vmem:[%s11733_s22 + $0x68] sm:$0xff] %vm1372_vm2, %v5960_v48  ;;  %v5959_v14 = vadd.f32 %v5927_v20, %v12359_v27  ;;  %8439 = vpow2.f32 %v6564_v34  ;;  %v6566_v21 = vmul.f32 -1.442695, %v5717_v45  ;;  %v7515_v51 = vadd.f32 %v5633_v54, %v11689_v23  ;;  %v12371_v54 = vld [vmem:[#allocation36_spill] sm:$0xff] }
 0x5a5   : > { %v8422_v33 = vpop.eup %8421  ;;  %8441 = vrcp.f32 %v5837_v11  ;;  %v5840_v26 = vadd.f32 1.0, %v8420_v44  ;;  %v5720_v61 = vadd.f32 %v7514_v31, %v11698_v25  ;;  %v7427_v55 = vpop.f32.mrb[20].mxu1 }
 0x5a6   : > { %v8424_v43 = vpop.eup %8423  ;;  %5991 = vst.msk [vmem:[%s11733_s22 + $0x60] sm:$0xff] %vm1372_vm2, %v5959_v14  ;;  %v5930_v40 = vmul.f32 %v8422_v33, %v12360_v0  ;;  %8443 = vpow2.f32 %v6567_v28  ;;  %v5719_v10 = vadd.f32 %v7515_v51, %v11698_v25  ;;  %v7516_v30 = vadd.f32 %v7427_v55, %v11691_v50  ;;  %v5643_v17 = vpop.f32.mrb[21].mxu1  ;;  %v12372_v28 = vld [vmem:[#allocation57_spill] sm:$0xff]  ;;  %v12375_v0 = vld [vmem:[#allocation59_spill] sm:$0xff] }
 0x5a7   : > { %v8426_v18 = vpop.eup %8425  ;;  %v5929_v23 = vmul.f32 %v8424_v43, %v12361_v19  ;;  %8445 = vrcp.f32 %v5840_v26  ;;  %v6569_v38 = vmul.f32 -1.442695, %v5720_v61  ;;  %v7517_v1 = vadd.f32 %v5643_v17, %v11693_v4  ;;  %v12374_v61 = vld [vmem:[#allocation58_spill] sm:$0xff] }
 0x5a8   : > { %v8428_v13 = vpop.eup %8427  ;;  %v5962_v9 = vadd.f32 %v5930_v40, %v12362_v49  ;;  %v5839_v63 = vadd.f32 1.0, %v8426_v18  ;;  %8447 = vpow2.f32 %v6566_v21  ;;  %v6568_v16 = vmul.f32 -1.442695, %v5719_v10  ;;  %v12373_v21 = vld [vmem:[#allocation39_spill] sm:$0xff]  ;;  %v12378_v49 = vld [vmem:[#allocation60_spill] sm:$0xff] }
 0x5a9   : > { %v8430_v56 = vpop.eup %8429  ;;  %v5961_v3 = vadd.f32 %v5929_v23, %v12363_v29  ;;  %v5842_v50 = vadd.f32 1.0, %v8428_v13  ;;  %8449 = vpow2.f32 %v6569_v38  ;;  %v5722_v42 = vadd.f32 %v7516_v30, %v11698_v25  ;;  %v12376_v30 = vld [vmem:[#allocation38_spill] sm:$0xff]  ;;  %v12377_v23 = vld [vmem:[#allocation41_spill] sm:$0xff] }
 0x5aa   : > { %v8432_v2 = vpop.eup %8431  ;;  %5994 = vst.msk [vmem:[%s11733_s22 + $0x78] sm:$0xff] %vm1372_vm2, %v5962_v9  ;;  %v5932_v7 = vmul.f32 %v8430_v56, %v12364_v47  ;;  %8451 = vrcp.f32 %v5839_v63  ;;  %v5721_v4 = vadd.f32 %v7517_v1, %v11698_v25 }
 0x5ab   : > { %v8434_v8 = vpop.eup %8433  ;;  %5993 = vst.msk [vmem:[%s11733_s22 + $0x70] sm:$0xff] %vm1372_vm2, %v5961_v3  ;;  %v5931_v62 = vmul.f32 %v8432_v2, %v12365_v52  ;;  %8453 = vrcp.f32 %v5842_v50  ;;  %v6571_v53 = vmul.f32 -1.442695, %v5722_v42  ;;  %v12380_v3 = vld [vmem:[#allocation40_spill] sm:$0xff]  ;;  %v12381_v2 = vld [vmem:[#allocation43_spill] sm:$0xff]  ;;  %v12383_v52 = vld [vmem:[#allocation42_spill] sm:$0xff] }
 0x5ac   : > { %v8436_v6 = vpop.eup %8435  ;;  %v5964_v15 = vadd.f32 %v5932_v7, %v12366_v5  ;;  %v5841_v58 = vadd.f32 1.0, %v8434_v8  ;;  %8455 = vpow2.f32 %v6568_v16  ;;  %v6570_v32 = vmul.f32 -1.442695, %v5721_v4  ;;  %v12379_v16 = vld [vmem:[#allocation61_spill] sm:$0xff]  ;;  %v12382_v7 = vld [vmem:[#allocation62_spill] sm:$0xff] }
 0x5ad   : > { %v8438_v12 = vpop.eup %8437  ;;  %v5963_v34 = vadd.f32 %v5931_v62, %v12367_v60  ;;  %v5844_v36 = vadd.f32 1.0, %v8436_v6  ;;  %8457 = vpow2.f32 %v6571_v53  ;;  %v12384_v53 = vld [vmem:[#allocation63_spill] sm:$0xff] }
 0x5ae   : > { %v8440_v25 = vpop.eup %8439  ;;  %5996 = vst.msk [vmem:[%s11733_s22 + $0x88] sm:$0xff] %vm1372_vm2, %v5964_v15  ;;  %v5934_v46 = vmul.f32 %v8438_v12, %v12368_v39  ;;  %8459 = vrcp.f32 %v5841_v58  ;;  %v12385_v58 = vld [vmem:[#allocation46_spill] sm:$0xff]  ;;  %v12386_v12 = vld [vmem:[#allocation64_spill] sm:$0xff] }
 0x5af   : > { %v8442_v35 = vpop.eup %8441  ;;  %5995 = vst.msk [vmem:[%s11733_s22 + $0x80] sm:$0xff] %vm1372_vm2, %v5963_v34  ;;  %8461 = vrcp.f32 %v5844_v36  ;;  %v5843_v37 = vadd.f32 1.0, %v8440_v25  ;;  %v12387_v34 = vld [vmem:[#allocation65_spill] sm:$0xff]  ;;  %v12388_v25 = vld [vmem:[#allocation44_spill] sm:$0xff] }
 0x5b0   : > { %v8444_v24 = vpop.eup %8443  ;;  %v5966_v22 = vadd.f32 %v5934_v46, %v12369_v57  ;;  %v5933_v48 = vmul.f32 %v8442_v35, %v12370_v59  ;;  %8463 = vpow2.f32 %v6570_v32  ;;  %v12389_v35 = vld [vmem:[#allocation50_spill] sm:$0xff]  ;;  %v12391_v59 = vld [vmem:[#allocation67_spill] sm:$0xff] }
 0x5b1   : > { %v8446_v41 = vpop.eup %8445  ;;  %8465 = vrcp.f32 %v5843_v37  ;;  %v5846_v20 = vadd.f32 1.0, %v8444_v24  ;;  %v12390_v57 = vld [vmem:[#allocation66_spill] sm:$0xff] }
 0x5b2   : > { %v8448_v45 = vpop.eup %8447  ;;  %5998 = vst.msk [vmem:[%s11733_s22 + $0x98] sm:$0xff] %vm1372_vm2, %v5966_v22  ;;  %v5965_v11 = vadd.f32 %v5933_v48, %v12371_v54  ;;  %v5936_v31 = vmul.f32 %v8446_v41, %v12372_v28  ;;  %v12392_v41 = vld [vmem:[#allocation48_spill] sm:$0xff]  ;;  %v12393_v54 = vld [vmem:[#allocation54_spill] sm:$0xff] }
 0x5b3   : > { %v8450_v44 = vpop.eup %8449  ;;  %8467 = vrcp.f32 %v5846_v20  ;;  %v5845_v27 = vadd.f32 1.0, %v8448_v45  ;;  %v12394_v28 = vld [vmem:[#allocation68_spill] sm:$0xff] }
 0x5b4   : > { %v8452_v14 = vpop.eup %8451  ;;  %5997 = vst.msk [vmem:[%s11733_s22 + $0x90] sm:$0xff] %vm1372_vm2, %v5965_v11  ;;  %v5968_v51 = vadd.f32 %v5936_v31, %v12373_v21  ;;  %v5848_v33 = vadd.f32 1.0, %v8450_v44  ;;  %v12395_v44 = vld [vmem:[#allocation52_spill] sm:$0xff] }
 0x5b5   : > { %v8454_v26 = vpop.eup %8453  ;;  %v5935_v55 = vmul.f32 %v8452_v14, %v12374_v61  ;;  %8469 = vrcp.f32 %v5845_v27 }
 0x5b6   : > { %v8456_v43 = vpop.eup %8455  ;;  %6000 = vst.msk [vmem:[%s11733_s22 + $0xa8] sm:$0xff] %vm1372_vm2, %v5968_v51  ;;  %v5938_v40 = vmul.f32 %v8454_v26, %v12375_v0  ;;  %8471 = vrcp.f32 %v5848_v33 }
 0x5b7   : > { %v8458_v10 = vpop.eup %8457  ;;  %v5967_v17 = vadd.f32 %v5935_v55, %v12376_v30  ;;  %v5847_v18 = vadd.f32 1.0, %v8456_v43 }
 0x5b8   : > { %v8460_v19 = vpop.eup %8459  ;;  %v5970_v38 = vadd.f32 %v5938_v40, %v12377_v23  ;;  %v5850_v1 = vadd.f32 1.0, %v8458_v10 }
 0x5b9   : > { %v8462_v13 = vpop.eup %8461  ;;  %5999 = vst.msk [vmem:[%s11733_s22 + $0xa0] sm:$0xff] %vm1372_vm2, %v5967_v17  ;;  %v5937_v9 = vmul.f32 %v8460_v19, %v12378_v49  ;;  %8473 = vrcp.f32 %v5847_v18 }
 0x5ba   : > { %v8464_v63 = vpop.eup %8463  ;;  %6002 = vst.msk [vmem:[%s11733_s22 + $0xb8] sm:$0xff] %vm1372_vm2, %v5970_v38  ;;  %v5940_v56 = vmul.f32 %v8462_v13, %v12379_v16  ;;  %8475 = vrcp.f32 %v5850_v1 }
 0x5bb   : > { %v8466_v29 = vpop.eup %8465  ;;  %v5969_v50 = vadd.f32 %v5937_v9, %v12380_v3  ;;  %v5849_v42 = vadd.f32 1.0, %v8464_v63 }
 0x5bc   : > { %v5972_v47 = vadd.f32 %v5940_v56, %v12381_v2  ;;  %v5939_v4 = vmul.f32 %v8466_v29, %v12382_v7 }
 0x5bd   : > { %v8468_v8 = vpop.eup %8467  ;;  %6001 = vst.msk [vmem:[%s11733_s22 + $0xb0] sm:$0xff] %vm1372_vm2, %v5969_v50  ;;  %8477 = vrcp.f32 %v5849_v42 }
 0x5be   : > { %6004 = vst.msk [vmem:[%s11733_s22 + $0xc8] sm:$0xff] %vm1372_vm2, %v5972_v47  ;;  %v5971_v62 = vadd.f32 %v5939_v4, %v12383_v52  ;;  %v5942_v6 = vmul.f32 %v8468_v8, %v12384_v53 }
 0x5bf   : > { %v8470_v5 = vpop.eup %8469 }
 0x5c0   : > { %v8472_v15 = vpop.eup %8471  ;;  %6003 = vst.msk [vmem:[%s11733_s22 + $0xc0] sm:$0xff] %vm1372_vm2, %v5971_v62  ;;  %v5974_v32 = vadd.f32 %v5942_v6, %v12385_v58  ;;  %v5941_v60 = vmul.f32 %v8470_v5, %v12386_v12 }
 0x5c1   : > { %v5944_v36 = vmul.f32 %v8472_v15, %v12387_v34 }
 0x5c2   : > { %6006 = vst.msk [vmem:[%s11733_s22 + $0xd8] sm:$0xff] %vm1372_vm2, %v5974_v32  ;;  %v5973_v39 = vadd.f32 %v5941_v60, %v12388_v25 }
 0x5c3   : > { %v8474_v46 = vpop.eup %8473  ;;  %v5976_v37 = vadd.f32 %v5944_v36, %v12389_v35 }
 0x5c4   : > { %v8476_v24 = vpop.eup %8475  ;;  %6005 = vst.msk [vmem:[%s11733_s22 + $0xd0] sm:$0xff] %vm1372_vm2, %v5973_v39  ;;  %v5943_v22 = vmul.f32 %v8474_v46, %v12390_v57 }
 0x5c5   : > { %6008 = vst.msk [vmem:[%s11733_s22 + $0xe8] sm:$0xff] %vm1372_vm2, %v5976_v37  ;;  %v5946_v48 = vmul.f32 %v8476_v24, %v12391_v59 }
 0x5c6   : > { %v5975_v20 = vadd.f32 %v5943_v22, %v12392_v41 }
 0x5c7   : > { %v8478_v45 = vpop.eup %8477  ;;  %v5978_v11 = vadd.f32 %v5946_v48, %v12393_v54 }
 0x5c8   : > { %6007 = vst.msk [vmem:[%s11733_s22 + $0xe0] sm:$0xff] %vm1372_vm2, %v5975_v20  ;;  %v5945_v31 = vmul.f32 %v8478_v45, %v12394_v28 }
 0x5c9   : > { %6010 = vst.msk [vmem:[%s11733_s22 + $0xf8] sm:$0xff] %vm1372_vm2, %v5978_v11 }
 0x5ca   : > { %v5977_v27 = vadd.f32 %v5945_v31, %v12395_v44 }
 0x5cc   : > { %6009 = vst.msk [vmem:[%s11733_s22 + $0xf0] sm:$0xff] %vm1372_vm2, %v5977_v27 }
 0x5cd   : > { %8526 = shalt.err (!%p8523_p5)
}
 0x5ce   : > { %s8527_s20 = scalar_lea.hbm %s11892_s10, 4096  ;;  %s8531_s22 = scalar_lea.hbm %s11953_s6, 8192 }
 0x5cf   : > { %p8528_p6 = scmp.ne.s32.totalorder %s11892_s10, %s8527_s20  ;;  %p8532_p10 = scmp.lt.u32.totalorder %s11892_s10, %s11953_s6 }
 0x5d0   : > { %p8533_p11 = scmp.lt.u32.totalorder %s8531_s22, %s8527_s20  ;;  %p8535_p13 = scmp.lt.u32.totalorder %s8527_s20, %s11892_s10 }
 0x5d1   : > { %p8529_p7 = pnand %p8528_p6, %p8681_p4 }
 0x5d2   : > { %p8534_p12 = por %p8533_p11, %p8532_p10 }
 0x5d3   : > { %p8530_p9 = pneg %p8529_p7 }
 0x5d4   : > { %p8536_p0 = por %p8535_p13, %p8534_p12 }
 0x5d6   : > { %p8537_p1 = pnand %p8536_p0, %p8530_p9 }
 0x5d8   : > { %8540 = shalt.err (!%p8537_p1)
}
 0x5d9   : > { %s8599_s8 = smov 128   ;;  %s8600_s18 = smov 8  }
 0x5da   : > { %7744 = dma.vmem_to_hbm [thread:$0]  (%p8681_p4), %s11894_s15, 4096, %s11892_s10, %s11901_s27, %s8599_s8, %s8599_s8, %s8600_s18  }
 0x5db PF: > { %p7750_p2 = scmp.ge.s32.totalorder %s8591_s29, 2  ;;  %s6057_s12 = sand.u32 1, %s8571_s24  }
 0x5dc   : > { %s6058_s17 = scalar_lea.sflag [#allocation3], %s6057_s12 }
 0x5dd   : > { %p7747_p3 = pnand %p7750_p2, %p8688_p8 }
 0x5df   : > { %8566 = dma.done.wait (!%p7747_p3), %s6058_s17, 4096  }
 0x5e0   : > { %8568 = vsyncadd (!%p7747_p3), %s6058_s17, 4294963200  ;;  %s21_s29 = sadd.s32 1, %s8591_s29   ;;  %s12396_s24 = smov %s8575_s25 }
 0x5e1   : > { %p18_p5 = scmp.ge.s32.totalorder %s21_s29, 4   ;;  %s12397_s25 = smov %s8579_s26 }
 0x5e2   : > { %s12398_s26 = smov %s8694_s14  ;;  %s12399_s27 = smov %s8587_s28 }
 0x5e3   : > { %s12400_s28 = smov %s12402_s9  ;;  %20 = sbr.rel (!%p18_p5) target bundleno = 4 (0x4), region = 102 }
 0x5ea   :  { %6076 = vsyncpa [#allocation3], 1 }
 0x5eb   :  { %6078 = vsyncpa [#allocation3 + $0x1], 1 }

</bundles_post_ra>
